<compile_context>
chip_gen: v5e
topology: v5e:2x2
jax: 0.10.0
libtpu: 0.0.40
codegen_flags: <defaults>
</compile_context>

<pallas_src>
import functools

import jax
import jax.numpy as jnp
from jax.experimental import pallas as pl
from jax.experimental.pallas import tpu as pltpu


# ----------------------------------------------------------------------------
# Glue helpers (parameter prep / layout plumbing — no hot-path compute)
# ----------------------------------------------------------------------------
def _interp_matrix(n_in: int, n_out: int) -> jnp.ndarray:
    """Row-interpolation matrix for bilinear resize with align_corners=True."""
    if n_in == 1:
        return jnp.ones((n_out, 1), jnp.float32)
    o = jnp.arange(n_out, dtype=jnp.float32)
    src = o * (n_in - 1) / (n_out - 1)
    lo = jnp.clip(jnp.floor(src).astype(jnp.int32), 0, n_in - 2)
    frac = src - lo.astype(jnp.float32)
    rows = jnp.arange(n_out)
    m = jnp.zeros((n_out, n_in), jnp.float32)
    m = m.at[rows, lo].add(1.0 - frac)
    m = m.at[rows, lo + 1].add(frac)
    return m


def _fold_bn(conv_b, gamma, beta, mean, var, eps: float = 1e-5):
    """Fold Conv bias + eval-mode BatchNorm into per-channel (scale, bias)."""
    scale = gamma / jnp.sqrt(var + eps)
    bias = (conv_b - mean) * scale + beta
    return jnp.stack([scale, bias], axis=1).astype(jnp.float32)   # (Cout, 2)


# ----------------------------------------------------------------------------
# Pallas kernels
# ----------------------------------------------------------------------------
def _matmul_kernel(a_ref, b_ref, o_ref):
    o_ref[...] = jnp.dot(a_ref[...], b_ref[...],
                         preferred_element_type=jnp.float32).astype(o_ref.dtype)


def _pallas_matmul(a, b):
    m, _ = a.shape
    _, n = b.shape
    return pl.pallas_call(
        _matmul_kernel,
        out_shape=jax.ShapeDtypeStruct((m, n), jnp.float32),
    )(a, b)


def _conv3x3_bn_relu_kernel(*refs, n_in, H, W):
    """Fused 3x3 conv (optionally over a fused channel-concat) + BN + ReLU.

    refs = (x_0..x_{n_in-1}, w_0..w_{n_in-1}, sc, out)
      x_i : (H+2, W+2, Cin_i)  NHWC slab for one batch element (spatially pre-padded)
      w_i : (9, Cin_i, Cout)   conv taps, tap index k = 3*ky + kx
      sc  : (Cout, 2)          column 0 = scale, column 1 = bias (BN + conv bias folded)
      out : (Cout, H*W)        channels-first, lane-dense flattened spatial
    """
    x_refs = refs[:n_in]
    w_refs = refs[n_in:2 * n_in]
    sc_ref = refs[2 * n_in]
    o_ref = refs[2 * n_in + 1]
    cout = o_ref.shape[0]

    acc = jnp.zeros((cout, H * W), jnp.float32)
    # contract w's Cin dim (0) with xs's Cin dim (1)  ->  (Cout, H*W)
    dn = (((0,), (1,)), ((), ()))
    for i in range(n_in):
        cin = x_refs[i].shape[-1]
        for k in range(9):
            ky, kx = divmod(k, 3)
            xs = x_refs[i][ky:ky + H, kx:kx + W, :].reshape(H * W, cin)
            acc = acc + jax.lax.dot_general(
                w_refs[i][k], xs, dn, preferred_element_type=jnp.float32)
    y = acc * sc_ref[:, 0:1] + sc_ref[:, 1:2]
    o_ref[...] = jnp.maximum(y, 0.0).astype(o_ref.dtype)


def _conv3x3_bn_relu(x_pads, w_taps, sc, H, W, cout):
    """x_pads: list of (B, H+2, W+2, Cin_i) slabs.  Returns (B, cout, H*W)."""
    n_in = len(x_pads)
    B = x_pads[0].shape[0]
    in_specs = (
        [pl.BlockSpec((None, H + 2, W + 2, xp.shape[-1]),
                      lambda b: (b, 0, 0, 0)) for xp in x_pads]
        + [pl.BlockSpec(wt.shape, lambda b: (0, 0, 0)) for wt in w_taps]
        + [pl.BlockSpec(sc.shape, lambda b: (0, 0))]
    )
    return pl.pallas_call(
        functools.partial(_conv3x3_bn_relu_kernel, n_in=n_in, H=H, W=W),
        out_shape=jax.ShapeDtypeStruct((B, cout, H * W), jnp.float32),
        grid_spec=pltpu.PrefetchScalarGridSpec(
            num_scalar_prefetch=0,
            grid=(B,),
            in_specs=in_specs,
            out_specs=pl.BlockSpec((None, cout, H * W), lambda b: (b, 0, 0)),
        ),
        compiler_params=pltpu.CompilerParams(
            dimension_semantics=("parallel",)),
    )(*x_pads, *w_taps, sc)


# ----------------------------------------------------------------------------
# Up.forward wrapper
# ----------------------------------------------------------------------------
@jax.jit
def up_forward(x1, x2, params):
    """Up.forward(x1, x2): NCHW in, NCHW out. Inference mode, bilinear=True."""
    B, C1, H, W = x1.shape
    _, C2, Ho, Wo = x2.shape
    H2, W2 = 2 * H, 2 * W

    # ---- bilinear x2 upsample (align_corners=True) as two lane-dense matmuls ----
    Ah = _interp_matrix(H, H2)                                      # (H2, H)
    Aw = _interp_matrix(W, W2)                                      # (W2, W)
    x1_nhwc = jnp.transpose(x1, (0, 2, 3, 1))                       # (B,H,W,C1)
    xa = jnp.transpose(x1_nhwc, (1, 0, 2, 3)).reshape(H, B * W * C1)
    t = _pallas_matmul(Ah, xa).reshape(H2, B, W, C1)                # up along H
    xb = jnp.transpose(t, (2, 1, 0, 3)).reshape(W, B * H2 * C1)
    u = _pallas_matmul(Aw, xb).reshape(W2, B, H2, C1)               # up along W
    x1_up = jnp.transpose(u, (1, 2, 0, 3))                          # (B,H2,W2,C1)

    # ---- F.pad to x2's spatial size, merged with the conv-1 halo padding ----
    dY, dX = Ho - H2, Wo - W2
    x1_pad = jnp.pad(x1_up, ((0, 0),
                             (1 + dY // 2, 1 + dY - dY // 2),
                             (1 + dX // 2, 1 + dX - dX // 2),
                             (0, 0)))
    x2_pad = jnp.pad(jnp.transpose(x2, (0, 2, 3, 1)),
                     ((0, 0), (1, 1), (1, 1), (0, 0)))

    # ---- DoubleConv stage 1 (channel concat fused by splitting the weights) ----
    wA, bA = params["conv1_w"], params["conv1_b"]                   # (Cmid, C2+C1, 3, 3)
    Cmid = wA.shape[0]
    w2_taps = jnp.transpose(wA[:, :C2], (2, 3, 1, 0)).reshape(9, C2, Cmid)
    w1_taps = jnp.transpose(wA[:, C2:], (2, 3, 1, 0)).reshape(9, C1, Cmid)
    sc1 = _fold_bn(bA, params["bn1_gamma"], params["bn1_beta"],
                   params["bn1_mean"], params["bn1_var"])
    h = _conv3x3_bn_relu([x2_pad, x1_pad], [w2_taps, w1_taps], sc1, Ho, Wo, Cmid)

    # ---- DoubleConv stage 2 ----
    wB, bB = params["conv2_w"], params["conv2_b"]                   # (Cout, Cmid, 3, 3)
    Cout = wB.shape[0]
    wB_taps = jnp.transpose(wB, (2, 3, 1, 0)).reshape(9, Cmid, Cout)
    sc2 = _fold_bn(bB, params["bn2_gamma"], params["bn2_beta"],
                   params["bn2_mean"], params["bn2_var"])
    h_nhwc = jnp.transpose(h.reshape(B, Cmid, Ho, Wo), (0, 2, 3, 1))
    h_pad = jnp.pad(h_nhwc, ((0, 0), (1, 1), (1, 1), (0, 0)))
    out = _conv3x3_bn_relu([h_pad], [wB_taps], sc2, Ho, Wo, Cout)

    return out.reshape(B, Cout, Ho, Wo)                             # NCHW


# ----------------------------------------------------------------------------
# Pure-JAX reference (PyTorch eval-mode semantics) for verification
# ----------------------------------------------------------------------------
def _ref_up_forward(x1, x2, params, eps: float = 1e-5):
    _, _, H, W = x1.shape
    Ah = _interp_matrix(H, 2 * H)
    Aw = _interp_matrix(W, 2 * W)
    x1u = jnp.einsum('oh,pw,bchw->bcop', Ah, Aw, x1)
    dY = x2.shape[2] - x1u.shape[2]
    dX = x2.shape[3] - x1u.shape[3]
    x1u = jnp.pad(x1u, ((0, 0), (0, 0),
                        (dY // 2, dY - dY // 2), (dX // 2, dX - dX // 2)))
    x = jnp.concatenate([x2, x1u], axis=1)

    def conv_bn_relu(x, w, b, gamma, beta, mean, var):
        y = jax.lax.conv_general_dilated(
            x, w, window_strides=(1, 1), padding=((1, 1), (1, 1)),
            dimension_numbers=('NCHW', 'OIHW', 'NCHW'))
        y = y + b[None, :, None, None]
        y = (y - mean[None, :, None, None]) * (
            gamma[None, :, None, None] / jnp.sqrt(var[None, :, None, None] + eps)
        ) + beta[None, :, None, None]
        return jnp.maximum(y, 0.0)

    h = conv_bn_relu(x, params["conv1_w"], params["conv1_b"],
                     params["bn1_gamma"], params["bn1_beta"],
                     params["bn1_mean"], params["bn1_var"])
    return conv_bn_relu(h, params["conv2_w"], params["conv2_b"],
                        params["bn2_gamma"], params["bn2_beta"],
                        params["bn2_mean"], params["bn2_var"])


# ----------------------------------------------------------------------------
# Main
# ----------------------------------------------------------------------------
if __name__ == "__main__":
    key = jax.random.PRNGKey(0)
    B = 2
    in_channels, out_channels = 32, 16          # Up(32, 16, bilinear=True)
    C1 = in_channels // 2                       # channels of x1 (upsampled branch)
    C2 = in_channels - C1                       # channels of the skip connection x2
    Cmid = in_channels // 2                     # DoubleConv mid channels
    H, W = 8, 8                                 # x1 spatial; x2 is 16 x 16

    ks = jax.random.split(key, 12)
    x1 = jax.random.normal(ks[0], (B, C1, H, W), jnp.float32)
    x2 = jax.random.normal(ks[1], (B, C2, 2 * H, 2 * W), jnp.float32)

    params = {
        "conv1_w": 0.1 * jax.random.normal(ks[2], (Cmid, in_channels, 3, 3), jnp.float32),
        "conv1_b": 0.1 * jax.random.normal(ks[3], (Cmid,), jnp.float32),
        "bn1_gamma": 1.0 + 0.1 * jax.random.normal(ks[4], (Cmid,), jnp.float32),
        "bn1_beta": 0.1 * jax.random.normal(ks[5], (Cmid,), jnp.float32),
        "bn1_mean": 0.1 * jax.random.normal(ks[6], (Cmid,), jnp.float32),
        "bn1_var": jax.random.uniform(ks[7], (Cmid,), jnp.float32, 0.5, 1.5),
        "conv2_w": 0.1 * jax.random.normal(ks[8], (out_channels, Cmid, 3, 3), jnp.float32),
        "conv2_b": 0.1 * jax.random.normal(ks[9], (out_channels,), jnp.float32),
        "bn2_gamma": 1.0 + 0.1 * jax.random.normal(ks[10], (out_channels,), jnp.float32),
        "bn2_beta": 0.1 * jax.random.normal(ks[11], (out_channels,), jnp.float32),
        "bn2_mean": jnp.zeros((out_channels,), jnp.float32),
        "bn2_var": jnp.ones((out_channels,), jnp.float32),
    }

    out = jax.block_until_ready(up_forward(x1, x2, params))
    assert out.shape == (B, out_channels, 2 * H, 2 * W), out.shape

    ref = jax.block_until_ready(_ref_up_forward(x1, x2, params))
    max_err = float(jnp.max(jnp.abs(out - ref)))
    assert jnp.allclose(out, ref, rtol=2e-2, atol=2e-2), f"mismatch: max abs err {max_err}"

    print("KERNEL_OK")
</pallas_src>

<mosaic_0001>
module attributes {stable_mosaic.version = 11 : i64} {
  func.func @_matmul_kernel(%arg0: memref<16x8xf32, #tpu.memory_space<vmem>>, %arg1: memref<8x256xf32, #tpu.memory_space<vmem>>, %arg2: memref<16x256xf32, #tpu.memory_space<vmem>>) attributes {dimension_semantics = [], scalar_prefetch = 0 : i64, scratch_operands = 0 : i64, tpu.core_type = #tpu.core_type<tc>} {
    %c0 = arith.constant 0 : index
    %c0_0 = arith.constant 0 : index
    %0 = vector.load %arg0[%c0, %c0_0] : memref<16x8xf32, #tpu.memory_space<vmem>>, vector<16x8xf32>
    %c0_1 = arith.constant 0 : index
    %c0_2 = arith.constant 0 : index
    %1 = vector.load %arg1[%c0_1, %c0_2] : memref<8x256xf32, #tpu.memory_space<vmem>>, vector<8x256xf32>
    %cst = arith.constant dense<0.000000e+00> : vector<16x256xf32>
    %2 = tpu.matmul %0, %1, %cst {dimension_numbers = #tpu.dot_dimension_numbers<[1], [0], [0], [1], [0, 0, 1, 1], [], []>} : vector<16x8xf32>, vector<8x256xf32>, vector<16x256xf32> -> vector<16x256xf32>
    %c0_3 = arith.constant 0 : index
    %c0_4 = arith.constant 0 : index
    %3 = vector.load %arg2[%c0_3, %c0_4] : memref<16x256xf32, #tpu.memory_space<vmem>>, vector<16x256xf32>
    tpu.vector_store %arg2[%c0_3, %c0_4], %2 {strides = array<i32>} : memref<16x256xf32, #tpu.memory_space<vmem>>, vector<16x256xf32>,
    return
  }
}

module attributes {stable_mosaic.version = 11 : i64} {
  func.func @_matmul_kernel(%arg0: memref<16x8xf32, #tpu.memory_space<vmem>>, %arg1: memref<8x512xf32, #tpu.memory_space<vmem>>, %arg2: memref<16x512xf32, #tpu.memory_space<vmem>>) attributes {dimension_semantics = [], scalar_prefetch = 0 : i64, scratch_operands = 0 : i64, tpu.core_type = #tpu.core_type<tc>} {
    %c0 = arith.constant 0 : index
    %c0_0 = arith.constant 0 : index
    %0 = vector.load %arg0[%c0, %c0_0] : memref<16x8xf32, #tpu.memory_space<vmem>>, vector<16x8xf32>
    %c0_1 = arith.constant 0 : index
    %c0_2 = arith.constant 0 : index
    %1 = vector.load %arg1[%c0_1, %c0_2] : memref<8x512xf32, #tpu.memory_space<vmem>>, vector<8x512xf32>
    %cst = arith.constant dense<0.000000e+00> : vector<16x512xf32>
    %2 = tpu.matmul %0, %1, %cst {dimension_numbers = #tpu.dot_dimension_numbers<[1], [0], [0], [1], [0, 0, 1, 1], [], []>} : vector<16x8xf32>, vector<8x512xf32>, vector<16x512xf32> -> vector<16x512xf32>
    %c0_3 = arith.constant 0 : index
    %c0_4 = arith.constant 0 : index
    %3 = vector.load %arg2[%c0_3, %c0_4] : memref<16x512xf32, #tpu.memory_space<vmem>>, vector<16x512xf32>
    tpu.vector_store %arg2[%c0_3, %c0_4], %2 {strides = array<i32>} : memref<16x512xf32, #tpu.memory_space<vmem>>, vector<16x512xf32>,
    return
  }
}

module attributes {stable_mosaic.version = 11 : i64} {
  func.func @_conv3x3_bn_relu_kernel(%arg0: i32, %arg1: memref<1x18x18x16xf32, #tpu.memory_space<vmem>>, %arg2: memref<9x16x16xf32, #tpu.memory_space<vmem>>, %arg3: memref<16x2xf32, #tpu.memory_space<vmem>>, %arg4: memref<1x16x256xf32, #tpu.memory_space<vmem>>) attributes {dimension_semantics = [#tpu.dimension_semantics<parallel>], iteration_bounds = array<i64: 2>, scalar_prefetch = 0 : i64, scratch_operands = 0 : i64, tpu.core_type = #tpu.core_type<tc>, window_params = [{transform_indices = @transform_0, window_bounds = array<i64: 1, 18, 18, 16>}, {pipeline_mode = #tpu.pipeline_mode<synchronous>, transform_indices = @transform_1, window_bounds = array<i64: 9, 16, 16>}, {pipeline_mode = #tpu.pipeline_mode<synchronous>, transform_indices = @transform_2, window_bounds = array<i64: 16, 2>}, {transform_indices = @transform_3, window_bounds = array<i64: 1, 16, 256>}]} {
    %cst = arith.constant 0.000000e+00 : f32
    %0 = vector.broadcast %cst : f32 to vector<16x256xf32>
    %c0 = arith.constant 0 : index
    %c0_0 = arith.constant 0 : index
    %c0_1 = arith.constant 0 : index
    %c0_2 = arith.constant 0 : index
    %1 = vector.load %arg1[%c0, %c0_0, %c0_1, %c0_2] : memref<1x18x18x16xf32, #tpu.memory_space<vmem>>, vector<1x16x16x16xf32>
    %2 = vector.shape_cast %1 : vector<1x16x16x16xf32> to vector<16x16x16xf32>
    %3 = vector.shape_cast %2 : vector<16x16x16xf32> to vector<256x16xf32>
    %c0_3 = arith.constant 0 : index
    %c0_4 = arith.constant 0 : index
    %c0_5 = arith.constant 0 : index
    %4 = vector.load %arg2[%c0_3, %c0_4, %c0_5] : memref<9x16x16xf32, #tpu.memory_space<vmem>>, vector<1x16x16xf32>
    %5 = vector.shape_cast %4 : vector<1x16x16xf32> to vector<16x16xf32>
    %cst_6 = arith.constant dense<0.000000e+00> : vector<16x256xf32>
    %6 = tpu.matmul %5, %3, %cst_6 {dimension_numbers = #tpu.dot_dimension_numbers<[0], [1], [1], [0], [0, 1, 1, 0], [], []>} : vector<16x16xf32>, vector<256x16xf32>, vector<16x256xf32> -> vector<16x256xf32>
    %7 = arith.addf %0, %6 : vector<16x256xf32>
    %c0_7 = arith.constant 0 : index
    %c0_8 = arith.constant 0 : index
    %c1 = arith.constant 1 : index
    %c0_9 = arith.constant 0 : index
    %8 = vector.load %arg1[%c0_7, %c0_8, %c1, %c0_9] : memref<1x18x18x16xf32, #tpu.memory_space<vmem>>, vector<1x16x16x16xf32>
    %9 = vector.shape_cast %8 : vector<1x16x16x16xf32> to vector<16x16x16xf32>
    %10 = vector.shape_cast %9 : vector<16x16x16xf32> to vector<256x16xf32>
    %c1_10 = arith.constant 1 : index
    %c0_11 = arith.constant 0 : index
    %c0_12 = arith.constant 0 : index
    %11 = vector.load %arg2[%c1_10, %c0_11, %c0_12] : memref<9x16x16xf32, #tpu.memory_space<vmem>>, vector<1x16x16xf32>
    %12 = vector.shape_cast %11 : vector<1x16x16xf32> to vector<16x16xf32>
    %cst_13 = arith.constant dense<0.000000e+00> : vector<16x256xf32>
    %13 = tpu.matmul %12, %10, %cst_13 {dimension_numbers = #tpu.dot_dimension_numbers<[0], [1], [1], [0], [0, 1, 1, 0], [], []>} : vector<16x16xf32>, vector<256x16xf32>, vector<16x256xf32> -> vector<16x256xf32>
    %14 = arith.addf %7, %13 : vector<16x256xf32>
    %c0_14 = arith.constant 0 : index
    %c0_15 = arith.constant 0 : index
    %c2 = arith.constant 2 : index
    %c0_16 = arith.constant 0 : index
    %15 = vector.load %arg1[%c0_14, %c0_15, %c2, %c0_16] : memref<1x18x18x16xf32, #tpu.memory_space<vmem>>, vector<1x16x16x16xf32>
    %16 = vector.shape_cast %15 : vector<1x16x16x16xf32> to vector<16x16x16xf32>
    %17 = vector.shape_cast %16 : vector<16x16x16xf32> to vector<256x16xf32>
    %c2_17 = arith.constant 2 : index
    %c0_18 = arith.constant 0 : index
    %c0_19 = arith.constant 0 : index
    %18 = vector.load %arg2[%c2_17, %c0_18, %c0_19] : memref<9x16x16xf32, #tpu.memory_space<vmem>>, vector<1x16x16xf32>
    %19 = vector.shape_cast %18 : vector<1x16x16xf32> to vector<16x16xf32>
    %cst_20 = arith.constant dense<0.000000e+00> : vector<16x256xf32>
    %20 = tpu.matmul %19, %17, %cst_20 {dimension_numbers = #tpu.dot_dimension_numbers<[0], [1], [1], [0], [0, 1, 1, 0], [], []>} : vector<16x16xf32>, vector<256x16xf32>, vector<16x256xf32> -> vector<16x256xf32>
    %21 = arith.addf %14, %20 : vector<16x256xf32>
    %c0_21 = arith.constant 0 : index
    %c1_22 = arith.constant 1 : index
    %c0_23 = arith.constant 0 : index
    %c0_24 = arith.constant 0 : index
    %22 = vector.load %arg1[%c0_21, %c1_22, %c0_23, %c0_24] : memref<1x18x18x16xf32, #tpu.memory_space<vmem>>, vector<1x16x16x16xf32>
    %23 = vector.shape_cast %22 : vector<1x16x16x16xf32> to vector<16x16x16xf32>
    %24 = vector.shape_cast %23 : vector<16x16x16xf32> to vector<256x16xf32>
    %c3 = arith.constant 3 : index
    %c0_25 = arith.constant 0 : index
    %c0_26 = arith.constant 0 : index
    %25 = vector.load %arg2[%c3, %c0_25, %c0_26] : memref<9x16x16xf32, #tpu.memory_space<vmem>>, vector<1x16x16xf32>
    %26 = vector.shape_cast %25 : vector<1x16x16xf32> to vector<16x16xf32>
    %cst_27 = arith.constant dense<0.000000e+00> : vector<16x256xf32>
    %27 = tpu.matmul %26, %24, %cst_27 {dimension_numbers = #tpu.dot_dimension_numbers<[0], [1], [1], [0], [0, 1, 1, 0], [], []>} : vector<16x16xf32>, vector<256x16xf32>, vector<16x256xf32> -> vector<16x256xf32>
    %28 = arith.addf %21, %27 : vector<16x256xf32>
    %c0_28 = arith.constant 0 : index
    %c1_29 = arith.constant 1 : index
    %c1_30 = arith.constant 1 : index
    %c0_31 = arith.constant 0 : index
    %29 = vector.load %arg1[%c0_28, %c1_29, %c1_30, %c0_31] : memref<1x18x18x16xf32, #tpu.memory_space<vmem>>, vector<1x16x16x16xf32>
    %30 = vector.shape_cast %29 : vector<1x16x16x16xf32> to vector<16x16x16xf32>
    %31 = vector.shape_cast %30 : vector<16x16x16xf32> to vector<256x16xf32>
    %c4 = arith.constant 4 : index
    %c0_32 = arith.constant 0 : index
    %c0_33 = arith.constant 0 : index
    %32 = vector.load %arg2[%c4, %c0_32, %c0_33] : memref<9x16x16xf32, #tpu.memory_space<vmem>>, vector<1x16x16xf32>
    %33 = vector.shape_cast %32 : vector<1x16x16xf32> to vector<16x16xf32>
    %cst_34 = arith.constant dense<0.000000e+00> : vector<16x256xf32>
    %34 = tpu.matmul %33, %31, %cst_34 {dimension_numbers = #tpu.dot_dimension_numbers<[0], [1], [1], [0], [0, 1, 1, 0], [], []>} : vector<16x16xf32>, vector<256x16xf32>, vector<16x256xf32> -> vector<16x256xf32>
    %35 = arith.addf %28, %34 : vector<16x256xf32>
    %c0_35 = arith.constant 0 : index
    %c1_36 = arith.constant 1 : index
    %c2_37 = arith.constant 2 : index
    %c0_38 = arith.constant 0 : index
    %36 = vector.load %arg1[%c0_35, %c1_36, %c2_37, %c0_38] : memref<1x18x18x16xf32, #tpu.memory_space<vmem>>, vector<1x16x16x16xf32>
    %37 = vector.shape_cast %36 : vector<1x16x16x16xf32> to vector<16x16x16xf32>
    %38 = vector.shape_cast %37 : vector<16x16x16xf32> to vector<256x16xf32>
    %c5 = arith.constant 5 : index
    %c0_39 = arith.constant 0 : index
    %c0_40 = arith.constant 0 : index
    %39 = vector.load %arg2[%c5, %c0_39, %c0_40] : memref<9x16x16xf32, #tpu.memory_space<vmem>>, vector<1x16x16xf32>
    %40 = vector.shape_cast %39 : vector<1x16x16xf32> to vector<16x16xf32>
    %cst_41 = arith.constant dense<0.000000e+00> : vector<16x256xf32>
    %41 = tpu.matmul %40, %38, %cst_41 {dimension_numbers = #tpu.dot_dimension_numbers<[0], [1], [1], [0], [0, 1, 1, 0], [], []>} : vector<16x16xf32>, vector<256x16xf32>, vector<16x256xf32> -> vector<16x256xf32>
    %42 = arith.addf %35, %41 : vector<16x256xf32>
    %c0_42 = arith.constant 0 : index
    %c2_43 = arith.constant 2 : index
    %c0_44 = arith.constant 0 : index
    %c0_45 = arith.constant 0 : index
    %43 = vector.load %arg1[%c0_42, %c2_43, %c0_44, %c0_45] : memref<1x18x18x16xf32, #tpu.memory_space<vmem>>, vector<1x16x16x16xf32>
    %44 = vector.shape_cast %43 : vector<1x16x16x16xf32> to vector<16x16x16xf32>
    %45 = vector.shape_cast %44 : vector<16x16x16xf32> to vector<256x16xf32>
    %c6 = arith.constant 6 : index
    %c0_46 = arith.constant 0 : index
    %c0_47 = arith.constant 0 : index
    %46 = vector.load %arg2[%c6, %c0_46, %c0_47] : memref<9x16x16xf32, #tpu.memory_space<vmem>>, vector<1x16x16xf32>
    %47 = vector.shape_cast %46 : vector<1x16x16xf32> to vector<16x16xf32>
    %cst_48 = arith.constant dense<0.000000e+00> : vector<16x256xf32>
    %48 = tpu.matmul %47, %45, %cst_48 {dimension_numbers = #tpu.dot_dimension_numbers<[0], [1], [1], [0], [0, 1, 1, 0], [], []>} : vector<16x16xf32>, vector<256x16xf32>, vector<16x256xf32> -> vector<16x256xf32>
    %49 = arith.addf %42, %48 : vector<16x256xf32>
    %c0_49 = arith.constant 0 : index
    %c2_50 = arith.constant 2 : index
    %c1_51 = arith.constant 1 : index
    %c0_52 = arith.constant 0 : index
    %50 = vector.load %arg1[%c0_49, %c2_50, %c1_51, %c0_52] : memref<1x18x18x16xf32, #tpu.memory_space<vmem>>, vector<1x16x16x16xf32>
    %51 = vector.shape_cast %50 : vector<1x16x16x16xf32> to vector<16x16x16xf32>
    %52 = vector.shape_cast %51 : vector<16x16x16xf32> to vector<256x16xf32>
    %c7 = arith.constant 7 : index
    %c0_53 = arith.constant 0 : index
    %c0_54 = arith.constant 0 : index
    %53 = vector.load %arg2[%c7, %c0_53, %c0_54] : memref<9x16x16xf32, #tpu.memory_space<vmem>>, vector<1x16x16xf32>
    %54 = vector.shape_cast %53 : vector<1x16x16xf32> to vector<16x16xf32>
    %cst_55 = arith.constant dense<0.000000e+00> : vector<16x256xf32>
    %55 = tpu.matmul %54, %52, %cst_55 {dimension_numbers = #tpu.dot_dimension_numbers<[0], [1], [1], [0], [0, 1, 1, 0], [], []>} : vector<16x16xf32>, vector<256x16xf32>, vector<16x256xf32> -> vector<16x256xf32>
    %56 = arith.addf %49, %55 : vector<16x256xf32>
    %c0_56 = arith.constant 0 : index
    %c2_57 = arith.constant 2 : index
    %c2_58 = arith.constant 2 : index
    %c0_59 = arith.constant 0 : index
    %57 = vector.load %arg1[%c0_56, %c2_57, %c2_58, %c0_59] : memref<1x18x18x16xf32, #tpu.memory_space<vmem>>, vector<1x16x16x16xf32>
    %58 = vector.shape_cast %57 : vector<1x16x16x16xf32> to vector<16x16x16xf32>
    %59 = vector.shape_cast %58 : vector<16x16x16xf32> to vector<256x16xf32>
    %c8 = arith.constant 8 : index
    %c0_60 = arith.constant 0 : index
    %c0_61 = arith.constant 0 : index
    %60 = vector.load %arg2[%c8, %c0_60, %c0_61] : memref<9x16x16xf32, #tpu.memory_space<vmem>>, vector<1x16x16xf32>
    %61 = vector.shape_cast %60 : vector<1x16x16xf32> to vector<16x16xf32>
    %cst_62 = arith.constant dense<0.000000e+00> : vector<16x256xf32>
    %62 = tpu.matmul %61, %59, %cst_62 {dimension_numbers = #tpu.dot_dimension_numbers<[0], [1], [1], [0], [0, 1, 1, 0], [], []>} : vector<16x16xf32>, vector<256x16xf32>, vector<16x256xf32> -> vector<16x256xf32>
    %63 = arith.addf %56, %62 : vector<16x256xf32>
    %c0_63 = arith.constant 0 : index
    %c0_64 = arith.constant 0 : index
    %64 = vector.load %arg3[%c0_63, %c0_64] : memref<16x2xf32, #tpu.memory_space<vmem>>, vector<16x1xf32>
    %65 = vector.broadcast %64 : vector<16x1xf32> to vector<16x256xf32>
    %66 = arith.mulf %63, %65 : vector<16x256xf32>
    %c0_65 = arith.constant 0 : index
    %c1_66 = arith.constant 1 : index
    %67 = vector.load %arg3[%c0_65, %c1_66] : memref<16x2xf32, #tpu.memory_space<vmem>>, vector<16x1xf32>
    %68 = vector.broadcast %67 : vector<16x1xf32> to vector<16x256xf32>
    %69 = arith.addf %66, %68 : vector<16x256xf32>
    %cst_67 = arith.constant 0.000000e+00 : f32
    %70 = vector.broadcast %cst_67 : f32 to vector<16x256xf32>
    %71 = arith.maximumf %69, %70 : vector<16x256xf32>
    %c0_68 = arith.constant 0 : index
    %c0_69 = arith.constant 0 : index
    %c0_70 = arith.constant 0 : index
    %72 = vector.load %arg4[%c0_68, %c0_69, %c0_70] : memref<1x16x256xf32, #tpu.memory_space<vmem>>, vector<1x16x256xf32>
    %73 = vector.shape_cast %72 : vector<1x16x256xf32> to vector<16x256xf32>
    %74 = vector.shape_cast %71 : vector<16x256xf32> to vector<1x16x256xf32>
    tpu.vector_store %arg4[%c0_68, %c0_69, %c0_70], %74 {strides = array<i32>} : memref<1x16x256xf32, #tpu.memory_space<vmem>>, vector<1x16x256xf32>,
    return
  }
  func.func @transform_0(%arg0: i32) -> (i32, i32, i32, i32) {
    %c0_i32 = arith.constant 0 : i32
    %c0_i32_0 = arith.constant 0 : i32
    %c0_i32_1 = arith.constant 0 : i32
    %c0_i32_2 = arith.constant 0 : i32
    return %arg0, %c0_i32, %c0_i32_0, %c0_i32_1 : i32, i32, i32, i32
  }
  func.func @transform_1(%arg0: i32) -> (i32, i32, i32) {
    %c0_i32 = arith.constant 0 : i32
    %c0_i32_0 = arith.constant 0 : i32
    %c0_i32_1 = arith.constant 0 : i32
    %c0_i32_2 = arith.constant 0 : i32
    return %c0_i32, %c0_i32_0, %c0_i32_1 : i32, i32, i32
  }
  func.func @transform_2(%arg0: i32) -> (i32, i32) {
    %c0_i32 = arith.constant 0 : i32
    %c0_i32_0 = arith.constant 0 : i32
    %c0_i32_1 = arith.constant 0 : i32
    return %c0_i32, %c0_i32_0 : i32, i32
  }
  func.func @transform_3(%arg0: i32) -> (i32, i32, i32) {
    %c0_i32 = arith.constant 0 : i32
    %c0_i32_0 = arith.constant 0 : i32
    %c0_i32_1 = arith.constant 0 : i32
    return %arg0, %c0_i32, %c0_i32_0 : i32, i32, i32
  }
}

module attributes {stable_mosaic.version = 11 : i64} {
  func.func @_conv3x3_bn_relu_kernel(%arg0: i32, %arg1: memref<1x18x18x16xf32, #tpu.memory_space<vmem>>, %arg2: memref<1x18x18x16xf32, #tpu.memory_space<vmem>>, %arg3: memref<9x16x16xf32, #tpu.memory_space<vmem>>, %arg4: memref<9x16x16xf32, #tpu.memory_space<vmem>>, %arg5: memref<16x2xf32, #tpu.memory_space<vmem>>, %arg6: memref<1x16x256xf32, #tpu.memory_space<vmem>>) attributes {dimension_semantics = [#tpu.dimension_semantics<parallel>], iteration_bounds = array<i64: 2>, scalar_prefetch = 0 : i64, scratch_operands = 0 : i64, tpu.core_type = #tpu.core_type<tc>, window_params = [{transform_indices = @transform_0, window_bounds = array<i64: 1, 18, 18, 16>}, {transform_indices = @transform_1, window_bounds = array<i64: 1, 18, 18, 16>}, {pipeline_mode = #tpu.pipeline_mode<synchronous>, transform_indices = @transform_2, window_bounds = array<i64: 9, 16, 16>}, {pipeline_mode = #tpu.pipeline_mode<synchronous>, transform_indices = @transform_3, window_bounds = array<i64: 9, 16, 16>}, {pipeline_mode = #tpu.pipeline_mode<synchronous>, transform_indices = @transform_4, window_bounds = array<i64: 16, 2>}, {transform_indices = @transform_5, window_bounds = array<i64: 1, 16, 256>}]} {
    %cst = arith.constant 0.000000e+00 : f32
    %0 = vector.broadcast %cst : f32 to vector<16x256xf32>
    %c0 = arith.constant 0 : index
    %c0_0 = arith.constant 0 : index
    %c0_1 = arith.constant 0 : index
    %c0_2 = arith.constant 0 : index
    %1 = vector.load %arg1[%c0, %c0_0, %c0_1, %c0_2] : memref<1x18x18x16xf32, #tpu.memory_space<vmem>>, vector<1x16x16x16xf32>
    %2 = vector.shape_cast %1 : vector<1x16x16x16xf32> to vector<16x16x16xf32>
    %3 = vector.shape_cast %2 : vector<16x16x16xf32> to vector<256x16xf32>
    %c0_3 = arith.constant 0 : index
    %c0_4 = arith.constant 0 : index
    %c0_5 = arith.constant 0 : index
    %4 = vector.load %arg3[%c0_3, %c0_4, %c0_5] : memref<9x16x16xf32, #tpu.memory_space<vmem>>, vector<1x16x16xf32>
    %5 = vector.shape_cast %4 : vector<1x16x16xf32> to vector<16x16xf32>
    %cst_6 = arith.constant dense<0.000000e+00> : vector<16x256xf32>
    %6 = tpu.matmul %5, %3, %cst_6 {dimension_numbers = #tpu.dot_dimension_numbers<[0], [1], [1], [0], [0, 1, 1, 0], [], []>} : vector<16x16xf32>, vector<256x16xf32>, vector<16x256xf32> -> vector<16x256xf32>
    %7 = arith.addf %0, %6 : vector<16x256xf32>
    %c0_7 = arith.constant 0 : index
    %c0_8 = arith.constant 0 : index
    %c1 = arith.constant 1 : index
    %c0_9 = arith.constant 0 : index
    %8 = vector.load %arg1[%c0_7, %c0_8, %c1, %c0_9] : memref<1x18x18x16xf32, #tpu.memory_space<vmem>>, vector<1x16x16x16xf32>
    %9 = vector.shape_cast %8 : vector<1x16x16x16xf32> to vector<16x16x16xf32>
    %10 = vector.shape_cast %9 : vector<16x16x16xf32> to vector<256x16xf32>
    %c1_10 = arith.constant 1 : index
    %c0_11 = arith.constant 0 : index
    %c0_12 = arith.constant 0 : index
    %11 = vector.load %arg3[%c1_10, %c0_11, %c0_12] : memref<9x16x16xf32, #tpu.memory_space<vmem>>, vector<1x16x16xf32>
    %12 = vector.shape_cast %11 : vector<1x16x16xf32> to vector<16x16xf32>
    %cst_13 = arith.constant dense<0.000000e+00> : vector<16x256xf32>
    %13 = tpu.matmul %12, %10, %cst_13 {dimension_numbers = #tpu.dot_dimension_numbers<[0], [1], [1], [0], [0, 1, 1, 0], [], []>} : vector<16x16xf32>, vector<256x16xf32>, vector<16x256xf32> -> vector<16x256xf32>
    %14 = arith.addf %7, %13 : vector<16x256xf32>
    %c0_14 = arith.constant 0 : index
    %c0_15 = arith.constant 0 : index
    %c2 = arith.constant 2 : index
    %c0_16 = arith.constant 0 : index
    %15 = vector.load %arg1[%c0_14, %c0_15, %c2, %c0_16] : memref<1x18x18x16xf32, #tpu.memory_space<vmem>>, vector<1x16x16x16xf32>
    %16 = vector.shape_cast %15 : vector<1x16x16x16xf32> to vector<16x16x16xf32>
    %17 = vector.shape_cast %16 : vector<16x16x16xf32> to vector<256x16xf32>
    %c2_17 = arith.constant 2 : index
    %c0_18 = arith.constant 0 : index
    %c0_19 = arith.constant 0 : index
    %18 = vector.load %arg3[%c2_17, %c0_18, %c0_19] : memref<9x16x16xf32, #tpu.memory_space<vmem>>, vector<1x16x16xf32>
    %19 = vector.shape_cast %18 : vector<1x16x16xf32> to vector<16x16xf32>
    %cst_20 = arith.constant dense<0.000000e+00> : vector<16x256xf32>
    %20 = tpu.matmul %19, %17, %cst_20 {dimension_numbers = #tpu.dot_dimension_numbers<[0], [1], [1], [0], [0, 1, 1, 0], [], []>} : vector<16x16xf32>, vector<256x16xf32>, vector<16x256xf32> -> vector<16x256xf32>
    %21 = arith.addf %14, %20 : vector<16x256xf32>
    %c0_21 = arith.constant 0 : index
    %c1_22 = arith.constant 1 : index
    %c0_23 = arith.constant 0 : index
    %c0_24 = arith.constant 0 : index
    %22 = vector.load %arg1[%c0_21, %c1_22, %c0_23, %c0_24] : memref<1x18x18x16xf32, #tpu.memory_space<vmem>>, vector<1x16x16x16xf32>
    %23 = vector.shape_cast %22 : vector<1x16x16x16xf32> to vector<16x16x16xf32>
    %24 = vector.shape_cast %23 : vector<16x16x16xf32> to vector<256x16xf32>
    %c3 = arith.constant 3 : index
    %c0_25 = arith.constant 0 : index
    %c0_26 = arith.constant 0 : index
    %25 = vector.load %arg3[%c3, %c0_25, %c0_26] : memref<9x16x16xf32, #tpu.memory_space<vmem>>, vector<1x16x16xf32>
    %26 = vector.shape_cast %25 : vector<1x16x16xf32> to vector<16x16xf32>
    %cst_27 = arith.constant dense<0.000000e+00> : vector<16x256xf32>
    %27 = tpu.matmul %26, %24, %cst_27 {dimension_numbers = #tpu.dot_dimension_numbers<[0], [1], [1], [0], [0, 1, 1, 0], [], []>} : vector<16x16xf32>, vector<256x16xf32>, vector<16x256xf32> -> vector<16x256xf32>
    %28 = arith.addf %21, %27 : vector<16x256xf32>
    %c0_28 = arith.constant 0 : index
    %c1_29 = arith.constant 1 : index
    %c1_30 = arith.constant 1 : index
    %c0_31 = arith.constant 0 : index
    %29 = vector.load %arg1[%c0_28, %c1_29, %c1_30, %c0_31] : memref<1x18x18x16xf32, #tpu.memory_space<vmem>>, vector<1x16x16x16xf32>
    %30 = vector.shape_cast %29 : vector<1x16x16x16xf32> to vector<16x16x16xf32>
    %31 = vector.shape_cast %30 : vector<16x16x16xf32> to vector<256x16xf32>
    %c4 = arith.constant 4 : index
    %c0_32 = arith.constant 0 : index
    %c0_33 = arith.constant 0 : index
    %32 = vector.load %arg3[%c4, %c0_32, %c0_33] : memref<9x16x16xf32, #tpu.memory_space<vmem>>, vector<1x16x16xf32>
    %33 = vector.shape_cast %32 : vector<1x16x16xf32> to vector<16x16xf32>
    %cst_34 = arith.constant dense<0.000000e+00> : vector<16x256xf32>
    %34 = tpu.matmul %33, %31, %cst_34 {dimension_numbers = #tpu.dot_dimension_numbers<[0], [1], [1], [0], [0, 1, 1, 0], [], []>} : vector<16x16xf32>, vector<256x16xf32>, vector<16x256xf32> -> vector<16x256xf32>
    %35 = arith.addf %28, %34 : vector<16x256xf32>
    %c0_35 = arith.constant 0 : index
    %c1_36 = arith.constant 1 : index
    %c2_37 = arith.constant 2 : index
    %c0_38 = arith.constant 0 : index
    %36 = vector.load %arg1[%c0_35, %c1_36, %c2_37, %c0_38] : memref<1x18x18x16xf32, #tpu.memory_space<vmem>>, vector<1x16x16x16xf32>
    %37 = vector.shape_cast %36 : vector<1x16x16x16xf32> to vector<16x16x16xf32>
    %38 = vector.shape_cast %37 : vector<16x16x16xf32> to vector<256x16xf32>
    %c5 = arith.constant 5 : index
    %c0_39 = arith.constant 0 : index
    %c0_40 = arith.constant 0 : index
    %39 = vector.load %arg3[%c5, %c0_39, %c0_40] : memref<9x16x16xf32, #tpu.memory_space<vmem>>, vector<1x16x16xf32>
    %40 = vector.shape_cast %39 : vector<1x16x16xf32> to vector<16x16xf32>
    %cst_41 = arith.constant dense<0.000000e+00> : vector<16x256xf32>
    %41 = tpu.matmul %40, %38, %cst_41 {dimension_numbers = #tpu.dot_dimension_numbers<[0], [1], [1], [0], [0, 1, 1, 0], [], []>} : vector<16x16xf32>, vector<256x16xf32>, vector<16x256xf32> -> vector<16x256xf32>
    %42 = arith.addf %35, %41 : vector<16x256xf32>
    %c0_42 = arith.constant 0 : index
    %c2_43 = arith.constant 2 : index
    %c0_44 = arith.constant 0 : index
    %c0_45 = arith.constant 0 : index
    %43 = vector.load %arg1[%c0_42, %c2_43, %c0_44, %c0_45] : memref<1x18x18x16xf32, #tpu.memory_space<vmem>>, vector<1x16x16x16xf32>
    %44 = vector.shape_cast %43 : vector<1x16x16x16xf32> to vector<16x16x16xf32>
    %45 = vector.shape_cast %44 : vector<16x16x16xf32> to vector<256x16xf32>
    %c6 = arith.constant 6 : index
    %c0_46 = arith.constant 0 : index
    %c0_47 = arith.constant 0 : index
    %46 = vector.load %arg3[%c6, %c0_46, %c0_47] : memref<9x16x16xf32, #tpu.memory_space<vmem>>, vector<1x16x16xf32>
    %47 = vector.shape_cast %46 : vector<1x16x16xf32> to vector<16x16xf32>
    %cst_48 = arith.constant dense<0.000000e+00> : vector<16x256xf32>
    %48 = tpu.matmul %47, %45, %cst_48 {dimension_numbers = #tpu.dot_dimension_numbers<[0], [1], [1], [0], [0, 1, 1, 0], [], []>} : vector<16x16xf32>, vector<256x16xf32>, vector<16x256xf32> -> vector<16x256xf32>
    %49 = arith.addf %42, %48 : vector<16x256xf32>
    %c0_49 = arith.constant 0 : index
    %c2_50 = arith.constant 2 : index
    %c1_51 = arith.constant 1 : index
    %c0_52 = arith.constant 0 : index
    %50 = vector.load %arg1[%c0_49, %c2_50, %c1_51, %c0_52] : memref<1x18x18x16xf32, #tpu.memory_space<vmem>>, vector<1x16x16x16xf32>
    %51 = vector.shape_cast %50 : vector<1x16x16x16xf32> to vector<16x16x16xf32>
    %52 = vector.shape_cast %51 : vector<16x16x16xf32> to vector<256x16xf32>
    %c7 = arith.constant 7 : index
    %c0_53 = arith.constant 0 : index
    %c0_54 = arith.constant 0 : index
    %53 = vector.load %arg3[%c7, %c0_53, %c0_54] : memref<9x16x16xf32, #tpu.memory_space<vmem>>, vector<1x16x16xf32>
    %54 = vector.shape_cast %53 : vector<1x16x16xf32> to vector<16x16xf32>
    %cst_55 = arith.constant dense<0.000000e+00> : vector<16x256xf32>
    %55 = tpu.matmul %54, %52, %cst_55 {dimension_numbers = #tpu.dot_dimension_numbers<[0], [1], [1], [0], [0, 1, 1, 0], [], []>} : vector<16x16xf32>, vector<256x16xf32>, vector<16x256xf32> -> vector<16x256xf32>
    %56 = arith.addf %49, %55 : vector<16x256xf32>
    %c0_56 = arith.constant 0 : index
    %c2_57 = arith.constant 2 : index
    %c2_58 = arith.constant 2 : index
    %c0_59 = arith.constant 0 : index
    %57 = vector.load %arg1[%c0_56, %c2_57, %c2_58, %c0_59] : memref<1x18x18x16xf32, #tpu.memory_space<vmem>>, vector<1x16x16x16xf32>
    %58 = vector.shape_cast %57 : vector<1x16x16x16xf32> to vector<16x16x16xf32>
    %59 = vector.shape_cast %58 : vector<16x16x16xf32> to vector<256x16xf32>
    %c8 = arith.constant 8 : index
    %c0_60 = arith.constant 0 : index
    %c0_61 = arith.constant 0 : index
    %60 = vector.load %arg3[%c8, %c0_60, %c0_61] : memref<9x16x16xf32, #tpu.memory_space<vmem>>, vector<1x16x16xf32>
    %61 = vector.shape_cast %60 : vector<1x16x16xf32> to vector<16x16xf32>
    %cst_62 = arith.constant dense<0.000000e+00> : vector<16x256xf32>
    %62 = tpu.matmul %61, %59, %cst_62 {dimension_numbers = #tpu.dot_dimension_numbers<[0], [1], [1], [0], [0, 1, 1, 0], [], []>} : vector<16x16xf32>, vector<256x16xf32>, vector<16x256xf32> -> vector<16x256xf32>
    %63 = arith.addf %56, %62 : vector<16x256xf32>
    %c0_63 = arith.constant 0 : index
    %c0_64 = arith.constant 0 : index
    %c0_65 = arith.constant 0 : index
    %c0_66 = arith.constant 0 : index
    %64 = vector.load %arg2[%c0_63, %c0_64, %c0_65, %c0_66] : memref<1x18x18x16xf32, #tpu.memory_space<vmem>>, vector<1x16x16x16xf32>
    %65 = vector.shape_cast %64 : vector<1x16x16x16xf32> to vector<16x16x16xf32>
    %66 = vector.shape_cast %65 : vector<16x16x16xf32> to vector<256x16xf32>
    %c0_67 = arith.constant 0 : index
    %c0_68 = arith.constant 0 : index
    %c0_69 = arith.constant 0 : index
    %67 = vector.load %arg4[%c0_67, %c0_68, %c0_69] : memref<9x16x16xf32, #tpu.memory_space<vmem>>, vector<1x16x16xf32>
    %68 = vector.shape_cast %67 : vector<1x16x16xf32> to vector<16x16xf32>
    %cst_70 = arith.constant dense<0.000000e+00> : vector<16x256xf32>
    %69 = tpu.matmul %68, %66, %cst_70 {dimension_numbers = #tpu.dot_dimension_numbers<[0], [1], [1], [0], [0, 1, 1, 0], [], []>} : vector<16x16xf32>, vector<256x16xf32>, vector<16x256xf32> -> vector<16x256xf32>
    %70 = arith.addf %63, %69 : vector<16x256xf32>
    %c0_71 = arith.constant 0 : index
    %c0_72 = arith.constant 0 : index
    %c1_73 = arith.constant 1 : index
    %c0_74 = arith.constant 0 : index
    %71 = vector.load %arg2[%c0_71, %c0_72, %c1_73, %c0_74] : memref<1x18x18x16xf32, #tpu.memory_space<vmem>>, vector<1x16x16x16xf32>
    %72 = vector.shape_cast %71 : vector<1x16x16x16xf32> to vector<16x16x16xf32>
    %73 = vector.shape_cast %72 : vector<16x16x16xf32> to vector<256x16xf32>
    %c1_75 = arith.constant 1 : index
    %c0_76 = arith.constant 0 : index
    %c0_77 = arith.constant 0 : index
    %74 = vector.load %arg4[%c1_75, %c0_76, %c0_77] : memref<9x16x16xf32, #tpu.memory_space<vmem>>, vector<1x16x16xf32>
    %75 = vector.shape_cast %74 : vector<1x16x16xf32> to vector<16x16xf32>
    %cst_78 = arith.constant dense<0.000000e+00> : vector<16x256xf32>
    %76 = tpu.matmul %75, %73, %cst_78 {dimension_numbers = #tpu.dot_dimension_numbers<[0], [1], [1], [0], [0, 1, 1, 0], [], []>} : vector<16x16xf32>, vector<256x16xf32>, vector<16x256xf32> -> vector<16x256xf32>
    %77 = arith.addf %70, %76 : vector<16x256xf32>
    %c0_79 = arith.constant 0 : index
    %c0_80 = arith.constant 0 : index
    %c2_81 = arith.constant 2 : index
    %c0_82 = arith.constant 0 : index
    %78 = vector.load %arg2[%c0_79, %c0_80, %c2_81, %c0_82] : memref<1x18x18x16xf32, #tpu.memory_space<vmem>>, vector<1x16x16x16xf32>
    %79 = vector.shape_cast %78 : vector<1x16x16x16xf32> to vector<16x16x16xf32>
    %80 = vector.shape_cast %79 : vector<16x16x16xf32> to vector<256x16xf32>
    %c2_83 = arith.constant 2 : index
    %c0_84 = arith.constant 0 : index
    %c0_85 = arith.constant 0 : index
    %81 = vector.load %arg4[%c2_83, %c0_84, %c0_85] : memref<9x16x16xf32, #tpu.memory_space<vmem>>, vector<1x16x16xf32>
    %82 = vector.shape_cast %81 : vector<1x16x16xf32> to vector<16x16xf32>
    %cst_86 = arith.constant dense<0.000000e+00> : vector<16x256xf32>
    %83 = tpu.matmul %82, %80, %cst_86 {dimension_numbers = #tpu.dot_dimension_numbers<[0], [1], [1], [0], [0, 1, 1, 0], [], []>} : vector<16x16xf32>, vector<256x16xf32>, vector<16x256xf32> -> vector<16x256xf32>
    %84 = arith.addf %77, %83 : vector<16x256xf32>
    %c0_87 = arith.constant 0 : index
    %c1_88 = arith.constant 1 : index
    %c0_89 = arith.constant 0 : index
    %c0_90 = arith.constant 0 : index
    %85 = vector.load %arg2[%c0_87, %c1_88, %c0_89, %c0_90] : memref<1x18x18x16xf32, #tpu.memory_space<vmem>>, vector<1x16x16x16xf32>
    %86 = vector.shape_cast %85 : vector<1x16x16x16xf32> to vector<16x16x16xf32>
    %87 = vector.shape_cast %86 : vector<16x16x16xf32> to vector<256x16xf32>
    %c3_91 = arith.constant 3 : index
    %c0_92 = arith.constant 0 : index
    %c0_93 = arith.constant 0 : index
    %88 = vector.load %arg4[%c3_91, %c0_92, %c0_93] : memref<9x16x16xf32, #tpu.memory_space<vmem>>, vector<1x16x16xf32>
    %89 = vector.shape_cast %88 : vector<1x16x16xf32> to vector<16x16xf32>
    %cst_94 = arith.constant dense<0.000000e+00> : vector<16x256xf32>
    %90 = tpu.matmul %89, %87, %cst_94 {dimension_numbers = #tpu.dot_dimension_numbers<[0], [1], [1], [0], [0, 1, 1, 0], [], []>} : vector<16x16xf32>, vector<256x16xf32>, vector<16x256xf32> -> vector<16x256xf32>
    %91 = arith.addf %84, %90 : vector<16x256xf32>
    %c0_95 = arith.constant 0 : index
    %c1_96 = arith.constant 1 : index
    %c1_97 = arith.constant 1 : index
    %c0_98 = arith.constant 0 : index
    %92 = vector.load %arg2[%c0_95, %c1_96, %c1_97, %c0_98] : memref<1x18x18x16xf32, #tpu.memory_space<vmem>>, vector<1x16x16x16xf32>
    %93 = vector.shape_cast %92 : vector<1x16x16x16xf32> to vector<16x16x16xf32>
    %94 = vector.shape_cast %93 : vector<16x16x16xf32> to vector<256x16xf32>
    %c4_99 = arith.constant 4 : index
    %c0_100 = arith.constant 0 : index
    %c0_101 = arith.constant 0 : index
    %95 = vector.load %arg4[%c4_99, %c0_100, %c0_101] : memref<9x16x16xf32, #tpu.memory_space<vmem>>, vector<1x16x16xf32>
    %96 = vector.shape_cast %95 : vector<1x16x16xf32> to vector<16x16xf32>
    %cst_102 = arith.constant dense<0.000000e+00> : vector<16x256xf32>
    %97 = tpu.matmul %96, %94, %cst_102 {dimension_numbers = #tpu.dot_dimension_numbers<[0], [1], [1], [0], [0, 1, 1, 0], [], []>} : vector<16x16xf32>, vector<256x16xf32>, vector<16x256xf32> -> vector<16x256xf32>
    %98 = arith.addf %91, %97 : vector<16x256xf32>
    %c0_103 = arith.constant 0 : index
    %c1_104 = arith.constant 1 : index
    %c2_105 = arith.constant 2 : index
    %c0_106 = arith.constant 0 : index
    %99 = vector.load %arg2[%c0_103, %c1_104, %c2_105, %c0_106] : memref<1x18x18x16xf32, #tpu.memory_space<vmem>>, vector<1x16x16x16xf32>
    %100 = vector.shape_cast %99 : vector<1x16x16x16xf32> to vector<16x16x16xf32>
    %101 = vector.shape_cast %100 : vector<16x16x16xf32> to vector<256x16xf32>
    %c5_107 = arith.constant 5 : index
    %c0_108 = arith.constant 0 : index
    %c0_109 = arith.constant 0 : index
    %102 = vector.load %arg4[%c5_107, %c0_108, %c0_109] : memref<9x16x16xf32, #tpu.memory_space<vmem>>, vector<1x16x16xf32>
    %103 = vector.shape_cast %102 : vector<1x16x16xf32> to vector<16x16xf32>
    %cst_110 = arith.constant dense<0.000000e+00> : vector<16x256xf32>
    %104 = tpu.matmul %103, %101, %cst_110 {dimension_numbers = #tpu.dot_dimension_numbers<[0], [1], [1], [0], [0, 1, 1, 0], [], []>} : vector<16x16xf32>, vector<256x16xf32>, vector<16x256xf32> -> vector<16x256xf32>
    %105 = arith.addf %98, %104 : vector<16x256xf32>
    %c0_111 = arith.constant 0 : index
    %c2_112 = arith.constant 2 : index
    %c0_113 = arith.constant 0 : index
    %c0_114 = arith.constant 0 : index
    %106 = vector.load %arg2[%c0_111, %c2_112, %c0_113, %c0_114] : memref<1x18x18x16xf32, #tpu.memory_space<vmem>>, vector<1x16x16x16xf32>
    %107 = vector.shape_cast %106 : vector<1x16x16x16xf32> to vector<16x16x16xf32>
    %108 = vector.shape_cast %107 : vector<16x16x16xf32> to vector<256x16xf32>
    %c6_115 = arith.constant 6 : index
    %c0_116 = arith.constant 0 : index
    %c0_117 = arith.constant 0 : index
    %109 = vector.load %arg4[%c6_115, %c0_116, %c0_117] : memref<9x16x16xf32, #tpu.memory_space<vmem>>, vector<1x16x16xf32>
    %110 = vector.shape_cast %109 : vector<1x16x16xf32> to vector<16x16xf32>
    %cst_118 = arith.constant dense<0.000000e+00> : vector<16x256xf32>
    %111 = tpu.matmul %110, %108, %cst_118 {dimension_numbers = #tpu.dot_dimension_numbers<[0], [1], [1], [0], [0, 1, 1, 0], [], []>} : vector<16x16xf32>, vector<256x16xf32>, vector<16x256xf32> -> vector<16x256xf32>
    %112 = arith.addf %105, %111 : vector<16x256xf32>
    %c0_119 = arith.constant 0 : index
    %c2_120 = arith.constant 2 : index
    %c1_121 = arith.constant 1 : index
    %c0_122 = arith.constant 0 : index
    %113 = vector.load %arg2[%c0_119, %c2_120, %c1_121, %c0_122] : memref<1x18x18x16xf32, #tpu.memory_space<vmem>>, vector<1x16x16x16xf32>
    %114 = vector.shape_cast %113 : vector<1x16x16x16xf32> to vector<16x16x16xf32>
    %115 = vector.shape_cast %114 : vector<16x16x16xf32> to vector<256x16xf32>
    %c7_123 = arith.constant 7 : index
    %c0_124 = arith.constant 0 : index
    %c0_125 = arith.constant 0 : index
    %116 = vector.load %arg4[%c7_123, %c0_124, %c0_125] : memref<9x16x16xf32, #tpu.memory_space<vmem>>, vector<1x16x16xf32>
    %117 = vector.shape_cast %116 : vector<1x16x16xf32> to vector<16x16xf32>
    %cst_126 = arith.constant dense<0.000000e+00> : vector<16x256xf32>
    %118 = tpu.matmul %117, %115, %cst_126 {dimension_numbers = #tpu.dot_dimension_numbers<[0], [1], [1], [0], [0, 1, 1, 0], [], []>} : vector<16x16xf32>, vector<256x16xf32>, vector<16x256xf32> -> vector<16x256xf32>
    %119 = arith.addf %112, %118 : vector<16x256xf32>
    %c0_127 = arith.constant 0 : index
    %c2_128 = arith.constant 2 : index
    %c2_129 = arith.constant 2 : index
    %c0_130 = arith.constant 0 : index
    %120 = vector.load %arg2[%c0_127, %c2_128, %c2_129, %c0_130] : memref<1x18x18x16xf32, #tpu.memory_space<vmem>>, vector<1x16x16x16xf32>
    %121 = vector.shape_cast %120 : vector<1x16x16x16xf32> to vector<16x16x16xf32>
    %122 = vector.shape_cast %121 : vector<16x16x16xf32> to vector<256x16xf32>
    %c8_131 = arith.constant 8 : index
    %c0_132 = arith.constant 0 : index
    %c0_133 = arith.constant 0 : index
    %123 = vector.load %arg4[%c8_131, %c0_132, %c0_133] : memref<9x16x16xf32, #tpu.memory_space<vmem>>, vector<1x16x16xf32>
    %124 = vector.shape_cast %123 : vector<1x16x16xf32> to vector<16x16xf32>
    %cst_134 = arith.constant dense<0.000000e+00> : vector<16x256xf32>
    %125 = tpu.matmul %124, %122, %cst_134 {dimension_numbers = #tpu.dot_dimension_numbers<[0], [1], [1], [0], [0, 1, 1, 0], [], []>} : vector<16x16xf32>, vector<256x16xf32>, vector<16x256xf32> -> vector<16x256xf32>
    %126 = arith.addf %119, %125 : vector<16x256xf32>
    %c0_135 = arith.constant 0 : index
    %c0_136 = arith.constant 0 : index
    %127 = vector.load %arg5[%c0_135, %c0_136] : memref<16x2xf32, #tpu.memory_space<vmem>>, vector<16x1xf32>
    %128 = vector.broadcast %127 : vector<16x1xf32> to vector<16x256xf32>
    %129 = arith.mulf %126, %128 : vector<16x256xf32>
    %c0_137 = arith.constant 0 : index
    %c1_138 = arith.constant 1 : index
    %130 = vector.load %arg5[%c0_137, %c1_138] : memref<16x2xf32, #tpu.memory_space<vmem>>, vector<16x1xf32>
    %131 = vector.broadcast %130 : vector<16x1xf32> to vector<16x256xf32>
    %132 = arith.addf %129, %131 : vector<16x256xf32>
    %cst_139 = arith.constant 0.000000e+00 : f32
    %133 = vector.broadcast %cst_139 : f32 to vector<16x256xf32>
    %134 = arith.maximumf %132, %133 : vector<16x256xf32>
    %c0_140 = arith.constant 0 : index
    %c0_141 = arith.constant 0 : index
    %c0_142 = arith.constant 0 : index
    %135 = vector.load %arg6[%c0_140, %c0_141, %c0_142] : memref<1x16x256xf32, #tpu.memory_space<vmem>>, vector<1x16x256xf32>
    %136 = vector.shape_cast %135 : vector<1x16x256xf32> to vector<16x256xf32>
    %137 = vector.shape_cast %134 : vector<16x256xf32> to vector<1x16x256xf32>
    tpu.vector_store %arg6[%c0_140, %c0_141, %c0_142], %137 {strides = array<i32>} : memref<1x16x256xf32, #tpu.memory_space<vmem>>, vector<1x16x256xf32>,
    return
  }
  func.func @transform_0(%arg0: i32) -> (i32, i32, i32, i32) {
    %c0_i32 = arith.constant 0 : i32
    %c0_i32_0 = arith.constant 0 : i32
    %c0_i32_1 = arith.constant 0 : i32
    %c0_i32_2 = arith.constant 0 : i32
    return %arg0, %c0_i32, %c0_i32_0, %c0_i32_1 : i32, i32, i32, i32
  }
  func.func @transform_1(%arg0: i32) -> (i32, i32, i32, i32) {
    %c0_i32 = arith.constant 0 : i32
    %c0_i32_0 = arith.constant 0 : i32
    %c0_i32_1 = arith.constant 0 : i32
    %c0_i32_2 = arith.constant 0 : i32
    return %arg0, %c0_i32, %c0_i32_0, %c0_i32_1 : i32, i32, i32, i32
  }
  func.func @transform_2(%arg0: i32) -> (i32, i32, i32) {
    %c0_i32 = arith.constant 0 : i32
    %c0_i32_0 = arith.constant 0 : i32
    %c0_i32_1 = arith.constant 0 : i32
    %c0_i32_2 = arith.constant 0 : i32
    return %c0_i32, %c0_i32_0, %c0_i32_1 : i32, i32, i32
  }
  func.func @transform_3(%arg0: i32) -> (i32, i32, i32) {
    %c0_i32 = arith.constant 0 : i32
    %c0_i32_0 = arith.constant 0 : i32
    %c0_i32_1 = arith.constant 0 : i32
    %c0_i32_2 = arith.constant 0 : i32
    return %c0_i32, %c0_i32_0, %c0_i32_1 : i32, i32, i32
  }
  func.func @transform_4(%arg0: i32) -> (i32, i32) {
    %c0_i32 = arith.constant 0 : i32
    %c0_i32_0 = arith.constant 0 : i32
    %c0_i32_1 = arith.constant 0 : i32
    return %c0_i32, %c0_i32_0 : i32, i32
  }
  func.func @transform_5(%arg0: i32) -> (i32, i32, i32) {
    %c0_i32 = arith.constant 0 : i32
    %c0_i32_0 = arith.constant 0 : i32
    %c0_i32_1 = arith.constant 0 : i32
    return %arg0, %c0_i32, %c0_i32_0 : i32, i32, i32
  }
}

</mosaic_0001>

<bundles_post_ra>
// kernel: up_forward.4
= control target key start
LH: loop header
LB: loop body
LE: loop exit
PB: predicated region body
PF: predicated region fallthrough
CT: control target
= control target key end

     0   :  { %vm15_vm0 = vcmask 64512   ;;  %s121_s1 = inlined_call_operand.vmem [shape: f32[8,256], index: 1, kind: input, shape index: {}]   ;;  %s122_s0 = inlined_call_operand.vmem [shape: f32[16,8], index: 0, kind: input, shape index: {}]   ;;  %s123_s2 = inlined_call_operand.vmem [shape: f32[16,256], index: 2, kind: output, shape index: {}]  }
   0x1   :  { %v13_v0 = vld [vmem:[%s121_s1] sm:$0xff]  ;;  %v14_v1 = vld [vmem:[%s121_s1 + $0x8] sm:$0xff] }
   0x2   :  { %v12_v2 = vld [vmem:[%s122_s0 + $0x8] sm:$0xff]  ;;  %80 = vmatpush.msra.mxu2 %v13_v0  ;;  %81 = vmatpush.msra.mxu3 %v14_v1  ;;  %v11_v3 = vld [vmem:[%s122_s0] sm:$0xff] }
   0x3   :  { %77 = vmatmul.msk.f32.vlgmr.msra.gmra.mxu2 %vm15_vm0, %v12_v2  ;;  %79 = vmatmul.msk.f32.vlgmr.msra.gmra.mxu3 %vm15_vm0, %v12_v2 }
   0x4   :  { %37 = vmatpush.msra.mxu0 %v13_v0  ;;  %60 = vmatpush.msra.mxu1 %v14_v1 }
   0x5   :  { %76 = vmatmul.msk.f32.vlgmr.msra.gmra.mxu0 %vm15_vm0, %v11_v3  ;;  %78 = vmatmul.msk.f32.vlgmr.msra.gmra.mxu1 %vm15_vm0, %v11_v3 }
  0x82   :  { %v39_v4 = vpop.f32.mrf.mxu0  ;;  %v62_v5 = vpop.f32.mrf.mxu1 }
  0x83   :  { %68 = vst [vmem:[%s123_s2] sm:$0xff] %v39_v4 }
  0x84   :  { %69 = vst [vmem:[%s123_s2 + $0x8] sm:$0xff] %v62_v5 }
  0x86   :  { %v42_v6 = vpop.f32.mrf.mxu2  ;;  %v65_v7 = vpop.f32.mrf.mxu3 }
  0x87   :  { %70 = vst [vmem:[%s123_s2 + $0x10] sm:$0xff] %v42_v6 }
  0x88   :  { %71 = vst [vmem:[%s123_s2 + $0x18] sm:$0xff] %v65_v7 }

// kernel: up_forward.5
= control target key start
LH: loop header
LB: loop body
LE: loop exit
PB: predicated region body
PF: predicated region fallthrough
CT: control target
= control target key end

     0   :  { %vm17_vm0 = vcmask 64512   ;;  %s201_s1 = inlined_call_operand.vmem [shape: f32[8,512], index: 1, kind: input, shape index: {}]   ;;  %s202_s0 = inlined_call_operand.vmem [shape: f32[16,8], index: 0, kind: input, shape index: {}]   ;;  %s203_s2 = inlined_call_operand.vmem [shape: f32[16,512], index: 2, kind: output, shape index: {}]  }
   0x1   :  { %v15_v0 = vld [vmem:[%s201_s1 + $0x10] sm:$0xff]  ;;  %v16_v1 = vld [vmem:[%s201_s1 + $0x18] sm:$0xff]  ;;  %v11_v2 = vld [vmem:[%s202_s0] sm:$0xff] }
   0x2   :  { %85 = vmatpush.msra.mxu2 %v15_v0  ;;  %108 = vmatpush.msra.mxu3 %v16_v1  ;;  %v13_v3 = vld [vmem:[%s201_s1] sm:$0xff]  ;;  %v14_v4 = vld [vmem:[%s201_s1 + $0x8] sm:$0xff] }
   0x3   :  { %132 = vmatmul.msk.f32.vlgmr.msra.gmra.mxu2 %vm17_vm0, %v11_v2  ;;  %134 = vmatmul.msk.f32.vlgmr.msra.gmra.mxu3 %vm17_vm0, %v11_v2  ;;  %v12_v5 = vld [vmem:[%s202_s0 + $0x8] sm:$0xff] }
   0x4   :  { %39 = vmatpush.msra.mxu0 %v13_v3  ;;  %62 = vmatpush.msra.mxu1 %v14_v4 }
   0x5   :  { %128 = vmatmul.msk.f32.vlgmr.msra.gmra.mxu0 %vm17_vm0, %v11_v2  ;;  %130 = vmatmul.msk.f32.vlgmr.msra.gmra.mxu1 %vm17_vm0, %v11_v2 }
   0xb   :  { %133 = vmatmul.msk.f32.gmra.mxu2 %vm17_vm0, %v12_v5  ;;  %135 = vmatmul.msk.f32.gmra.mxu3 %vm17_vm0, %v12_v5 }
   0xd   :  { %129 = vmatmul.msk.f32.gmra.mxu0 %vm17_vm0, %v12_v5  ;;  %131 = vmatmul.msk.f32.gmra.mxu1 %vm17_vm0, %v12_v5 }
  0x82   :  { %v41_v6 = vpop.f32.mrf.mxu0  ;;  %v64_v7 = vpop.f32.mrf.mxu1 }
  0x83   :  { %116 = vst [vmem:[%s203_s2] sm:$0xff] %v41_v6 }
  0x84   :  { %117 = vst [vmem:[%s203_s2 + $0x8] sm:$0xff] %v64_v7 }
  0x86   :  { %v87_v8 = vpop.f32.mrf.mxu2  ;;  %v110_v9 = vpop.f32.mrf.mxu3 }
  0x87   :  { %118 = vst [vmem:[%s203_s2 + $0x10] sm:$0xff] %v87_v8 }
  0x88   :  { %119 = vst [vmem:[%s203_s2 + $0x18] sm:$0xff] %v110_v9 }
  0x8a   :  { %v44_v10 = vpop.f32.mrf.mxu0  ;;  %v67_v11 = vpop.f32.mrf.mxu1 }
  0x8b   :  { %120 = vst [vmem:[%s203_s2 + $0x20] sm:$0xff] %v44_v10 }
  0x8c   :  { %121 = vst [vmem:[%s203_s2 + $0x28] sm:$0xff] %v67_v11 }
  0x8e   :  { %v90_v12 = vpop.f32.mrf.mxu2  ;;  %v113_v13 = vpop.f32.mrf.mxu3 }
  0x8f   :  { %122 = vst [vmem:[%s203_s2 + $0x30] sm:$0xff] %v90_v12 }
  0x90   :  { %123 = vst [vmem:[%s203_s2 + $0x38] sm:$0xff] %v113_v13 }

// kernel: up_forward.7
= control target key start
LH: loop header
LB: loop body
LE: loop exit
PB: predicated region body
PF: predicated region fallthrough
CT: control target
= control target key end

     0   :  { %s2849_s12 = smov 0   ;;  %s3894_s0 = inlined_call_operand.vmem [shape: f32[2,18,18,16], index: 0, kind: input, shape index: {}]   ;;  %s3895_s1 = inlined_call_operand.vmem [shape: f32[9,16,16], index: 1, kind: input, shape index: {}]   ;;  %s3896_s2 = inlined_call_operand.vmem [shape: f32[16,2], index: 2, kind: input, shape index: {}]   ;;  %s3897_s3 = inlined_call_operand.vmem [shape: f32[2,16,256], index: 3, kind: output, shape index: {}]  }
   0x1 LB: > { %s2227_s13 = sadd.s32 4294967295, %s2825_s12   ;;  %p2231_p0 = scmp.ge.s32.totalorder %s2825_s12, 1  ;;  %s2825_s12 = sphi %s2849_s12, %s13_s12  }
   0x2   : > { %p137_p1 = scmp.lt.s32.totalorder %s2825_s12, 3 }
   0x4   : > { %p138_p2 = pnand %p2231_p0, %p137_p1 }
   0x6   : > { %141 = sbr.rel (%p138_p2) target bundleno = 513 (0x201), region = 32 }
   0xb   : > { %v2235_v0 = vld [vmem:[%s3895_s1 + $0x10] sm:$0xff]  ;;  %v203_v1 = vld [vmem:[%s3895_s1] sm:$0xff]  ;;  %p161_p3 = scmp.lt.s32.totalorder %s2227_s13, 1  ;;  %vm272_vm0 = vcmask 130048   ;;  %v2236_v3 = vld [vmem:[%s3895_s1 + $0x18] sm:$0xff] }
   0xc   : > { %240 = vxpose.xlu1.b32.start [1/2] (short) (narrow) %v2235_v0, 16  ;;  %421 = vxpose.xlu0.b32.start [1/2] (short) (narrow) %v203_v1, 16  ;;  %v2379_v2 = vld [vmem:[%s3895_s1 + $0x30] sm:$0xff]  ;;  %v204_v4 = vld [vmem:[%s3895_s1 + $0x8] sm:$0xff]  ;;  %v2380_v8 = vld [vmem:[%s3895_s1 + $0x38] sm:$0xff] }
   0xd   : > { %s4017_s13 = smov (!%p161_p3, %s2227_s13), 1  ;;  %856 = vxpose.xlu2.b32.start [1/2] (short) (narrow) %v2379_v2, 16  ;;  %v2309_v16 = vld [vmem:[%s3895_s1 + $0x20] sm:$0xff]  ;;  %v2519_v17 = vld [vmem:[%s3895_s1 + $0x50] sm:$0xff]  ;;  %v2310_v27 = vld [vmem:[%s3895_s1 + $0x28] sm:$0xff] }
   0xe   : > { %s2802_s20 = smul.u32 432, %s4017_s13  ;;  %v2449_v20 = vld [vmem:[%s3895_s1 + $0x40] sm:$0xff]  ;;  %v2520_v28 = vld [vmem:[%s3895_s1 + $0x58] sm:$0xff]  ;;  %v2450_v31 = vld [vmem:[%s3895_s1 + $0x48] sm:$0xff]  ;;  %s2769_s6 = sshll.u32 %s4017_s13, 5 }
   0xf   : > { %v2589_v0 = vld [vmem:[%s3895_s1 + $0x60] sm:$0xff]  ;;  %v2659_v1 = vld [vmem:[%s3895_s1 + $0x70] sm:$0xff]  ;;  %s170_s9 = scalar_lea.vmem %s3897_s3, %s2769_s6 }
  0x10   : > { %s2878_s27 = scalar_lea.vmem %s3894_s0, %s2802_s20 }
  0x11   : > { %v2881_v5 = vld [vmem:[%s2878_s27 + $0xb1] sm:$0xff]  ;;  %v2900_v10 = vld [vmem:[%s2878_s27 + $0xa9] sm:$0xff]  ;;  %v2920_v14 = vld [vmem:[%s2878_s27 + $0x99] sm:$0xff] }
  0x12   : > { %v2884_v6 = vld [vmem:[%s2878_s27 + $0x171] sm:$0xff]  ;;  %2237 = vmatpush.xpose.msk.msra.mxu0 %vm272_vm0, %v2881_v5  ;;  %v2903_v11 = vld [vmem:[%s2878_s27 + $0x169] sm:$0xff]  ;;  %v2923_v15 = vld [vmem:[%s2878_s27 + $0x159] sm:$0xff] }
  0x13   : > { %v2887_v7 = vld [vmem:[%s2878_s27 + $0xb0] sm:$0xff]  ;;  %2255 = vmatpush.xpose.msk.msra.mxu1 %vm272_vm0, %v2884_v6  ;;  %v2910_v12 = vld [vmem:[%s2878_s27 + $0xa8] sm:$0xff]  ;;  %v2936_v18 = vld [vmem:[%s2878_s27 + $0x98] sm:$0xff] }
  0x14   : > { %3942 = vst [vmem:[#allocation2_spill] sm:$0xff] %v2887_v7  ;;  %v2897_v9 = vld [vmem:[%s2878_s27 + $0x170] sm:$0xff]  ;;  %241 = vxpose.xlu1.b32.end [2/2] (short) (narrow) %v2236_v3, 16  ;;  %422 = vxpose.xlu0.b32.end [2/2] (short) (narrow) %v204_v4, 16  ;;  %v2913_v13 = vld [vmem:[%s2878_s27 + $0x168] sm:$0xff]  ;;  %v2939_v19 = vld [vmem:[%s2878_s27 + $0x158] sm:$0xff] }
  0x15   : > { %3943 = vst [vmem:[#allocation3_spill] sm:$0xff] %v2897_v9  ;;  %2273 = vmatpush.xpose.msk.msra.mxu2 %vm272_vm0, %v2887_v7  ;;  %2291 = vmatpush.xpose.msk.msra.mxu3 %vm272_vm0, %v2897_v9  ;;  %v2949_v21 = vld [vmem:[%s2878_s27 + $0x91] sm:$0xff]  ;;  %v2969_v25 = vld [vmem:[%s2878_s27 + $0x81] sm:$0xff]  ;;  %v2998_v32 = vld [vmem:[%s2878_s27 + $0x79] sm:$0xff] }
  0x16   : > { %857 = vxpose.xlu2.b32.end [2/2] (short) (narrow) %v2380_v8, 16  ;;  %3944 = vst [vmem:[#allocation4_spill] sm:$0xff] %v2910_v12  ;;  %2238 = vmatpush.xpose.msk.msra.mxu0 %vm272_vm0, %v2900_v10  ;;  %v2952_v22 = vld [vmem:[%s2878_s27 + $0x151] sm:$0xff]  ;;  %v2972_v26 = vld [vmem:[%s2878_s27 + $0x141] sm:$0xff]  ;;  %v3001_v33 = vld [vmem:[%s2878_s27 + $0x139] sm:$0xff] }
  0x17   : > { %3945 = vst [vmem:[#allocation5_spill] sm:$0xff] %v2913_v13  ;;  %2256 = vmatpush.xpose.msk.msra.mxu1 %vm272_vm0, %v2903_v11  ;;  %v2959_v23 = vld [vmem:[%s2878_s27 + $0x90] sm:$0xff]  ;;  %v2985_v29 = vld [vmem:[%s2878_s27 + $0x80] sm:$0xff]  ;;  %v3008_v34 = vld [vmem:[%s2878_s27 + $0x78] sm:$0xff] }
  0x18   : > { %3946 = vst [vmem:[#allocation6_spill] sm:$0xff] %v2936_v18  ;;  %v2962_v24 = vld [vmem:[%s2878_s27 + $0x150] sm:$0xff]  ;;  %v2988_v30 = vld [vmem:[%s2878_s27 + $0x140] sm:$0xff]  ;;  %v3011_v35 = vld [vmem:[%s2878_s27 + $0x138] sm:$0xff] }
  0x19   : > { %2274 = vmatpush.xpose.msk.msra.mxu2 %vm272_vm0, %v2910_v12  ;;  %2292 = vmatpush.xpose.msk.msra.mxu3 %vm272_vm0, %v2913_v13  ;;  %3947 = vst [vmem:[#allocation7_spill] sm:$0xff] %v2939_v19  ;;  %v3018_v36 = vld [vmem:[%s2878_s27 + $0x69] sm:$0xff]  ;;  %v3038_v40 = vld [vmem:[%s2878_s27 + $0x61] sm:$0xff]  ;;  %v3058_v44 = vld [vmem:[%s2878_s27 + $0x51] sm:$0xff] }
  0x1a   : > { %2239 = vmatpush.xpose.msk.msra.mxu0 %vm272_vm0, %v2920_v14  ;;  %3948 = vst [vmem:[#allocation8_spill] sm:$0xff] %v2959_v23  ;;  %v3021_v37 = vld [vmem:[%s2878_s27 + $0x129] sm:$0xff]  ;;  %v3041_v41 = vld [vmem:[%s2878_s27 + $0x121] sm:$0xff]  ;;  %v3061_v45 = vld [vmem:[%s2878_s27 + $0x111] sm:$0xff] }
  0x1b   : > { %2257 = vmatpush.xpose.msk.msra.mxu1 %vm272_vm0, %v2923_v15  ;;  %3949 = vst [vmem:[#allocation9_spill] sm:$0xff] %v2962_v24  ;;  %v3028_v38 = vld [vmem:[%s2878_s27 + $0x68] sm:$0xff]  ;;  %v3048_v42 = vld [vmem:[%s2878_s27 + $0x60] sm:$0xff]  ;;  %v3068_v46 = vld [vmem:[%s2878_s27 + $0x50] sm:$0xff] }
  0x1c   : > { %636 = vxpose.xlu0.b32.start [1/2] (short) (narrow) %v2309_v16, 16  ;;  %1294 = vxpose.xlu1.b32.start [1/2] (short) (narrow) %v2519_v17, 16  ;;  %3950 = vst [vmem:[#allocation10_spill] sm:$0xff] %v2985_v29  ;;  %v3031_v39 = vld [vmem:[%s2878_s27 + $0x128] sm:$0xff]  ;;  %v3051_v43 = vld [vmem:[%s2878_s27 + $0x120] sm:$0xff]  ;;  %v3071_v47 = vld [vmem:[%s2878_s27 + $0x110] sm:$0xff] }
  0x1d   : > { %2275 = vmatpush.xpose.msk.msra.mxu2 %vm272_vm0, %v2936_v18  ;;  %2293 = vmatpush.xpose.msk.msra.mxu3 %vm272_vm0, %v2939_v19  ;;  %3951 = vst [vmem:[#allocation11_spill] sm:$0xff] %v2988_v30  ;;  %v3078_v48 = vld [vmem:[%s2878_s27 + $0x49] sm:$0xff]  ;;  %v3098_v52 = vld [vmem:[%s2878_s27 + $0x39] sm:$0xff]  ;;  %v3118_v56 = vld [vmem:[%s2878_s27 + $0x31] sm:$0xff] }
  0x1e   : > { %1075 = vxpose.xlu2.b32.start [1/2] (short) (narrow) %v2449_v20, 16  ;;  %2240 = vmatpush.xpose.msk.msra.mxu0 %vm272_vm0, %v2949_v21  ;;  %3952 = vst [vmem:[#allocation12_spill] sm:$0xff] %v3008_v34  ;;  %v3081_v49 = vld [vmem:[%s2878_s27 + $0x109] sm:$0xff]  ;;  %v3101_v53 = vld [vmem:[%s2878_s27 + $0xf9] sm:$0xff]  ;;  %v3121_v57 = vld [vmem:[%s2878_s27 + $0xf1] sm:$0xff] }
  0x1f   : > { %2258 = vmatpush.xpose.msk.msra.mxu1 %vm272_vm0, %v2952_v22  ;;  %3953 = vst [vmem:[#allocation13_spill] sm:$0xff] %v3011_v35  ;;  %v3088_v50 = vld [vmem:[%s2878_s27 + $0x48] sm:$0xff]  ;;  %v3108_v54 = vld [vmem:[%s2878_s27 + $0x38] sm:$0xff]  ;;  %v3128_v58 = vld [vmem:[%s2878_s27 + $0x30] sm:$0xff] }
  0x20   : > { %3954 = vst [vmem:[#allocation14_spill] sm:$0xff] %v3028_v38  ;;  %v3091_v51 = vld [vmem:[%s2878_s27 + $0x108] sm:$0xff]  ;;  %v3111_v55 = vld [vmem:[%s2878_s27 + $0xf8] sm:$0xff]  ;;  %v3131_v59 = vld [vmem:[%s2878_s27 + $0xf0] sm:$0xff] }
  0x21   : > { %2276 = vmatpush.xpose.msk.msra.mxu2 %vm272_vm0, %v2959_v23  ;;  %2294 = vmatpush.xpose.msk.msra.mxu3 %vm272_vm0, %v2962_v24  ;;  %3955 = vst [vmem:[#allocation15_spill] sm:$0xff] %v3031_v39  ;;  %v3138_v60 = vld [vmem:[%s2878_s27 + $0x21] sm:$0xff]  ;;  %v3164_v2 = vld [vmem:[%s2878_s27 + $0x19] sm:$0xff]  ;;  %v206_v16 = vld [vmem:[%s2878_s27 + $0x9] sm:$0xff] }
  0x22   : > { %2241 = vmatpush.xpose.msk.msra.mxu0 %vm272_vm0, %v2969_v25  ;;  %3956 = vst [vmem:[#allocation16_spill] sm:$0xff] %v3048_v42  ;;  %v3141_v61 = vld [vmem:[%s2878_s27 + $0xe1] sm:$0xff]  ;;  %v3167_v3 = vld [vmem:[%s2878_s27 + $0xd9] sm:$0xff]  ;;  %v3185_v17 = vld [vmem:[%s2878_s27 + $0xc9] sm:$0xff] }
  0x23   : > { %2259 = vmatpush.xpose.msk.msra.mxu1 %vm272_vm0, %v2972_v26  ;;  %3957 = vst [vmem:[#allocation17_spill] sm:$0xff] %v3051_v43  ;;  %v3148_v62 = vld [vmem:[%s2878_s27 + $0x20] sm:$0xff]  ;;  %v3174_v4 = vld [vmem:[%s2878_s27 + $0x18] sm:$0xff]  ;;  %v172_v20 = vld [vmem:[%s2878_s27 + $0x8] sm:$0xff] }
  0x24   : > { %637 = vxpose.xlu0.b32.end [2/2] (short) (narrow) %v2310_v27, 16  ;;  %1295 = vxpose.xlu1.b32.end [2/2] (short) (narrow) %v2520_v28, 16  ;;  %3958 = vst [vmem:[#allocation18_spill] sm:$0xff] %v3068_v46  ;;  %v3151_v63 = vld [vmem:[%s2878_s27 + $0xe0] sm:$0xff]  ;;  %v3177_v8 = vld [vmem:[%s2878_s27 + $0xd8] sm:$0xff]  ;;  %v3193_v27 = vld [vmem:[%s2878_s27 + $0xc8] sm:$0xff] }
  0x25   : > { %2277 = vmatpush.xpose.msk.msra.mxu2 %vm272_vm0, %v2985_v29  ;;  %2295 = vmatpush.xpose.msk.msra.mxu3 %vm272_vm0, %v2988_v30  ;;  %3959 = vst [vmem:[#allocation19_spill] sm:$0xff] %v3071_v47  ;;  %v2590_v28 = vld [vmem:[%s3895_s1 + $0x68] sm:$0xff] }
  0x26   : > { %1076 = vxpose.xlu2.b32.end [2/2] (short) (narrow) %v2450_v31, 16  ;;  %2242 = vmatpush.xpose.msk.msra.mxu0 %vm272_vm0, %v2998_v32  ;;  %3960 = vst [vmem:[#allocation20_spill] sm:$0xff] %v3088_v50  ;;  %v2660_v31 = vld [vmem:[%s3895_s1 + $0x78] sm:$0xff] }
  0x27   : > { %2260 = vmatpush.xpose.msk.msra.mxu1 %vm272_vm0, %v3001_v33  ;;  %3961 = vst [vmem:[#allocation21_spill] sm:$0xff] %v3091_v51 }
  0x28   : > { %3962 = vst [vmem:[#allocation22_spill] sm:$0xff] %v3108_v54 }
  0x29   : > { %2278 = vmatpush.xpose.msk.msra.mxu2 %vm272_vm0, %v3008_v34  ;;  %2296 = vmatpush.xpose.msk.msra.mxu3 %vm272_vm0, %v3011_v35  ;;  %3963 = vst [vmem:[#allocation23_spill] sm:$0xff] %v3111_v55 }
  0x2a   : > { %2243 = vmatpush.xpose.msk.msra.mxu0 %vm272_vm0, %v3018_v36  ;;  %3964 = vst [vmem:[#allocation24_spill] sm:$0xff] %v3128_v58 }
  0x2b   : > { %2261 = vmatpush.xpose.msk.msra.mxu1 %vm272_vm0, %v3021_v37  ;;  %3965 = vst [vmem:[#allocation25_spill] sm:$0xff] %v3131_v59 }
  0x2c   : > { %3966 = vst [vmem:[#allocation26_spill] sm:$0xff] %v3138_v60  ;;  %1514 = vxpose.xlu1.b32.start [1/2] (short) (narrow) %v2589_v0, 16  ;;  %1733 = vxpose.xlu0.b32.start [1/2] (short) (narrow) %v2659_v1, 16  ;;  %v205_v0 = vld [vmem:[%s2878_s27 + $0x1] sm:$0xff] }
  0x2d   : > { %2279 = vmatpush.xpose.msk.msra.mxu2 %vm272_vm0, %v3028_v38  ;;  %2297 = vmatpush.xpose.msk.msra.mxu3 %vm272_vm0, %v3031_v39  ;;  %3967 = vst [vmem:[#allocation27_spill] sm:$0xff] %v3141_v61  ;;  %v3206_v1 = vld [vmem:[%s2878_s27 + $0xc1] sm:$0xff] }
  0x2e   : > { %2244 = vmatpush.xpose.msk.msra.mxu0 %vm272_vm0, %v3038_v40  ;;  %3968 = vst [vmem:[#allocation28_spill] sm:$0xff] %v3164_v2 }
  0x2f   : > { %2262 = vmatpush.xpose.msk.msra.mxu1 %vm272_vm0, %v3041_v41  ;;  %3969 = vst [vmem:[#allocation29_spill] sm:$0xff] %v3167_v3 }
  0x30   : > { %3970 = vst [vmem:[#allocation30_spill] sm:$0xff] %v3193_v27 }
  0x31   : > { %2280 = vmatpush.xpose.msk.msra.mxu2 %vm272_vm0, %v3048_v42  ;;  %2298 = vmatpush.xpose.msk.msra.mxu3 %vm272_vm0, %v3051_v43 }
  0x32   : > { %2245 = vmatpush.xpose.msk.msra.mxu0 %vm272_vm0, %v3058_v44 }
  0x33   : > { %2263 = vmatpush.xpose.msk.msra.mxu1 %vm272_vm0, %v3061_v45 }
  0x34   : > { %1515 = vxpose.xlu1.b32.end [2/2] (short) (narrow) %v2590_v28, 16  ;;  %1734 = vxpose.xlu0.b32.end [2/2] (short) (narrow) %v2660_v31, 16  ;;  %v3225_v28 = vld [vmem:[%s2878_s27 + $0x188] sm:$0xff] }
  0x35   : > { %2281 = vmatpush.xpose.msk.msra.mxu2 %vm272_vm0, %v3068_v46  ;;  %2299 = vmatpush.xpose.msk.msra.mxu3 %vm272_vm0, %v3071_v47  ;;  %3972 = vst [vmem:[#allocation32_spill] sm:$0xff] %v3225_v28  ;;  %v3238_v31 = vld [vmem:[%s2878_s27 + $0x16a] sm:$0xff] }
  0x36   : > { %2246 = vmatpush.xpose.msk.msra.mxu0 %vm272_vm0, %v3078_v48 }
  0x37   : > { %2264 = vmatpush.xpose.msk.msra.mxu1 %vm272_vm0, %v3081_v49 }
  0x39   : > { %2282 = vmatpush.xpose.msk.msra.mxu2 %vm272_vm0, %v3088_v50  ;;  %2300 = vmatpush.xpose.msk.msra.mxu3 %vm272_vm0, %v3091_v51 }
  0x3a   : > { %2247 = vmatpush.xpose.msk.msra.mxu0 %vm272_vm0, %v3098_v52 }
  0x3b   : > { %2265 = vmatpush.xpose.msk.msra.mxu1 %vm272_vm0, %v3101_v53 }
  0x3d   : > { %2283 = vmatpush.xpose.msk.msra.mxu2 %vm272_vm0, %v3108_v54  ;;  %2301 = vmatpush.xpose.msk.msra.mxu3 %vm272_vm0, %v3111_v55 }
  0x3e   : > { %2248 = vmatpush.xpose.msk.msra.mxu0 %vm272_vm0, %v3118_v56 }
  0x3f   : > { %2266 = vmatpush.xpose.msk.msra.mxu1 %vm272_vm0, %v3121_v57 }
  0x41   : > { %2284 = vmatpush.xpose.msk.msra.mxu2 %vm272_vm0, %v3128_v58  ;;  %2302 = vmatpush.xpose.msk.msra.mxu3 %vm272_vm0, %v3131_v59 }
  0x42   : > { %2249 = vmatpush.xpose.msk.msra.mxu0 %vm272_vm0, %v3138_v60  ;;  %v3255_v60 = vld [vmem:[%s2878_s27 + $0x15a] sm:$0xff] }
  0x43   : > { %2267 = vmatpush.xpose.msk.msra.mxu1 %vm272_vm0, %v3141_v61  ;;  %v3219_v61 = vld [vmem:[%s2878_s27 + $0xc0] sm:$0xff] }
  0x44   : > { %3971 = vst [vmem:[#allocation31_spill] sm:$0xff] %v3219_v61 }
  0x45   : > { %2285 = vmatpush.xpose.msk.msra.mxu2 %vm272_vm0, %v3148_v62  ;;  %2303 = vmatpush.xpose.msk.msra.mxu3 %vm272_vm0, %v3151_v63 }
  0x46   : > { %2250 = vmatpush.xpose.msk.msra.mxu0 %vm272_vm0, %v3164_v2  ;;  %v3215_v2 = vld [vmem:[%s2878_s27 + $0x172] sm:$0xff] }
  0x47   : > { %2268 = vmatpush.xpose.msk.msra.mxu1 %vm272_vm0, %v3167_v3  ;;  %v3212_v3 = vld [vmem:[%s2878_s27 + $0xb2] sm:$0xff] }
  0x49   : > { %2286 = vmatpush.xpose.msk.msra.mxu2 %vm272_vm0, %v3174_v4  ;;  %2304 = vmatpush.xpose.msk.msra.mxu3 %vm272_vm0, %v3177_v8 }
  0x4a   : > { %2251 = vmatpush.xpose.msk.msra.mxu0 %vm272_vm0, %v206_v16  ;;  %v171_v16 = vld [vmem:[%s2878_s27] sm:$0xff] }
  0x4b   : > { %2269 = vmatpush.xpose.msk.msra.mxu1 %vm272_vm0, %v3185_v17 }
  0x4d   : > { %2287 = vmatpush.xpose.msk.msra.mxu2 %vm272_vm0, %v172_v20  ;;  %2305 = vmatpush.xpose.msk.msra.mxu3 %vm272_vm0, %v3193_v27  ;;  %v3235_v20 = vld [vmem:[%s2878_s27 + $0xaa] sm:$0xff] }
  0x4e   : > { %2252 = vmatpush.xpose.msk.msra.mxu0 %vm272_vm0, %v205_v0  ;;  %v3245_v0 = vld [vmem:[%s2878_s27 + $0x180] sm:$0xff] }
  0x4f   : > { %2270 = vmatpush.xpose.msk.msra.mxu1 %vm272_vm0, %v3206_v1  ;;  %3973 = vst [vmem:[#allocation33_spill] sm:$0xff] %v3245_v0 }
  0x51   : > { %2288 = vmatpush.xpose.msk.msra.mxu2 %vm272_vm0, %v171_v16  ;;  %2306 = vmatpush.xpose.msk.msra.mxu3 %vm272_vm0, %v3219_v61  ;;  %v3252_v16 = vld [vmem:[%s2878_s27 + $0x9a] sm:$0xff] }
  0x52   : > { %2311 = vmatpush.xpose.msk.msrb.mxu0 %vm272_vm0, %v3212_v3 }
  0x53   : > { %2329 = vmatpush.xpose.msk.msrb.mxu1 %vm272_vm0, %v3215_v2 }
  0x55   : > { %2381 = vmatpush.xpose.msk.msrb.mxu2 %vm272_vm0, %v3193_v27  ;;  %2399 = vmatpush.xpose.msk.msrb.mxu3 %vm272_vm0, %v3225_v28  ;;  %v3266_v28 = vld [vmem:[%s2878_s27 + $0x92] sm:$0xff] }
  0x56   : > { %2312 = vmatpush.xpose.msk.msrb.mxu0 %vm272_vm0, %v3235_v20  ;;  %v3269_v27 = vld [vmem:[%s2878_s27 + $0x152] sm:$0xff] }
  0x57   : > { %2330 = vmatpush.xpose.msk.msrb.mxu1 %vm272_vm0, %v3238_v31 }
  0x59   : > { %2382 = vmatpush.xpose.msk.msrb.mxu2 %vm272_vm0, %v3219_v61  ;;  %2400 = vmatpush.xpose.msk.msrb.mxu3 %vm272_vm0, %v3245_v0  ;;  %v3280_v0 = vld [vmem:[%s2878_s27 + $0x82] sm:$0xff] }
  0x5a   : > { %2313 = vmatpush.xpose.msk.msrb.mxu0 %vm272_vm0, %v3252_v16  ;;  %v3283_v61 = vld [vmem:[%s2878_s27 + $0x142] sm:$0xff] }
  0x5b   : > { %2331 = vmatpush.xpose.msk.msrb.mxu1 %vm272_vm0, %v3255_v60 }
  0x5d   : > { %2383 = vmatpush.xpose.msk.msrb.mxu2 %vm272_vm0, %v2887_v7  ;;  %2401 = vmatpush.xpose.msk.msrb.mxu3 %vm272_vm0, %v2897_v9  ;;  %v3294_v9 = vld [vmem:[%s2878_s27 + $0x7a] sm:$0xff] }
  0x5e   : > { %2314 = vmatpush.xpose.msk.msrb.mxu0 %vm272_vm0, %v3266_v28  ;;  %v3297_v7 = vld [vmem:[%s2878_s27 + $0x13a] sm:$0xff] }
  0x5f   : > { %2332 = vmatpush.xpose.msk.msrb.mxu1 %vm272_vm0, %v3269_v27 }
  0x61   : > { %2384 = vmatpush.xpose.msk.msrb.mxu2 %vm272_vm0, %v2910_v12  ;;  %2402 = vmatpush.xpose.msk.msrb.mxu3 %vm272_vm0, %v2913_v13  ;;  %v3308_v13 = vld [vmem:[%s2878_s27 + $0x6a] sm:$0xff] }
  0x62   : > { %2315 = vmatpush.xpose.msk.msrb.mxu0 %vm272_vm0, %v3280_v0  ;;  %v3311_v12 = vld [vmem:[%s2878_s27 + $0x12a] sm:$0xff] }
  0x63   : > { %2333 = vmatpush.xpose.msk.msrb.mxu1 %vm272_vm0, %v3283_v61 }
  0x65   : > { %2385 = vmatpush.xpose.msk.msrb.mxu2 %vm272_vm0, %v2936_v18  ;;  %2403 = vmatpush.xpose.msk.msrb.mxu3 %vm272_vm0, %v2939_v19  ;;  %v3322_v19 = vld [vmem:[%s2878_s27 + $0x62] sm:$0xff] }
  0x66   : > { %2316 = vmatpush.xpose.msk.msrb.mxu0 %vm272_vm0, %v3294_v9  ;;  %v3325_v18 = vld [vmem:[%s2878_s27 + $0x122] sm:$0xff] }
  0x67   : > { %2334 = vmatpush.xpose.msk.msrb.mxu1 %vm272_vm0, %v3297_v7 }
  0x69   : > { %2386 = vmatpush.xpose.msk.msrb.mxu2 %vm272_vm0, %v2959_v23  ;;  %2404 = vmatpush.xpose.msk.msrb.mxu3 %vm272_vm0, %v2962_v24  ;;  %v3336_v24 = vld [vmem:[%s2878_s27 + $0x52] sm:$0xff] }
  0x6a   : > { %2317 = vmatpush.xpose.msk.msrb.mxu0 %vm272_vm0, %v3308_v13  ;;  %v3339_v23 = vld [vmem:[%s2878_s27 + $0x112] sm:$0xff] }
  0x6b   : > { %2335 = vmatpush.xpose.msk.msrb.mxu1 %vm272_vm0, %v3311_v12 }
  0x6d   : > { %2387 = vmatpush.xpose.msk.msrb.mxu2 %vm272_vm0, %v2985_v29  ;;  %2405 = vmatpush.xpose.msk.msrb.mxu3 %vm272_vm0, %v2988_v30  ;;  %v3350_v30 = vld [vmem:[%s2878_s27 + $0x4a] sm:$0xff] }
  0x6e   : > { %2318 = vmatpush.xpose.msk.msrb.mxu0 %vm272_vm0, %v3322_v19  ;;  %v3353_v29 = vld [vmem:[%s2878_s27 + $0x10a] sm:$0xff] }
  0x6f   : > { %2336 = vmatpush.xpose.msk.msrb.mxu1 %vm272_vm0, %v3325_v18 }
  0x71   : > { %2388 = vmatpush.xpose.msk.msrb.mxu2 %vm272_vm0, %v3008_v34  ;;  %2406 = vmatpush.xpose.msk.msrb.mxu3 %vm272_vm0, %v3011_v35  ;;  %v3364_v35 = vld [vmem:[%s2878_s27 + $0x3a] sm:$0xff] }
  0x72   : > { %2319 = vmatpush.xpose.msk.msrb.mxu0 %vm272_vm0, %v3336_v24  ;;  %3974 = vst [vmem:[#allocation34_spill] sm:$0xff] %v3364_v35  ;;  %v3367_v34 = vld [vmem:[%s2878_s27 + $0xfa] sm:$0xff] }
  0x73   : > { %2337 = vmatpush.xpose.msk.msrb.mxu1 %vm272_vm0, %v3339_v23  ;;  %3975 = vst [vmem:[#allocation35_spill] sm:$0xff] %v3367_v34 }
  0x75   : > { %2389 = vmatpush.xpose.msk.msrb.mxu2 %vm272_vm0, %v3028_v38  ;;  %2407 = vmatpush.xpose.msk.msrb.mxu3 %vm272_vm0, %v3031_v39  ;;  %v3378_v39 = vld [vmem:[%s2878_s27 + $0x32] sm:$0xff] }
  0x76   : > { %2320 = vmatpush.xpose.msk.msrb.mxu0 %vm272_vm0, %v3350_v30  ;;  %3976 = vst [vmem:[#allocation36_spill] sm:$0xff] %v3378_v39  ;;  %v3381_v38 = vld [vmem:[%s2878_s27 + $0xf2] sm:$0xff] }
  0x77   : > { %2338 = vmatpush.xpose.msk.msrb.mxu1 %vm272_vm0, %v3353_v29  ;;  %3977 = vst [vmem:[#allocation37_spill] sm:$0xff] %v3381_v38 }
  0x79   : > { %2390 = vmatpush.xpose.msk.msrb.mxu2 %vm272_vm0, %v3048_v42  ;;  %2408 = vmatpush.xpose.msk.msrb.mxu3 %vm272_vm0, %v3051_v43  ;;  %v3392_v43 = vld [vmem:[%s2878_s27 + $0x22] sm:$0xff] }
  0x7a   : > { %2321 = vmatpush.xpose.msk.msrb.mxu0 %vm272_vm0, %v3364_v35  ;;  %v3395_v42 = vld [vmem:[%s2878_s27 + $0xe2] sm:$0xff] }
  0x7b   : > { %2339 = vmatpush.xpose.msk.msrb.mxu1 %vm272_vm0, %v3367_v34 }
  0x7d   : > { %2391 = vmatpush.xpose.msk.msrb.mxu2 %vm272_vm0, %v3068_v46  ;;  %2409 = vmatpush.xpose.msk.msrb.mxu3 %vm272_vm0, %v3071_v47  ;;  %v3406_v47 = vld [vmem:[%s2878_s27 + $0x1a] sm:$0xff] }
  0x7e   : > { %2322 = vmatpush.xpose.msk.msrb.mxu0 %vm272_vm0, %v3378_v39  ;;  %v3409_v46 = vld [vmem:[%s2878_s27 + $0xda] sm:$0xff] }
  0x7f   : > { %2340 = vmatpush.xpose.msk.msrb.mxu1 %vm272_vm0, %v3381_v38 }
  0x81   : > { %2392 = vmatpush.xpose.msk.msrb.mxu2 %vm272_vm0, %v3088_v50  ;;  %2410 = vmatpush.xpose.msk.msrb.mxu3 %vm272_vm0, %v3091_v51  ;;  %v602_v51 = vld [vmem:[%s2878_s27 + $0xa] sm:$0xff] }
  0x82   : > { %2323 = vmatpush.xpose.msk.msrb.mxu0 %vm272_vm0, %v3392_v43  ;;  %v3421_v50 = vld [vmem:[%s2878_s27 + $0xca] sm:$0xff] }
  0x83   : > { %2341 = vmatpush.xpose.msk.msrb.mxu1 %vm272_vm0, %v3395_v42  ;;  %3978 = vst [vmem:[#allocation38_spill] sm:$0xff] %v3421_v50 }
  0x85   : > { %2393 = vmatpush.xpose.msk.msrb.mxu2 %vm272_vm0, %v3108_v54  ;;  %2411 = vmatpush.xpose.msk.msrb.mxu3 %vm272_vm0, %v3111_v55  ;;  %v3449_v55 = vld [vmem:[%s2878_s27 + $0x189] sm:$0xff] }
  0x86   : > { %2324 = vmatpush.xpose.msk.msrb.mxu0 %vm272_vm0, %v3406_v47  ;;  %v3454_v54 = vld [vmem:[%s2878_s27 + $0x18a] sm:$0xff] }
  0x87   : > { %2342 = vmatpush.xpose.msk.msrb.mxu1 %vm272_vm0, %v3409_v46 }
  0x89   : > { %2394 = vmatpush.xpose.msk.msrb.mxu2 %vm272_vm0, %v3128_v58  ;;  %2412 = vmatpush.xpose.msk.msrb.mxu3 %vm272_vm0, %v3131_v59  ;;  %v601_v58 = vld [vmem:[%s2878_s27 + $0x2] sm:$0xff] }
  0x8a   : > { %2325 = vmatpush.xpose.msk.msrb.mxu0 %vm272_vm0, %v602_v51  ;;  %v3440_v59 = vld [vmem:[%s2878_s27 + $0xc2] sm:$0xff] }
  0x8b   : > { %2343 = vmatpush.xpose.msk.msrb.mxu1 %vm272_vm0, %v3421_v50  ;;  %v2729_v51 = vld [vmem:[%s3895_s1 + $0x80] sm:$0xff] }
  0x8c   : > { %1952 = vxpose.xlu2.b32.start [1/2] (short) (narrow) %v2729_v51, 16  ;;  %v3470_v51 = vld [vmem:[%s2878_s27 + $0x181] sm:$0xff] }
  0x8d   : > { %2395 = vmatpush.xpose.msk.msrb.mxu2 %vm272_vm0, %v3148_v62  ;;  %2413 = vmatpush.xpose.msk.msrb.mxu3 %vm272_vm0, %v3151_v63 }
  0x8e   : > { %2326 = vmatpush.xpose.msk.msrb.mxu0 %vm272_vm0, %v601_v58  ;;  %v2730_v58 = vld [vmem:[%s3895_s1 + $0x88] sm:$0xff] }
  0x8f   : > { %2344 = vmatpush.xpose.msk.msrb.mxu1 %vm272_vm0, %v3440_v59 }
  0x91   : > { %2396 = vmatpush.xpose.msk.msrb.mxu2 %vm272_vm0, %v3174_v4  ;;  %2414 = vmatpush.xpose.msk.msrb.mxu3 %vm272_vm0, %v3177_v8 }
  0x94   : > { %1953 = vxpose.xlu2.b32.end [2/2] (short) (narrow) %v2730_v58, 16 }
  0xa7   : > { %v872_v58 = vpop.trf.xlu2 }
  0xb0   : > { %v256_v62 = vpop.trf.xlu1  ;;  %v437_v4 = vpop.trf.xlu0 }
  0xb1   : > { %2253 = vmatmul.msk.f32.vlgmr.msra.gmra.mxu0 %vm272_vm0, %v256_v62  ;;  %2271 = vmatmul.msk.f32.vlgmr.msra.gmra.mxu1 %vm272_vm0, %v256_v62  ;;  %v3473_v62 = vld [vmem:[%s2878_s27 + $0x182] sm:$0xff] }
  0xb2   : > { %2289 = vmatmul.msk.f32.vlgmr.msra.gmra.mxu2 %vm272_vm0, %v437_v4  ;;  %2307 = vmatmul.msk.f32.vlgmr.msra.gmra.mxu3 %vm272_vm0, %v437_v4 }
  0xb3   : > { %2451 = vmatpush.xpose.msk.msra.mxu0 %vm272_vm0, %v3185_v17  ;;  %2469 = vmatpush.xpose.msk.msra.mxu1 %vm272_vm0, %v3449_v55 }
  0xb4   : > { %2521 = vmatpush.xpose.msk.msra.mxu2 %vm272_vm0, %v3421_v50  ;;  %2539 = vmatpush.xpose.msk.msra.mxu3 %vm272_vm0, %v3454_v54 }
  0xb7   : > { %2452 = vmatpush.xpose.msk.msra.mxu0 %vm272_vm0, %v3206_v1  ;;  %2470 = vmatpush.xpose.msk.msra.mxu1 %vm272_vm0, %v3470_v51 }
  0xb8   : > { %2522 = vmatpush.xpose.msk.msra.mxu2 %vm272_vm0, %v3440_v59  ;;  %2540 = vmatpush.xpose.msk.msra.mxu3 %vm272_vm0, %v3473_v62  ;;  %v257_v4 = vpop.trf.xlu1  ;;  %v438_v50 = vpop.trf.xlu0 }
  0xb9   : > { %2254 = vmatmul.msk.f32.gmra.mxu0 %vm272_vm0, %v257_v4  ;;  %2272 = vmatmul.msk.f32.gmra.mxu1 %vm272_vm0, %v257_v4  ;;  %v873_v4 = vpop.trf.xlu2 }
  0xba   : > { %2290 = vmatmul.msk.f32.gmra.mxu2 %vm272_vm0, %v438_v50  ;;  %2308 = vmatmul.msk.f32.gmra.mxu3 %vm272_vm0, %v438_v50 }
  0xbb   : > { %2453 = vmatpush.xpose.msk.msra.mxu0 %vm272_vm0, %v2881_v5  ;;  %2471 = vmatpush.xpose.msk.msra.mxu1 %vm272_vm0, %v2884_v6 }
  0xbc   : > { %2523 = vmatpush.xpose.msk.msra.mxu2 %vm272_vm0, %v3212_v3  ;;  %2541 = vmatpush.xpose.msk.msra.mxu3 %vm272_vm0, %v3215_v2 }
  0xbf   : > { %2454 = vmatpush.xpose.msk.msra.mxu0 %vm272_vm0, %v2900_v10  ;;  %2472 = vmatpush.xpose.msk.msra.mxu1 %vm272_vm0, %v2903_v11 }
  0xc0   : > { %2524 = vmatpush.xpose.msk.msra.mxu2 %vm272_vm0, %v3235_v20  ;;  %2542 = vmatpush.xpose.msk.msra.mxu3 %vm272_vm0, %v3238_v31  ;;  %v652_v50 = vpop.trf.xlu0 }
  0xc1   : > { %2327 = vmatmul.msk.f32.vlgmr.msrb.gmra.mxu0 %vm272_vm0, %v652_v50  ;;  %2345 = vmatmul.msk.f32.vlgmr.msrb.gmra.mxu1 %vm272_vm0, %v652_v50  ;;  %v3979_v50 = vld [vmem:[#allocation26_spill] sm:$0xff] }
  0xc2   : > { %2397 = vmatmul.msk.f32.vlgmr.msrb.gmra.mxu2 %vm272_vm0, %v872_v58  ;;  %2415 = vmatmul.msk.f32.vlgmr.msrb.gmra.mxu3 %vm272_vm0, %v872_v58 }
  0xc3   : > { %2455 = vmatpush.xpose.msk.msra.mxu0 %vm272_vm0, %v2920_v14  ;;  %2473 = vmatpush.xpose.msk.msra.mxu1 %vm272_vm0, %v2923_v15 }
  0xc4   : > { %2525 = vmatpush.xpose.msk.msra.mxu2 %vm272_vm0, %v3252_v16  ;;  %2543 = vmatpush.xpose.msk.msra.mxu3 %vm272_vm0, %v3255_v60 }
  0xc7   : > { %2456 = vmatpush.xpose.msk.msra.mxu0 %vm272_vm0, %v2949_v21  ;;  %2474 = vmatpush.xpose.msk.msra.mxu1 %vm272_vm0, %v2952_v22 }
  0xc8   : > { %2526 = vmatpush.xpose.msk.msra.mxu2 %vm272_vm0, %v3266_v28  ;;  %2544 = vmatpush.xpose.msk.msra.mxu3 %vm272_vm0, %v3269_v27  ;;  %v653_v58 = vpop.trf.xlu0 }
  0xc9   : > { %2328 = vmatmul.msk.f32.gmra.mxu0 %vm272_vm0, %v653_v58  ;;  %2346 = vmatmul.msk.f32.gmra.mxu1 %vm272_vm0, %v653_v58  ;;  %v2588_v58 = vld [vmem:[%s2878_s27 + $0x1a0] sm:$0xff] }
  0xca   : > { %2398 = vmatmul.msk.f32.gmra.mxu2 %vm272_vm0, %v873_v4  ;;  %2416 = vmatmul.msk.f32.gmra.mxu3 %vm272_vm0, %v873_v4  ;;  %v3980_v4 = vld [vmem:[#allocation27_spill] sm:$0xff] }
  0xcb   : > { %2457 = vmatpush.xpose.msk.msra.mxu0 %vm272_vm0, %v2969_v25  ;;  %2475 = vmatpush.xpose.msk.msra.mxu1 %vm272_vm0, %v2972_v26 }
  0xcc   : > { %2527 = vmatpush.xpose.msk.msra.mxu2 %vm272_vm0, %v3280_v0  ;;  %2545 = vmatpush.xpose.msk.msra.mxu3 %vm272_vm0, %v3283_v61 }
  0xcf   : > { %2458 = vmatpush.xpose.msk.msra.mxu0 %vm272_vm0, %v2998_v32  ;;  %2476 = vmatpush.xpose.msk.msra.mxu1 %vm272_vm0, %v3001_v33 }
  0xd0   : > { %2528 = vmatpush.xpose.msk.msra.mxu2 %vm272_vm0, %v3294_v9  ;;  %2546 = vmatpush.xpose.msk.msra.mxu3 %vm272_vm0, %v3297_v7 }
  0xd3   : > { %2459 = vmatpush.xpose.msk.msra.mxu0 %vm272_vm0, %v3018_v36  ;;  %2477 = vmatpush.xpose.msk.msra.mxu1 %vm272_vm0, %v3021_v37 }
  0xd4   : > { %2529 = vmatpush.xpose.msk.msra.mxu2 %vm272_vm0, %v3308_v13  ;;  %2547 = vmatpush.xpose.msk.msra.mxu3 %vm272_vm0, %v3311_v12 }
  0xd7   : > { %2460 = vmatpush.xpose.msk.msra.mxu0 %vm272_vm0, %v3038_v40  ;;  %2478 = vmatpush.xpose.msk.msra.mxu1 %vm272_vm0, %v3041_v41 }
  0xd8   : > { %2530 = vmatpush.xpose.msk.msra.mxu2 %vm272_vm0, %v3322_v19  ;;  %2548 = vmatpush.xpose.msk.msra.mxu3 %vm272_vm0, %v3325_v18 }
  0xdb   : > { %2461 = vmatpush.xpose.msk.msra.mxu0 %vm272_vm0, %v3058_v44  ;;  %2479 = vmatpush.xpose.msk.msra.mxu1 %vm272_vm0, %v3061_v45 }
  0xdc   : > { %2531 = vmatpush.xpose.msk.msra.mxu2 %vm272_vm0, %v3336_v24  ;;  %2549 = vmatpush.xpose.msk.msra.mxu3 %vm272_vm0, %v3339_v23 }
  0xdf   : > { %2462 = vmatpush.xpose.msk.msra.mxu0 %vm272_vm0, %v3078_v48  ;;  %2480 = vmatpush.xpose.msk.msra.mxu1 %vm272_vm0, %v3081_v49 }
  0xe0   : > { %2532 = vmatpush.xpose.msk.msra.mxu2 %vm272_vm0, %v3350_v30  ;;  %2550 = vmatpush.xpose.msk.msra.mxu3 %vm272_vm0, %v3353_v29 }
  0xe3   : > { %2463 = vmatpush.xpose.msk.msra.mxu0 %vm272_vm0, %v3098_v52  ;;  %2481 = vmatpush.xpose.msk.msra.mxu1 %vm272_vm0, %v3101_v53 }
  0xe4   : > { %2533 = vmatpush.xpose.msk.msra.mxu2 %vm272_vm0, %v3364_v35  ;;  %2551 = vmatpush.xpose.msk.msra.mxu3 %vm272_vm0, %v3367_v34  ;;  %v1091_v34 = vpop.trf.xlu2  ;;  %v1310_v35 = vpop.trf.xlu1 }
  0xe7   : > { %2464 = vmatpush.xpose.msk.msra.mxu0 %vm272_vm0, %v3118_v56  ;;  %2482 = vmatpush.xpose.msk.msra.mxu1 %vm272_vm0, %v3121_v57 }
  0xe8   : > { %2534 = vmatpush.xpose.msk.msra.mxu2 %vm272_vm0, %v3378_v39  ;;  %2552 = vmatpush.xpose.msk.msra.mxu3 %vm272_vm0, %v3381_v38  ;;  %v3981_v39 = vld [vmem:[#allocation28_spill] sm:$0xff]  ;;  %v3982_v38 = vld [vmem:[#allocation29_spill] sm:$0xff] }
  0xeb   : > { %2465 = vmatpush.xpose.msk.msra.mxu0 %vm272_vm0, %v3979_v50  ;;  %2483 = vmatpush.xpose.msk.msra.mxu1 %vm272_vm0, %v3980_v4  ;;  %v2658_v50 = vld [vmem:[%s2878_s27 + $0x1a1] sm:$0xff] }
  0xec   : > { %2535 = vmatpush.xpose.msk.msra.mxu2 %vm272_vm0, %v3392_v43  ;;  %2553 = vmatpush.xpose.msk.msra.mxu3 %vm272_vm0, %v3395_v42  ;;  %v2657_v43 = vld [vmem:[%s2878_s27 + $0x199] sm:$0xff] }
  0xef   : > { %2466 = vmatpush.xpose.msk.msra.mxu0 %vm272_vm0, %v3981_v39  ;;  %2484 = vmatpush.xpose.msk.msra.mxu1 %vm272_vm0, %v3982_v38  ;;  %v2587_v39 = vld [vmem:[%s2878_s27 + $0x198] sm:$0xff] }
  0xf0   : > { %2536 = vmatpush.xpose.msk.msra.mxu2 %vm272_vm0, %v3406_v47  ;;  %2554 = vmatpush.xpose.msk.msra.mxu3 %vm272_vm0, %v3409_v46  ;;  %v1092_v47 = vpop.trf.xlu2 }
  0xf2   : > { %2467 = vmatmul.msk.f32.vlgmr.msra.gmra.mxu0 %vm272_vm0, %v1091_v34  ;;  %2485 = vmatmul.msk.f32.vlgmr.msra.gmra.mxu1 %vm272_vm0, %v1091_v34  ;;  %v3984_v34 = vld [vmem:[#allocation32_spill] sm:$0xff] }
  0xf3   : > { %2591 = vmatpush.xpose.msk.msrb.mxu0 %vm272_vm0, %v3151_v63  ;;  %2609 = vmatpush.xpose.msk.msrb.mxu1 %vm272_vm0, %v2588_v58  ;;  %v3983_v63 = vld [vmem:[#allocation30_spill] sm:$0xff]  ;;  %v3990_v58 = vld [vmem:[#allocation5_spill] sm:$0xff] }
  0xf4   : > { %2661 = vmatpush.xpose.msk.msrb.mxu2 %vm272_vm0, %v3980_v4  ;;  %2679 = vmatpush.xpose.msk.msrb.mxu3 %vm272_vm0, %v2658_v50  ;;  %v1311_v4 = vpop.trf.xlu1  ;;  %v1749_v50 = vpop.trf.xlu0 }
  0xf5   : > { %2537 = vmatmul.msk.f32.vlgmr.msra.gmra.mxu2 %vm272_vm0, %v1310_v35  ;;  %2555 = vmatmul.msk.f32.vlgmr.msra.gmra.mxu3 %vm272_vm0, %v1310_v35  ;;  %v3985_v35 = vld [vmem:[#allocation31_spill] sm:$0xff] }
  0xf7   : > { %2592 = vmatpush.xpose.msk.msrb.mxu0 %vm272_vm0, %v3177_v8  ;;  %2610 = vmatpush.xpose.msk.msrb.mxu1 %vm272_vm0, %v2587_v39  ;;  %v3988_v8 = vld [vmem:[#allocation3_spill] sm:$0xff] }
  0xf8   : > { %2662 = vmatpush.xpose.msk.msrb.mxu2 %vm272_vm0, %v3982_v38  ;;  %2680 = vmatpush.xpose.msk.msrb.mxu3 %vm272_vm0, %v2657_v43  ;;  %v3986_v38 = vld [vmem:[#allocation33_spill] sm:$0xff] }
  0xfa   : > { %2468 = vmatmul.msk.f32.gmra.mxu0 %vm272_vm0, %v1092_v47  ;;  %2486 = vmatmul.msk.f32.gmra.mxu1 %vm272_vm0, %v1092_v47 }
  0xfb   : > { %2593 = vmatpush.xpose.msk.msrb.mxu0 %vm272_vm0, %v3983_v63  ;;  %2611 = vmatpush.xpose.msk.msrb.mxu1 %vm272_vm0, %v3984_v34 }
  0xfc   : > { %2663 = vmatpush.xpose.msk.msrb.mxu2 %vm272_vm0, %v3185_v17  ;;  %2681 = vmatpush.xpose.msk.msrb.mxu3 %vm272_vm0, %v3449_v55  ;;  %v3987_v55 = vld [vmem:[#allocation2_spill] sm:$0xff]  ;;  %v3989_v17 = vld [vmem:[#allocation4_spill] sm:$0xff] }
  0xfd   : > { %2538 = vmatmul.msk.f32.gmra.mxu2 %vm272_vm0, %v1311_v4  ;;  %2556 = vmatmul.msk.f32.gmra.mxu3 %vm272_vm0, %v1311_v4 }
  0xff   : > { %2594 = vmatpush.xpose.msk.msrb.mxu0 %vm272_vm0, %v3985_v35  ;;  %2612 = vmatpush.xpose.msk.msrb.mxu1 %vm272_vm0, %v3986_v38 }
 0x100   : > { %2664 = vmatpush.xpose.msk.msrb.mxu2 %vm272_vm0, %v3206_v1  ;;  %2682 = vmatpush.xpose.msk.msrb.mxu3 %vm272_vm0, %v3470_v51  ;;  %v3991_v1 = vld [vmem:[#allocation6_spill] sm:$0xff]  ;;  %v3992_v51 = vld [vmem:[#allocation7_spill] sm:$0xff] }
 0x103   : > { %2595 = vmatpush.xpose.msk.msrb.mxu0 %vm272_vm0, %v3987_v55  ;;  %2613 = vmatpush.xpose.msk.msrb.mxu1 %vm272_vm0, %v3988_v8 }
 0x104   : > { %2665 = vmatpush.xpose.msk.msrb.mxu2 %vm272_vm0, %v2881_v5  ;;  %2683 = vmatpush.xpose.msk.msrb.mxu3 %vm272_vm0, %v2884_v6  ;;  %v3993_v5 = vld [vmem:[#allocation8_spill] sm:$0xff]  ;;  %v3994_v6 = vld [vmem:[#allocation9_spill] sm:$0xff] }
 0x107   : > { %2596 = vmatpush.xpose.msk.msrb.mxu0 %vm272_vm0, %v3989_v17  ;;  %2614 = vmatpush.xpose.msk.msrb.mxu1 %vm272_vm0, %v3990_v58 }
 0x108   : > { %2666 = vmatpush.xpose.msk.msrb.mxu2 %vm272_vm0, %v2900_v10  ;;  %2684 = vmatpush.xpose.msk.msrb.mxu3 %vm272_vm0, %v2903_v11  ;;  %v3995_v10 = vld [vmem:[#allocation10_spill] sm:$0xff]  ;;  %v3996_v11 = vld [vmem:[#allocation11_spill] sm:$0xff] }
 0x10b   : > { %2597 = vmatpush.xpose.msk.msrb.mxu0 %vm272_vm0, %v3991_v1  ;;  %2615 = vmatpush.xpose.msk.msrb.mxu1 %vm272_vm0, %v3992_v51 }
 0x10c   : > { %2667 = vmatpush.xpose.msk.msrb.mxu2 %vm272_vm0, %v2920_v14  ;;  %2685 = vmatpush.xpose.msk.msrb.mxu3 %vm272_vm0, %v2923_v15  ;;  %v3997_v14 = vld [vmem:[#allocation12_spill] sm:$0xff]  ;;  %v3998_v15 = vld [vmem:[#allocation13_spill] sm:$0xff] }
 0x10f   : > { %2598 = vmatpush.xpose.msk.msrb.mxu0 %vm272_vm0, %v3993_v5  ;;  %2616 = vmatpush.xpose.msk.msrb.mxu1 %vm272_vm0, %v3994_v6 }
 0x110   : > { %2668 = vmatpush.xpose.msk.msrb.mxu2 %vm272_vm0, %v2949_v21  ;;  %2686 = vmatpush.xpose.msk.msrb.mxu3 %vm272_vm0, %v2952_v22  ;;  %v3999_v21 = vld [vmem:[#allocation14_spill] sm:$0xff]  ;;  %v4000_v22 = vld [vmem:[#allocation15_spill] sm:$0xff] }
 0x113   : > { %2599 = vmatpush.xpose.msk.msrb.mxu0 %vm272_vm0, %v3995_v10  ;;  %2617 = vmatpush.xpose.msk.msrb.mxu1 %vm272_vm0, %v3996_v11 }
 0x114   : > { %2669 = vmatpush.xpose.msk.msrb.mxu2 %vm272_vm0, %v2969_v25  ;;  %2687 = vmatpush.xpose.msk.msrb.mxu3 %vm272_vm0, %v2972_v26  ;;  %v4001_v25 = vld [vmem:[#allocation16_spill] sm:$0xff]  ;;  %v4002_v26 = vld [vmem:[#allocation17_spill] sm:$0xff] }
 0x117   : > { %2600 = vmatpush.xpose.msk.msrb.mxu0 %vm272_vm0, %v3997_v14  ;;  %2618 = vmatpush.xpose.msk.msrb.mxu1 %vm272_vm0, %v3998_v15 }
 0x118   : > { %2670 = vmatpush.xpose.msk.msrb.mxu2 %vm272_vm0, %v2998_v32  ;;  %2688 = vmatpush.xpose.msk.msrb.mxu3 %vm272_vm0, %v3001_v33  ;;  %v4003_v32 = vld [vmem:[#allocation18_spill] sm:$0xff]  ;;  %v4004_v33 = vld [vmem:[#allocation19_spill] sm:$0xff] }
 0x11b   : > { %2601 = vmatpush.xpose.msk.msrb.mxu0 %vm272_vm0, %v3999_v21  ;;  %2619 = vmatpush.xpose.msk.msrb.mxu1 %vm272_vm0, %v4000_v22 }
 0x11c   : > { %2671 = vmatpush.xpose.msk.msrb.mxu2 %vm272_vm0, %v3018_v36  ;;  %2689 = vmatpush.xpose.msk.msrb.mxu3 %vm272_vm0, %v3021_v37  ;;  %v4005_v36 = vld [vmem:[#allocation20_spill] sm:$0xff]  ;;  %v4006_v37 = vld [vmem:[#allocation21_spill] sm:$0xff] }
 0x11f   : > { %2602 = vmatpush.xpose.msk.msrb.mxu0 %vm272_vm0, %v4001_v25  ;;  %2620 = vmatpush.xpose.msk.msrb.mxu1 %vm272_vm0, %v4002_v26 }
 0x120   : > { %2672 = vmatpush.xpose.msk.msrb.mxu2 %vm272_vm0, %v3038_v40  ;;  %2690 = vmatpush.xpose.msk.msrb.mxu3 %vm272_vm0, %v3041_v41  ;;  %v4007_v40 = vld [vmem:[#allocation22_spill] sm:$0xff]  ;;  %v4008_v41 = vld [vmem:[#allocation23_spill] sm:$0xff] }
 0x123   : > { %2603 = vmatpush.xpose.msk.msrb.mxu0 %vm272_vm0, %v4003_v32  ;;  %2621 = vmatpush.xpose.msk.msrb.mxu1 %vm272_vm0, %v4004_v33 }
 0x124   : > { %2673 = vmatpush.xpose.msk.msrb.mxu2 %vm272_vm0, %v3058_v44  ;;  %2691 = vmatpush.xpose.msk.msrb.mxu3 %vm272_vm0, %v3061_v45  ;;  %v1530_v44 = vpop.trf.xlu1  ;;  %v4009_v45 = vld [vmem:[#allocation24_spill] sm:$0xff] }
 0x127   : > { %2604 = vmatpush.xpose.msk.msrb.mxu0 %vm272_vm0, %v4005_v36  ;;  %2622 = vmatpush.xpose.msk.msrb.mxu1 %vm272_vm0, %v4006_v37 }
 0x128   : > { %2674 = vmatpush.xpose.msk.msrb.mxu2 %vm272_vm0, %v3078_v48  ;;  %2692 = vmatpush.xpose.msk.msrb.mxu3 %vm272_vm0, %v3081_v49  ;;  %v4010_v48 = vld [vmem:[#allocation25_spill] sm:$0xff]  ;;  %v2728_v49 = vld [vmem:[%s2878_s27 + $0x1a2] sm:$0xff] }
 0x12b   : > { %2605 = vmatpush.xpose.msk.msrb.mxu0 %vm272_vm0, %v4007_v40  ;;  %2623 = vmatpush.xpose.msk.msrb.mxu1 %vm272_vm0, %v4008_v41 }
 0x12c   : > { %2675 = vmatpush.xpose.msk.msrb.mxu2 %vm272_vm0, %v3098_v52  ;;  %2693 = vmatpush.xpose.msk.msrb.mxu3 %vm272_vm0, %v3101_v53  ;;  %v2727_v52 = vld [vmem:[%s2878_s27 + $0x19a] sm:$0xff] }
 0x12d   : > { %v4011_v53 = vld [vmem:[#allocation38_spill] sm:$0xff] }
 0x12f   : > { %2606 = vmatpush.xpose.msk.msrb.mxu0 %vm272_vm0, %v4009_v45  ;;  %2624 = vmatpush.xpose.msk.msrb.mxu1 %vm272_vm0, %v4010_v48 }
 0x130   : > { %2676 = vmatpush.xpose.msk.msrb.mxu2 %vm272_vm0, %v3118_v56  ;;  %2694 = vmatpush.xpose.msk.msrb.mxu3 %vm272_vm0, %v3121_v57  ;;  %v1750_v56 = vpop.trf.xlu0 }
 0x132   : > { %2607 = vmatmul.msk.f32.vlgmr.msrb.gmra.mxu0 %vm272_vm0, %v1530_v44  ;;  %2625 = vmatmul.msk.f32.vlgmr.msrb.gmra.mxu1 %vm272_vm0, %v1530_v44 }
 0x133   : > { %2731 = vmatpush.xpose.msk.msra.mxu0 %vm272_vm0, %v3395_v42  ;;  %2749 = vmatpush.xpose.msk.msra.mxu1 %vm272_vm0, %v2728_v49 }
 0x134   : > { %2770 = vmatpush.xpose.msk.msra.mxu2 %vm272_vm0, %v3395_v42  ;;  %2786 = vmatpush.xpose.msk.msra.mxu3 %vm272_vm0, %v2728_v49  ;;  %v1531_v42 = vpop.trf.xlu1 }
 0x135   : > { %2677 = vmatmul.msk.f32.vlgmr.msrb.gmra.mxu2 %vm272_vm0, %v1749_v50  ;;  %2695 = vmatmul.msk.f32.vlgmr.msrb.gmra.mxu3 %vm272_vm0, %v1749_v50  ;;  %v572_v57 = vpop.f32.mrf.mxu2 }
 0x137   : > { %2732 = vmatpush.xpose.msk.msra.mxu0 %vm272_vm0, %v3409_v46  ;;  %2750 = vmatpush.xpose.msk.msra.mxu1 %vm272_vm0, %v2727_v52 }
 0x138   : > { %2771 = vmatpush.xpose.msk.msra.mxu2 %vm272_vm0, %v3409_v46  ;;  %2787 = vmatpush.xpose.msk.msra.mxu3 %vm272_vm0, %v2727_v52  ;;  %v2827_v46 = vmov 0  }
 0x139   : > { %2815 = vset.pattern.permute.xlu1 %v2827_v46  ;;  %2814 = vset.pattern.permute.xlu0 %v2827_v46 }
 0x13a   : > { %2608 = vmatmul.msk.f32.gmra.mxu0 %vm272_vm0, %v1531_v42  ;;  %2626 = vmatmul.msk.f32.gmra.mxu1 %vm272_vm0, %v1531_v42 }
 0x13b   : > { %2733 = vmatpush.xpose.msk.msra.mxu0 %vm272_vm0, %v4011_v53  ;;  %2751 = vmatpush.xpose.msk.msra.mxu1 %vm272_vm0, %v3454_v54 }
 0x13c   : > { %2772 = vmatpush.xpose.msk.msra.mxu2 %vm272_vm0, %v4011_v53  ;;  %2788 = vmatpush.xpose.msk.msra.mxu3 %vm272_vm0, %v3454_v54  ;;  %v415_v54 = vpop.f32.mrf.mxu1 }
 0x13d   : > { %2678 = vmatmul.msk.f32.gmra.mxu2 %vm272_vm0, %v1750_v56  ;;  %2696 = vmatmul.msk.f32.gmra.mxu3 %vm272_vm0, %v1750_v56 }
 0x13f   : > { %2734 = vmatpush.xpose.msk.msra.mxu0 %vm272_vm0, %v3440_v59  ;;  %2752 = vmatpush.xpose.msk.msra.mxu1 %vm272_vm0, %v3473_v62 }
 0x140   : > { %2773 = vmatpush.xpose.msk.msra.mxu2 %vm272_vm0, %v3440_v59  ;;  %2789 = vmatpush.xpose.msk.msra.mxu3 %vm272_vm0, %v3473_v62  ;;  %v595_v59 = vpop.f32.mrf.mxu3 }
 0x141   : > { %v596_v1 = vadd.f32 %v595_v59, %v415_v54 }
 0x143   : > { %2735 = vmatpush.xpose.msk.msra.mxu0 %vm272_vm0, %v3212_v3  ;;  %2753 = vmatpush.xpose.msk.msra.mxu1 %vm272_vm0, %v3215_v2 }
 0x144   : > { %2774 = vmatpush.xpose.msk.msra.mxu2 %vm272_vm0, %v3212_v3  ;;  %2790 = vmatpush.xpose.msk.msra.mxu3 %vm272_vm0, %v3215_v2  ;;  %v575_v2 = vpop.f32.mrf.mxu2 }
 0x147   : > { %2736 = vmatpush.xpose.msk.msra.mxu0 %vm272_vm0, %v3235_v20  ;;  %2754 = vmatpush.xpose.msk.msra.mxu1 %vm272_vm0, %v3238_v31 }
 0x148   : > { %2775 = vmatpush.xpose.msk.msra.mxu2 %vm272_vm0, %v3235_v20  ;;  %2791 = vmatpush.xpose.msk.msra.mxu3 %vm272_vm0, %v3238_v31  ;;  %v598_v3 = vpop.f32.mrf.mxu3 }
 0x14b   : > { %2737 = vmatpush.xpose.msk.msra.mxu0 %vm272_vm0, %v3252_v16  ;;  %2755 = vmatpush.xpose.msk.msra.mxu1 %vm272_vm0, %v3255_v60 }
 0x14c   : > { %2776 = vmatpush.xpose.msk.msra.mxu2 %vm272_vm0, %v3252_v16  ;;  %2792 = vmatpush.xpose.msk.msra.mxu3 %vm272_vm0, %v3255_v60  ;;  %v1007_v20 = vpop.f32.mrf.mxu2 }
 0x14f   : > { %2738 = vmatpush.xpose.msk.msra.mxu0 %vm272_vm0, %v3266_v28  ;;  %2756 = vmatpush.xpose.msk.msra.mxu1 %vm272_vm0, %v3269_v27 }
 0x150   : > { %2777 = vmatpush.xpose.msk.msra.mxu2 %vm272_vm0, %v3266_v28  ;;  %2793 = vmatpush.xpose.msk.msra.mxu3 %vm272_vm0, %v3269_v27  ;;  %v1030_v31 = vpop.f32.mrf.mxu3 }
 0x153   : > { %2739 = vmatpush.xpose.msk.msra.mxu0 %vm272_vm0, %v3280_v0  ;;  %2757 = vmatpush.xpose.msk.msra.mxu1 %vm272_vm0, %v3283_v61 }
 0x154   : > { %2778 = vmatpush.xpose.msk.msra.mxu2 %vm272_vm0, %v3280_v0  ;;  %2794 = vmatpush.xpose.msk.msra.mxu3 %vm272_vm0, %v3283_v61  ;;  %v418_v61 = vpop.f32.mrf.mxu1  ;;  %v1010_v62 = vpop.f32.mrf.mxu2 }
 0x155   : > { %v599_v11 = vadd.f32 %v598_v3, %v418_v61 }
 0x157   : > { %2740 = vmatpush.xpose.msk.msra.mxu0 %vm272_vm0, %v3294_v9  ;;  %2758 = vmatpush.xpose.msk.msra.mxu1 %vm272_vm0, %v3297_v7 }
 0x158   : > { %2779 = vmatpush.xpose.msk.msra.mxu2 %vm272_vm0, %v3294_v9  ;;  %2795 = vmatpush.xpose.msk.msra.mxu3 %vm272_vm0, %v3297_v7  ;;  %v2137_v9 = vld [vmem:[%s3896_s2 + $0x8] sm:$0xff]  ;;  %v2136_v7 = vld [vmem:[%s3896_s2] sm:$0xff]  ;;  %v1033_v39 = vpop.f32.mrf.mxu3 }
 0x159   : > { %2145 = vperm.xlu1 %2815, %v2137_v9   ;;  %2140 = vperm.xlu0 %2814, %v2136_v7  }
 0x15b   : > { %2741 = vmatpush.xpose.msk.msra.mxu0 %vm272_vm0, %v3308_v13  ;;  %2759 = vmatpush.xpose.msk.msra.mxu1 %vm272_vm0, %v3311_v12 }
 0x15c   : > { %2780 = vmatpush.xpose.msk.msra.mxu2 %vm272_vm0, %v3308_v13  ;;  %2796 = vmatpush.xpose.msk.msra.mxu3 %vm272_vm0, %v3311_v12  ;;  %v1968_v12 = vpop.trf.xlu2  ;;  %v2828_v13 = vmov 1   ;;  %v810_v28 = vpop.f32.mrf.mxu1 }
 0x15d   : > { %2816 = vset.pattern.permute.xlu2 %v2828_v13  ;;  %v817_v14 = vadd.f32 %v810_v28, %v596_v1 }
 0x15e   : > { %2153 = vperm.xlu2 %2816, %v2136_v7  }
 0x15f   : > { %2742 = vmatpush.xpose.msk.msra.mxu0 %vm272_vm0, %v3322_v19  ;;  %2760 = vmatpush.xpose.msk.msra.mxu1 %vm272_vm0, %v3325_v18  ;;  %v1037_v21 = vadd.f32 %v1030_v31, %v817_v14 }
 0x160   : > { %2781 = vmatpush.xpose.msk.msra.mxu2 %vm272_vm0, %v3322_v19  ;;  %2797 = vmatpush.xpose.msk.msra.mxu3 %vm272_vm0, %v3325_v18  ;;  %v4012_v18 = vld [vmem:[#allocation34_spill] sm:$0xff]  ;;  %v4013_v19 = vld [vmem:[#allocation35_spill] sm:$0xff] }
 0x161   : > { %2817 = vset.pattern.permute.xlu1 %v2828_v13  ;;  %2818 = vset.pattern.permute.xlu0 %v2828_v13 }
 0x162   : > { %2157 = vperm.xlu1 %2817, %v2137_v9  }
 0x163   : > { %2743 = vmatpush.xpose.msk.msra.mxu0 %vm272_vm0, %v3336_v24  ;;  %2761 = vmatpush.xpose.msk.msra.mxu1 %vm272_vm0, %v3339_v23 }
 0x164   : > { %2782 = vmatpush.xpose.msk.msra.mxu2 %vm272_vm0, %v3336_v24  ;;  %2798 = vmatpush.xpose.msk.msra.mxu3 %vm272_vm0, %v3339_v23  ;;  %v4014_v23 = vld [vmem:[#allocation36_spill] sm:$0xff]  ;;  %v1969_v24 = vpop.trf.xlu2  ;;  %v813_v16 = vpop.f32.mrf.mxu1 }
 0x165   : > { %v819_v33 = vadd.f32 %v813_v16, %v599_v11 }
 0x167   : > { %2744 = vmatpush.xpose.msk.msra.mxu0 %vm272_vm0, %v3350_v30  ;;  %2762 = vmatpush.xpose.msk.msra.mxu1 %vm272_vm0, %v3353_v29  ;;  %v1039_v45 = vadd.f32 %v1033_v39, %v819_v33 }
 0x168   : > { %2783 = vmatpush.xpose.msk.msra.mxu2 %vm272_vm0, %v3350_v30  ;;  %2799 = vmatpush.xpose.msk.msra.mxu3 %vm272_vm0, %v3353_v29  ;;  %v4015_v29 = vld [vmem:[#allocation37_spill] sm:$0xff]  ;;  %v392_v30 = vpop.f32.mrf.mxu0 }
 0x169   : > { %v573_v58 = vadd.f32 %v572_v57, %v392_v30 }
 0x16b   : > { %2745 = vmatpush.xpose.msk.msra.mxu0 %vm272_vm0, %v4012_v18  ;;  %2763 = vmatpush.xpose.msk.msra.mxu1 %vm272_vm0, %v4013_v19 }
 0x16c   : > { %2784 = vmatpush.xpose.msk.msra.mxu2 %vm272_vm0, %v4012_v18  ;;  %2800 = vmatpush.xpose.msk.msra.mxu3 %vm272_vm0, %v4013_v19 }
 0x16f   : > { %2746 = vmatpush.xpose.msk.msra.mxu0 %vm272_vm0, %v4014_v23  ;;  %2764 = vmatpush.xpose.msk.msra.mxu1 %vm272_vm0, %v4015_v29  ;;  %v1249_v47 = vpop.f32.mrf.mxu1 }
 0x170   : > { %2785 = vmatpush.xpose.msk.msra.mxu2 %vm272_vm0, %v4014_v23  ;;  %2801 = vmatpush.xpose.msk.msra.mxu3 %vm272_vm0, %v4015_v29  ;;  %v395_v60 = vpop.f32.mrf.mxu0  ;;  %v1256_v36 = vadd.f32 %v1249_v47, %v1037_v21 }
 0x171   : > { %v576_v5 = vadd.f32 %v575_v2, %v395_v60 }
 0x172   : > { %2747 = vmatmul.msk.f32.vlgmr.msra.gmra.mxu0 %vm272_vm0, %v1968_v12  ;;  %2765 = vmatmul.msk.f32.vlgmr.msra.gmra.mxu1 %vm272_vm0, %v1968_v12 }
 0x173   : > { %2748 = vmatmul.msk.f32.vlgmr.msra.gmra.mxu2 %vm272_vm0, %v1969_v24  ;;  %2766 = vmatmul.msk.f32.vlgmr.msra.gmra.mxu3 %vm272_vm0, %v1969_v24 }
 0x177   : > { %v1252_v35 = vpop.f32.mrf.mxu1 }
 0x178   : > { %v787_v27 = vpop.f32.mrf.mxu0  ;;  %v1445_v63 = vpop.f32.mrf.mxu2  ;;  %v1258_v56 = vadd.f32 %v1252_v35, %v1039_v45 }
 0x179   : > { %v1468_v34 = vpop.f32.mrf.mxu3  ;;  %v816_v6 = vadd.f32 %v787_v27, %v573_v58 }
 0x17a   : > { %v1475_v40 = vadd.f32 %v1468_v34, %v1256_v36 }
 0x17b   : > { %v1036_v15 = vadd.f32 %v1007_v20, %v816_v6 }
 0x180   : > { %v790_v0 = vpop.f32.mrf.mxu0  ;;  %v1448_v38 = vpop.f32.mrf.mxu2 }
 0x181   : > { %v1471_v55 = vpop.f32.mrf.mxu3  ;;  %v818_v25 = vadd.f32 %v790_v0, %v576_v5 }
 0x182   : > { %v1477_v19 = vadd.f32 %v1471_v55, %v1258_v56 }
 0x183   : > { %v1038_v41 = vadd.f32 %v1010_v62, %v818_v25 }
 0x188   : > { %v1226_v43 = vpop.f32.mrf.mxu0 }
 0x189   : > { %v1255_v26 = vadd.f32 %v1226_v43, %v1036_v15 }
 0x18b   : > { %v1474_v37 = vadd.f32 %v1445_v63, %v1255_v26 }
 0x190   : > { %v1229_v4 = vpop.f32.mrf.mxu0 }
 0x191   : > { %v1257_v52 = vadd.f32 %v1229_v4, %v1038_v41 }
 0x193   : > { %v1476_v12 = vadd.f32 %v1448_v38, %v1257_v52 }
 0x1af   : > { %v1665_v8 = vpop.f32.mrf.mxu0  ;;  %v1688_v17 = vpop.f32.mrf.mxu1 }
 0x1b0   : > { %v1694_v44 = vadd.f32 %v1665_v8, %v1474_v37  ;;  %v1695_v48 = vadd.f32 %v1688_v17, %v1475_v40 }
 0x1b7   : > { %v1668_v22 = vpop.f32.mrf.mxu0  ;;  %v1691_v32 = vpop.f32.mrf.mxu1 }
 0x1b8   : > { %v1884_v51 = vpop.f32.mrf.mxu2  ;;  %v1907_v10 = vpop.f32.mrf.mxu3  ;;  %v1696_v29 = vadd.f32 %v1668_v22, %v1476_v12  ;;  %v1697_v54 = vadd.f32 %v1691_v32, %v1477_v19 }
 0x1b9   : > { %v1913_v42 = vadd.f32 %v1884_v51, %v1694_v44  ;;  %v1914_v46 = vadd.f32 %v1907_v10, %v1695_v48  ;;  %v2154_v24 = vpop.permute.xlu2 %2153 }
 0x1c0   : > { %v1887_v49 = vpop.f32.mrf.mxu2  ;;  %v1910_v53 = vpop.f32.mrf.mxu3 }
 0x1c1   : > { %v1915_v59 = vadd.f32 %v1887_v49, %v1696_v29  ;;  %v1916_v61 = vadd.f32 %v1910_v53, %v1697_v54 }
 0x1cb   : > { %v2146_v50 = vpop.permute.xlu1 %2145  ;;  %v2141_v7 = vpop.permute.xlu0 %2140 }
 0x1d4   : > { %v2158_v16 = vpop.permute.xlu1 %2157 }
 0x1ef   : > { %v2103_v9 = vpop.f32.mrf.mxu0  ;;  %v2126_v18 = vpop.f32.mrf.mxu1 }
 0x1f0   : > { %v2132_v13 = vadd.f32 %v2103_v9, %v1913_v42  ;;  %v2133_v23 = vadd.f32 %v2126_v18, %v1914_v46 }
 0x1f2   : > { %v2148_v30 = vmul.f32 %v2141_v7, %v2132_v13  ;;  %v2149_v57 = vmul.f32 %v2141_v7, %v2133_v23 }
 0x1f4   : > { %v2160_v60 = vadd.f32 %v2154_v24, %v2148_v30  ;;  %v2161_v2 = vadd.f32 %v2154_v24, %v2149_v57 }
 0x1f6   : > { %v2106_v3 = vpop.f32.mrf.mxu2  ;;  %v2164_v27 = vmax.f32 %v2160_v60, 0.0  ;;  %v2129_v20 = vpop.f32.mrf.mxu3  ;;  %v2165_v31 = vmax.f32 %v2161_v2, 0.0 }
 0x1f7   : > { %v2134_v28 = vadd.f32 %v2106_v3, %v1915_v59  ;;  %v2135_v0 = vadd.f32 %v2129_v20, %v1916_v61 }
 0x1f8   : > { %2168 = vst [vmem:[%s170_s9] sm:$0xff] %v2164_v27 }
 0x1f9   : > { %v2150_v62 = vmul.f32 %v2146_v50, %v2134_v28  ;;  %2169 = vst [vmem:[%s170_s9 + $0x8] sm:$0xff] %v2165_v31  ;;  %v2151_v39 = vmul.f32 %v2146_v50, %v2135_v0 }
 0x1fb   : > { %v2162_v43 = vadd.f32 %v2158_v16, %v2150_v62  ;;  %v2163_v47 = vadd.f32 %v2158_v16, %v2151_v39 }
 0x1fd   : > { %v2166_v63 = vmax.f32 %v2162_v43, 0.0  ;;  %v2167_v34 = vmax.f32 %v2163_v47, 0.0 }
 0x1ff   : > { %2170 = vst [vmem:[%s170_s9 + $0x10] sm:$0xff] %v2166_v63 }
 0x200   : > { %2171 = vst [vmem:[%s170_s9 + $0x18] sm:$0xff] %v2167_v34 }
 0x201 PF: > { %s13_s12 = sadd.s32 1, %s2825_s12  }
 0x202   : > { %p10_p4 = scmp.ge.s32.totalorder %s13_s12, 4  }
 0x204   :  { %12 = sbr.rel (!%p10_p4) target bundleno = 1 (0x1), region = 72 }

// kernel: up_forward.6
= control target key start
LH: loop header
LB: loop body
LE: loop exit
PB: predicated region body
PF: predicated region fallthrough
CT: control target
= control target key end

     0   :  { %s5418_s18 = smov 0   ;;  %s7388_s0 = inlined_call_operand.vmem [shape: f32[2,18,18,16], index: 0, kind: input, shape index: {}]   ;;  %s7389_s1 = inlined_call_operand.vmem [shape: f32[2,18,18,16], index: 1, kind: input, shape index: {}]   ;;  %s7390_s2 = inlined_call_operand.vmem [shape: f32[9,16,16], index: 2, kind: input, shape index: {}]   ;;  %s7391_s3 = inlined_call_operand.vmem [shape: f32[9,16,16], index: 3, kind: input, shape index: {}]   ;;  %s7392_s4 = inlined_call_operand.vmem [shape: f32[16,2], index: 4, kind: input, shape index: {}]   ;;  %s7393_s5 = inlined_call_operand.vmem [shape: f32[2,16,256], index: 5, kind: output, shape index: {}]  }
   0x1 LB: > { %s4285_s19 = sadd.s32 4294967295, %s5384_s18   ;;  %p4289_p0 = scmp.ge.s32.totalorder %s5384_s18, 1  ;;  %s5384_s18 = sphi %s5418_s18, %s15_s18  }
   0x2   : > { %p197_p1 = scmp.lt.s32.totalorder %s5384_s18, 3 }
   0x4   : > { %p198_p2 = pnand %p4289_p0, %p197_p1 }
   0x6   : > { %201 = sbr.rel (%p198_p2) target bundleno = 777 (0x309), region = 40 }
   0xb   : > { %v4294_v0 = vld [vmem:[%s7390_s2 + $0x10] sm:$0xff]  ;;  %v277_v1 = vld [vmem:[%s7390_s2] sm:$0xff]  ;;  %p230_p3 = scmp.lt.s32.totalorder %s4285_s19, 1  ;;  %vm346_vm0 = vcmask 130048   ;;  %v4295_v3 = vld [vmem:[%s7390_s2 + $0x18] sm:$0xff] }
   0xc   : > { %314 = vxpose.xlu1.b32.start [1/2] (short) (narrow) %v4294_v0, 16  ;;  %495 = vxpose.xlu0.b32.start [1/2] (short) (narrow) %v277_v1, 16  ;;  %v4438_v2 = vld [vmem:[%s7390_s2 + $0x30] sm:$0xff]  ;;  %v278_v4 = vld [vmem:[%s7390_s2 + $0x8] sm:$0xff]  ;;  %v4439_v8 = vld [vmem:[%s7390_s2 + $0x38] sm:$0xff] }
   0xd   : > { %s7621_s19 = smov (!%p230_p3, %s4285_s19), 1  ;;  %930 = vxpose.xlu2.b32.start [1/2] (short) (narrow) %v4438_v2, 16  ;;  %v4368_v16 = vld [vmem:[%s7390_s2 + $0x20] sm:$0xff]  ;;  %v4578_v17 = vld [vmem:[%s7390_s2 + $0x50] sm:$0xff]  ;;  %v4369_v27 = vld [vmem:[%s7390_s2 + $0x28] sm:$0xff] }
   0xe   : > { %s5361_s26 = smul.u32 432, %s7621_s19  ;;  %v4508_v20 = vld [vmem:[%s7390_s2 + $0x40] sm:$0xff]  ;;  %v4579_v28 = vld [vmem:[%s7390_s2 + $0x58] sm:$0xff]  ;;  %v4509_v31 = vld [vmem:[%s7390_s2 + $0x48] sm:$0xff]  ;;  %s5360_s13 = sshll.u32 %s7621_s19, 5 }
   0xf   : > { %v4648_v0 = vld [vmem:[%s7390_s2 + $0x60] sm:$0xff]  ;;  %v4718_v1 = vld [vmem:[%s7390_s2 + $0x70] sm:$0xff] }
  0x10   : > { %s5449_s8 = scalar_lea.vmem %s7388_s0, %s5361_s26  ;;  %s6337_s15 = scalar_lea.vmem %s7389_s1, %s5361_s26 }
  0x11   : > { %v5452_v5 = vld [vmem:[%s5449_s8 + $0xb1] sm:$0xff]  ;;  %v5471_v10 = vld [vmem:[%s5449_s8 + $0xa9] sm:$0xff]  ;;  %v5491_v14 = vld [vmem:[%s5449_s8 + $0x99] sm:$0xff]  ;;  %s244_s26 = scalar_lea.vmem %s7393_s5, %s5360_s13 }
  0x12   : > { %v5455_v6 = vld [vmem:[%s5449_s8 + $0x171] sm:$0xff]  ;;  %4296 = vmatpush.xpose.msk.msra.mxu0 %vm346_vm0, %v5452_v5  ;;  %v5474_v11 = vld [vmem:[%s5449_s8 + $0x169] sm:$0xff]  ;;  %v5494_v15 = vld [vmem:[%s5449_s8 + $0x159] sm:$0xff] }
  0x13   : > { %v5458_v7 = vld [vmem:[%s5449_s8 + $0xb0] sm:$0xff]  ;;  %4314 = vmatpush.xpose.msk.msra.mxu1 %vm346_vm0, %v5455_v6  ;;  %v5481_v12 = vld [vmem:[%s5449_s8 + $0xa8] sm:$0xff]  ;;  %v5507_v18 = vld [vmem:[%s5449_s8 + $0x98] sm:$0xff] }
  0x14   : > { %7478 = vst [vmem:[#allocation2_spill] sm:$0xff] %v5458_v7  ;;  %v5468_v9 = vld [vmem:[%s5449_s8 + $0x170] sm:$0xff]  ;;  %315 = vxpose.xlu1.b32.end [2/2] (short) (narrow) %v4295_v3, 16  ;;  %496 = vxpose.xlu0.b32.end [2/2] (short) (narrow) %v278_v4, 16  ;;  %v5484_v13 = vld [vmem:[%s5449_s8 + $0x168] sm:$0xff]  ;;  %v5510_v19 = vld [vmem:[%s5449_s8 + $0x158] sm:$0xff] }
  0x15   : > { %7479 = vst [vmem:[#allocation3_spill] sm:$0xff] %v5468_v9  ;;  %4332 = vmatpush.xpose.msk.msra.mxu2 %vm346_vm0, %v5458_v7  ;;  %4350 = vmatpush.xpose.msk.msra.mxu3 %vm346_vm0, %v5468_v9  ;;  %v5520_v21 = vld [vmem:[%s5449_s8 + $0x91] sm:$0xff]  ;;  %v5540_v25 = vld [vmem:[%s5449_s8 + $0x81] sm:$0xff]  ;;  %v5569_v32 = vld [vmem:[%s5449_s8 + $0x79] sm:$0xff] }
  0x16   : > { %931 = vxpose.xlu2.b32.end [2/2] (short) (narrow) %v4439_v8, 16  ;;  %7480 = vst [vmem:[#allocation4_spill] sm:$0xff] %v5481_v12  ;;  %4297 = vmatpush.xpose.msk.msra.mxu0 %vm346_vm0, %v5471_v10  ;;  %v5523_v22 = vld [vmem:[%s5449_s8 + $0x151] sm:$0xff]  ;;  %v5543_v26 = vld [vmem:[%s5449_s8 + $0x141] sm:$0xff]  ;;  %v5572_v33 = vld [vmem:[%s5449_s8 + $0x139] sm:$0xff] }
  0x17   : > { %7481 = vst [vmem:[#allocation5_spill] sm:$0xff] %v5484_v13  ;;  %4315 = vmatpush.xpose.msk.msra.mxu1 %vm346_vm0, %v5474_v11  ;;  %v5530_v23 = vld [vmem:[%s5449_s8 + $0x90] sm:$0xff]  ;;  %v5556_v29 = vld [vmem:[%s5449_s8 + $0x80] sm:$0xff]  ;;  %v5579_v34 = vld [vmem:[%s5449_s8 + $0x78] sm:$0xff] }
  0x18   : > { %7482 = vst [vmem:[#allocation6_spill] sm:$0xff] %v5507_v18  ;;  %v5533_v24 = vld [vmem:[%s5449_s8 + $0x150] sm:$0xff]  ;;  %v5559_v30 = vld [vmem:[%s5449_s8 + $0x140] sm:$0xff]  ;;  %v5582_v35 = vld [vmem:[%s5449_s8 + $0x138] sm:$0xff] }
  0x19   : > { %4333 = vmatpush.xpose.msk.msra.mxu2 %vm346_vm0, %v5481_v12  ;;  %4351 = vmatpush.xpose.msk.msra.mxu3 %vm346_vm0, %v5484_v13  ;;  %7483 = vst [vmem:[#allocation7_spill] sm:$0xff] %v5510_v19  ;;  %v5589_v36 = vld [vmem:[%s5449_s8 + $0x69] sm:$0xff]  ;;  %v5609_v40 = vld [vmem:[%s5449_s8 + $0x61] sm:$0xff]  ;;  %v5629_v44 = vld [vmem:[%s5449_s8 + $0x51] sm:$0xff] }
  0x1a   : > { %4298 = vmatpush.xpose.msk.msra.mxu0 %vm346_vm0, %v5491_v14  ;;  %7484 = vst [vmem:[#allocation8_spill] sm:$0xff] %v5530_v23  ;;  %v5592_v37 = vld [vmem:[%s5449_s8 + $0x129] sm:$0xff]  ;;  %v5612_v41 = vld [vmem:[%s5449_s8 + $0x121] sm:$0xff]  ;;  %v5632_v45 = vld [vmem:[%s5449_s8 + $0x111] sm:$0xff] }
  0x1b   : > { %4316 = vmatpush.xpose.msk.msra.mxu1 %vm346_vm0, %v5494_v15  ;;  %7485 = vst [vmem:[#allocation9_spill] sm:$0xff] %v5533_v24  ;;  %v5599_v38 = vld [vmem:[%s5449_s8 + $0x68] sm:$0xff]  ;;  %v5619_v42 = vld [vmem:[%s5449_s8 + $0x60] sm:$0xff]  ;;  %v5639_v46 = vld [vmem:[%s5449_s8 + $0x50] sm:$0xff] }
  0x1c   : > { %710 = vxpose.xlu0.b32.start [1/2] (short) (narrow) %v4368_v16, 16  ;;  %1368 = vxpose.xlu1.b32.start [1/2] (short) (narrow) %v4578_v17, 16  ;;  %7486 = vst [vmem:[#allocation10_spill] sm:$0xff] %v5556_v29  ;;  %v5602_v39 = vld [vmem:[%s5449_s8 + $0x128] sm:$0xff]  ;;  %v5622_v43 = vld [vmem:[%s5449_s8 + $0x120] sm:$0xff]  ;;  %v5642_v47 = vld [vmem:[%s5449_s8 + $0x110] sm:$0xff] }
  0x1d   : > { %4334 = vmatpush.xpose.msk.msra.mxu2 %vm346_vm0, %v5507_v18  ;;  %4352 = vmatpush.xpose.msk.msra.mxu3 %vm346_vm0, %v5510_v19  ;;  %7487 = vst [vmem:[#allocation11_spill] sm:$0xff] %v5559_v30  ;;  %v5649_v48 = vld [vmem:[%s5449_s8 + $0x49] sm:$0xff]  ;;  %v5669_v52 = vld [vmem:[%s5449_s8 + $0x39] sm:$0xff]  ;;  %v5689_v56 = vld [vmem:[%s5449_s8 + $0x31] sm:$0xff] }
  0x1e   : > { %1149 = vxpose.xlu2.b32.start [1/2] (short) (narrow) %v4508_v20, 16  ;;  %4299 = vmatpush.xpose.msk.msra.mxu0 %vm346_vm0, %v5520_v21  ;;  %7488 = vst [vmem:[#allocation12_spill] sm:$0xff] %v5579_v34  ;;  %v5652_v49 = vld [vmem:[%s5449_s8 + $0x109] sm:$0xff]  ;;  %v5672_v53 = vld [vmem:[%s5449_s8 + $0xf9] sm:$0xff]  ;;  %v5692_v57 = vld [vmem:[%s5449_s8 + $0xf1] sm:$0xff] }
  0x1f   : > { %4317 = vmatpush.xpose.msk.msra.mxu1 %vm346_vm0, %v5523_v22  ;;  %7489 = vst [vmem:[#allocation13_spill] sm:$0xff] %v5582_v35  ;;  %v5659_v50 = vld [vmem:[%s5449_s8 + $0x48] sm:$0xff]  ;;  %v5679_v54 = vld [vmem:[%s5449_s8 + $0x38] sm:$0xff]  ;;  %v5699_v58 = vld [vmem:[%s5449_s8 + $0x30] sm:$0xff] }
  0x20   : > { %7490 = vst [vmem:[#allocation14_spill] sm:$0xff] %v5599_v38  ;;  %v5662_v51 = vld [vmem:[%s5449_s8 + $0x108] sm:$0xff]  ;;  %v5682_v55 = vld [vmem:[%s5449_s8 + $0xf8] sm:$0xff]  ;;  %v5702_v59 = vld [vmem:[%s5449_s8 + $0xf0] sm:$0xff] }
  0x21   : > { %4335 = vmatpush.xpose.msk.msra.mxu2 %vm346_vm0, %v5530_v23  ;;  %4353 = vmatpush.xpose.msk.msra.mxu3 %vm346_vm0, %v5533_v24  ;;  %7491 = vst [vmem:[#allocation15_spill] sm:$0xff] %v5602_v39  ;;  %v5709_v60 = vld [vmem:[%s5449_s8 + $0x21] sm:$0xff]  ;;  %v5735_v2 = vld [vmem:[%s5449_s8 + $0x19] sm:$0xff]  ;;  %v280_v16 = vld [vmem:[%s5449_s8 + $0x9] sm:$0xff] }
  0x22   : > { %4300 = vmatpush.xpose.msk.msra.mxu0 %vm346_vm0, %v5540_v25  ;;  %7492 = vst [vmem:[#allocation16_spill] sm:$0xff] %v5619_v42  ;;  %v5712_v61 = vld [vmem:[%s5449_s8 + $0xe1] sm:$0xff]  ;;  %v5738_v3 = vld [vmem:[%s5449_s8 + $0xd9] sm:$0xff]  ;;  %v5756_v17 = vld [vmem:[%s5449_s8 + $0xc9] sm:$0xff] }
  0x23   : > { %4318 = vmatpush.xpose.msk.msra.mxu1 %vm346_vm0, %v5543_v26  ;;  %7493 = vst [vmem:[#allocation17_spill] sm:$0xff] %v5622_v43  ;;  %v5719_v62 = vld [vmem:[%s5449_s8 + $0x20] sm:$0xff]  ;;  %v5745_v4 = vld [vmem:[%s5449_s8 + $0x18] sm:$0xff]  ;;  %v246_v20 = vld [vmem:[%s5449_s8 + $0x8] sm:$0xff] }
  0x24   : > { %711 = vxpose.xlu0.b32.end [2/2] (short) (narrow) %v4369_v27, 16  ;;  %1369 = vxpose.xlu1.b32.end [2/2] (short) (narrow) %v4579_v28, 16  ;;  %7494 = vst [vmem:[#allocation18_spill] sm:$0xff] %v5639_v46  ;;  %v5722_v63 = vld [vmem:[%s5449_s8 + $0xe0] sm:$0xff]  ;;  %v5748_v8 = vld [vmem:[%s5449_s8 + $0xd8] sm:$0xff]  ;;  %v5764_v27 = vld [vmem:[%s5449_s8 + $0xc8] sm:$0xff] }
  0x25   : > { %4336 = vmatpush.xpose.msk.msra.mxu2 %vm346_vm0, %v5556_v29  ;;  %4354 = vmatpush.xpose.msk.msra.mxu3 %vm346_vm0, %v5559_v30  ;;  %7495 = vst [vmem:[#allocation19_spill] sm:$0xff] %v5642_v47  ;;  %v4649_v28 = vld [vmem:[%s7390_s2 + $0x68] sm:$0xff] }
  0x26   : > { %1150 = vxpose.xlu2.b32.end [2/2] (short) (narrow) %v4509_v31, 16  ;;  %4301 = vmatpush.xpose.msk.msra.mxu0 %vm346_vm0, %v5569_v32  ;;  %7496 = vst [vmem:[#allocation20_spill] sm:$0xff] %v5659_v50  ;;  %v4719_v31 = vld [vmem:[%s7390_s2 + $0x78] sm:$0xff] }
  0x27   : > { %4319 = vmatpush.xpose.msk.msra.mxu1 %vm346_vm0, %v5572_v33  ;;  %7497 = vst [vmem:[#allocation21_spill] sm:$0xff] %v5662_v51 }
  0x28   : > { %7498 = vst [vmem:[#allocation22_spill] sm:$0xff] %v5679_v54 }
  0x29   : > { %4337 = vmatpush.xpose.msk.msra.mxu2 %vm346_vm0, %v5579_v34  ;;  %4355 = vmatpush.xpose.msk.msra.mxu3 %vm346_vm0, %v5582_v35  ;;  %7499 = vst [vmem:[#allocation23_spill] sm:$0xff] %v5682_v55 }
  0x2a   : > { %4302 = vmatpush.xpose.msk.msra.mxu0 %vm346_vm0, %v5589_v36  ;;  %7500 = vst [vmem:[#allocation24_spill] sm:$0xff] %v5699_v58 }
  0x2b   : > { %4320 = vmatpush.xpose.msk.msra.mxu1 %vm346_vm0, %v5592_v37  ;;  %7501 = vst [vmem:[#allocation25_spill] sm:$0xff] %v5702_v59 }
  0x2c   : > { %7502 = vst [vmem:[#allocation26_spill] sm:$0xff] %v5709_v60  ;;  %1588 = vxpose.xlu1.b32.start [1/2] (short) (narrow) %v4648_v0, 16  ;;  %1807 = vxpose.xlu0.b32.start [1/2] (short) (narrow) %v4718_v1, 16  ;;  %v279_v0 = vld [vmem:[%s5449_s8 + $0x1] sm:$0xff] }
  0x2d   : > { %4338 = vmatpush.xpose.msk.msra.mxu2 %vm346_vm0, %v5599_v38  ;;  %4356 = vmatpush.xpose.msk.msra.mxu3 %vm346_vm0, %v5602_v39  ;;  %7503 = vst [vmem:[#allocation27_spill] sm:$0xff] %v5712_v61  ;;  %v5777_v1 = vld [vmem:[%s5449_s8 + $0xc1] sm:$0xff] }
  0x2e   : > { %4303 = vmatpush.xpose.msk.msra.mxu0 %vm346_vm0, %v5609_v40  ;;  %7504 = vst [vmem:[#allocation28_spill] sm:$0xff] %v5735_v2 }
  0x2f   : > { %4321 = vmatpush.xpose.msk.msra.mxu1 %vm346_vm0, %v5612_v41  ;;  %7505 = vst [vmem:[#allocation29_spill] sm:$0xff] %v5738_v3 }
  0x30   : > { %7506 = vst [vmem:[#allocation30_spill] sm:$0xff] %v5764_v27 }
  0x31   : > { %4339 = vmatpush.xpose.msk.msra.mxu2 %vm346_vm0, %v5619_v42  ;;  %4357 = vmatpush.xpose.msk.msra.mxu3 %vm346_vm0, %v5622_v43 }
  0x32   : > { %4304 = vmatpush.xpose.msk.msra.mxu0 %vm346_vm0, %v5629_v44 }
  0x33   : > { %4322 = vmatpush.xpose.msk.msra.mxu1 %vm346_vm0, %v5632_v45 }
  0x34   : > { %1589 = vxpose.xlu1.b32.end [2/2] (short) (narrow) %v4649_v28, 16  ;;  %1808 = vxpose.xlu0.b32.end [2/2] (short) (narrow) %v4719_v31, 16  ;;  %v5796_v28 = vld [vmem:[%s5449_s8 + $0x188] sm:$0xff] }
  0x35   : > { %4340 = vmatpush.xpose.msk.msra.mxu2 %vm346_vm0, %v5639_v46  ;;  %4358 = vmatpush.xpose.msk.msra.mxu3 %vm346_vm0, %v5642_v47  ;;  %7508 = vst [vmem:[#allocation32_spill] sm:$0xff] %v5796_v28  ;;  %v5809_v31 = vld [vmem:[%s5449_s8 + $0x16a] sm:$0xff] }
  0x36   : > { %4305 = vmatpush.xpose.msk.msra.mxu0 %vm346_vm0, %v5649_v48 }
  0x37   : > { %4323 = vmatpush.xpose.msk.msra.mxu1 %vm346_vm0, %v5652_v49 }
  0x39   : > { %4341 = vmatpush.xpose.msk.msra.mxu2 %vm346_vm0, %v5659_v50  ;;  %4359 = vmatpush.xpose.msk.msra.mxu3 %vm346_vm0, %v5662_v51 }
  0x3a   : > { %4306 = vmatpush.xpose.msk.msra.mxu0 %vm346_vm0, %v5669_v52 }
  0x3b   : > { %4324 = vmatpush.xpose.msk.msra.mxu1 %vm346_vm0, %v5672_v53 }
  0x3d   : > { %4342 = vmatpush.xpose.msk.msra.mxu2 %vm346_vm0, %v5679_v54  ;;  %4360 = vmatpush.xpose.msk.msra.mxu3 %vm346_vm0, %v5682_v55 }
  0x3e   : > { %4307 = vmatpush.xpose.msk.msra.mxu0 %vm346_vm0, %v5689_v56 }
  0x3f   : > { %4325 = vmatpush.xpose.msk.msra.mxu1 %vm346_vm0, %v5692_v57 }
  0x41   : > { %4343 = vmatpush.xpose.msk.msra.mxu2 %vm346_vm0, %v5699_v58  ;;  %4361 = vmatpush.xpose.msk.msra.mxu3 %vm346_vm0, %v5702_v59 }
  0x42   : > { %4308 = vmatpush.xpose.msk.msra.mxu0 %vm346_vm0, %v5709_v60  ;;  %v5826_v60 = vld [vmem:[%s5449_s8 + $0x15a] sm:$0xff] }
  0x43   : > { %4326 = vmatpush.xpose.msk.msra.mxu1 %vm346_vm0, %v5712_v61  ;;  %v5790_v61 = vld [vmem:[%s5449_s8 + $0xc0] sm:$0xff] }
  0x44   : > { %7507 = vst [vmem:[#allocation31_spill] sm:$0xff] %v5790_v61 }
  0x45   : > { %4344 = vmatpush.xpose.msk.msra.mxu2 %vm346_vm0, %v5719_v62  ;;  %4362 = vmatpush.xpose.msk.msra.mxu3 %vm346_vm0, %v5722_v63 }
  0x46   : > { %4309 = vmatpush.xpose.msk.msra.mxu0 %vm346_vm0, %v5735_v2  ;;  %v5786_v2 = vld [vmem:[%s5449_s8 + $0x172] sm:$0xff] }
  0x47   : > { %4327 = vmatpush.xpose.msk.msra.mxu1 %vm346_vm0, %v5738_v3  ;;  %v5783_v3 = vld [vmem:[%s5449_s8 + $0xb2] sm:$0xff] }
  0x49   : > { %4345 = vmatpush.xpose.msk.msra.mxu2 %vm346_vm0, %v5745_v4  ;;  %4363 = vmatpush.xpose.msk.msra.mxu3 %vm346_vm0, %v5748_v8 }
  0x4a   : > { %4310 = vmatpush.xpose.msk.msra.mxu0 %vm346_vm0, %v280_v16  ;;  %v245_v16 = vld [vmem:[%s5449_s8] sm:$0xff] }
  0x4b   : > { %4328 = vmatpush.xpose.msk.msra.mxu1 %vm346_vm0, %v5756_v17 }
  0x4d   : > { %4346 = vmatpush.xpose.msk.msra.mxu2 %vm346_vm0, %v246_v20  ;;  %4364 = vmatpush.xpose.msk.msra.mxu3 %vm346_vm0, %v5764_v27  ;;  %v5806_v20 = vld [vmem:[%s5449_s8 + $0xaa] sm:$0xff] }
  0x4e   : > { %4311 = vmatpush.xpose.msk.msra.mxu0 %vm346_vm0, %v279_v0  ;;  %v5816_v0 = vld [vmem:[%s5449_s8 + $0x180] sm:$0xff] }
  0x4f   : > { %4329 = vmatpush.xpose.msk.msra.mxu1 %vm346_vm0, %v5777_v1  ;;  %7509 = vst [vmem:[#allocation33_spill] sm:$0xff] %v5816_v0 }
  0x51   : > { %4347 = vmatpush.xpose.msk.msra.mxu2 %vm346_vm0, %v245_v16  ;;  %4365 = vmatpush.xpose.msk.msra.mxu3 %vm346_vm0, %v5790_v61  ;;  %v5823_v16 = vld [vmem:[%s5449_s8 + $0x9a] sm:$0xff] }
  0x52   : > { %4370 = vmatpush.xpose.msk.msrb.mxu0 %vm346_vm0, %v5783_v3 }
  0x53   : > { %4388 = vmatpush.xpose.msk.msrb.mxu1 %vm346_vm0, %v5786_v2 }
  0x55   : > { %4440 = vmatpush.xpose.msk.msrb.mxu2 %vm346_vm0, %v5764_v27  ;;  %4458 = vmatpush.xpose.msk.msrb.mxu3 %vm346_vm0, %v5796_v28  ;;  %v5837_v28 = vld [vmem:[%s5449_s8 + $0x92] sm:$0xff] }
  0x56   : > { %4371 = vmatpush.xpose.msk.msrb.mxu0 %vm346_vm0, %v5806_v20  ;;  %v5840_v27 = vld [vmem:[%s5449_s8 + $0x152] sm:$0xff] }
  0x57   : > { %4389 = vmatpush.xpose.msk.msrb.mxu1 %vm346_vm0, %v5809_v31 }
  0x59   : > { %4441 = vmatpush.xpose.msk.msrb.mxu2 %vm346_vm0, %v5790_v61  ;;  %4459 = vmatpush.xpose.msk.msrb.mxu3 %vm346_vm0, %v5816_v0  ;;  %v5851_v0 = vld [vmem:[%s5449_s8 + $0x82] sm:$0xff] }
  0x5a   : > { %4372 = vmatpush.xpose.msk.msrb.mxu0 %vm346_vm0, %v5823_v16  ;;  %v5854_v61 = vld [vmem:[%s5449_s8 + $0x142] sm:$0xff] }
  0x5b   : > { %4390 = vmatpush.xpose.msk.msrb.mxu1 %vm346_vm0, %v5826_v60 }
  0x5d   : > { %4442 = vmatpush.xpose.msk.msrb.mxu2 %vm346_vm0, %v5458_v7  ;;  %4460 = vmatpush.xpose.msk.msrb.mxu3 %vm346_vm0, %v5468_v9  ;;  %v5865_v9 = vld [vmem:[%s5449_s8 + $0x7a] sm:$0xff] }
  0x5e   : > { %4373 = vmatpush.xpose.msk.msrb.mxu0 %vm346_vm0, %v5837_v28  ;;  %v5868_v7 = vld [vmem:[%s5449_s8 + $0x13a] sm:$0xff] }
  0x5f   : > { %4391 = vmatpush.xpose.msk.msrb.mxu1 %vm346_vm0, %v5840_v27 }
  0x61   : > { %4443 = vmatpush.xpose.msk.msrb.mxu2 %vm346_vm0, %v5481_v12  ;;  %4461 = vmatpush.xpose.msk.msrb.mxu3 %vm346_vm0, %v5484_v13  ;;  %v5879_v13 = vld [vmem:[%s5449_s8 + $0x6a] sm:$0xff] }
  0x62   : > { %4374 = vmatpush.xpose.msk.msrb.mxu0 %vm346_vm0, %v5851_v0  ;;  %v5882_v12 = vld [vmem:[%s5449_s8 + $0x12a] sm:$0xff] }
  0x63   : > { %4392 = vmatpush.xpose.msk.msrb.mxu1 %vm346_vm0, %v5854_v61 }
  0x65   : > { %4444 = vmatpush.xpose.msk.msrb.mxu2 %vm346_vm0, %v5507_v18  ;;  %4462 = vmatpush.xpose.msk.msrb.mxu3 %vm346_vm0, %v5510_v19  ;;  %v5893_v19 = vld [vmem:[%s5449_s8 + $0x62] sm:$0xff] }
  0x66   : > { %4375 = vmatpush.xpose.msk.msrb.mxu0 %vm346_vm0, %v5865_v9  ;;  %v5896_v18 = vld [vmem:[%s5449_s8 + $0x122] sm:$0xff] }
  0x67   : > { %4393 = vmatpush.xpose.msk.msrb.mxu1 %vm346_vm0, %v5868_v7 }
  0x69   : > { %4445 = vmatpush.xpose.msk.msrb.mxu2 %vm346_vm0, %v5530_v23  ;;  %4463 = vmatpush.xpose.msk.msrb.mxu3 %vm346_vm0, %v5533_v24  ;;  %v5907_v24 = vld [vmem:[%s5449_s8 + $0x52] sm:$0xff] }
  0x6a   : > { %4376 = vmatpush.xpose.msk.msrb.mxu0 %vm346_vm0, %v5879_v13  ;;  %v5910_v23 = vld [vmem:[%s5449_s8 + $0x112] sm:$0xff] }
  0x6b   : > { %4394 = vmatpush.xpose.msk.msrb.mxu1 %vm346_vm0, %v5882_v12 }
  0x6d   : > { %4446 = vmatpush.xpose.msk.msrb.mxu2 %vm346_vm0, %v5556_v29  ;;  %4464 = vmatpush.xpose.msk.msrb.mxu3 %vm346_vm0, %v5559_v30  ;;  %v5921_v30 = vld [vmem:[%s5449_s8 + $0x4a] sm:$0xff] }
  0x6e   : > { %4377 = vmatpush.xpose.msk.msrb.mxu0 %vm346_vm0, %v5893_v19  ;;  %v5924_v29 = vld [vmem:[%s5449_s8 + $0x10a] sm:$0xff] }
  0x6f   : > { %4395 = vmatpush.xpose.msk.msrb.mxu1 %vm346_vm0, %v5896_v18 }
  0x71   : > { %4447 = vmatpush.xpose.msk.msrb.mxu2 %vm346_vm0, %v5579_v34  ;;  %4465 = vmatpush.xpose.msk.msrb.mxu3 %vm346_vm0, %v5582_v35  ;;  %v5935_v35 = vld [vmem:[%s5449_s8 + $0x3a] sm:$0xff] }
  0x72   : > { %4378 = vmatpush.xpose.msk.msrb.mxu0 %vm346_vm0, %v5907_v24  ;;  %v5938_v34 = vld [vmem:[%s5449_s8 + $0xfa] sm:$0xff] }
  0x73   : > { %4396 = vmatpush.xpose.msk.msrb.mxu1 %vm346_vm0, %v5910_v23 }
  0x75   : > { %4448 = vmatpush.xpose.msk.msrb.mxu2 %vm346_vm0, %v5599_v38  ;;  %4466 = vmatpush.xpose.msk.msrb.mxu3 %vm346_vm0, %v5602_v39  ;;  %v5949_v39 = vld [vmem:[%s5449_s8 + $0x32] sm:$0xff] }
  0x76   : > { %4379 = vmatpush.xpose.msk.msrb.mxu0 %vm346_vm0, %v5921_v30  ;;  %v5952_v38 = vld [vmem:[%s5449_s8 + $0xf2] sm:$0xff] }
  0x77   : > { %4397 = vmatpush.xpose.msk.msrb.mxu1 %vm346_vm0, %v5924_v29  ;;  %7510 = vst [vmem:[#allocation34_spill] sm:$0xff] %v5952_v38 }
  0x79   : > { %4449 = vmatpush.xpose.msk.msrb.mxu2 %vm346_vm0, %v5619_v42  ;;  %4467 = vmatpush.xpose.msk.msrb.mxu3 %vm346_vm0, %v5622_v43  ;;  %v5963_v43 = vld [vmem:[%s5449_s8 + $0x22] sm:$0xff] }
  0x7a   : > { %4380 = vmatpush.xpose.msk.msrb.mxu0 %vm346_vm0, %v5935_v35  ;;  %v5966_v42 = vld [vmem:[%s5449_s8 + $0xe2] sm:$0xff] }
  0x7b   : > { %4398 = vmatpush.xpose.msk.msrb.mxu1 %vm346_vm0, %v5938_v34 }
  0x7d   : > { %4450 = vmatpush.xpose.msk.msrb.mxu2 %vm346_vm0, %v5639_v46  ;;  %4468 = vmatpush.xpose.msk.msrb.mxu3 %vm346_vm0, %v5642_v47  ;;  %v5977_v47 = vld [vmem:[%s5449_s8 + $0x1a] sm:$0xff] }
  0x7e   : > { %4381 = vmatpush.xpose.msk.msrb.mxu0 %vm346_vm0, %v5949_v39  ;;  %v5980_v46 = vld [vmem:[%s5449_s8 + $0xda] sm:$0xff] }
  0x7f   : > { %4399 = vmatpush.xpose.msk.msrb.mxu1 %vm346_vm0, %v5952_v38 }
  0x81   : > { %4451 = vmatpush.xpose.msk.msrb.mxu2 %vm346_vm0, %v5659_v50  ;;  %4469 = vmatpush.xpose.msk.msrb.mxu3 %vm346_vm0, %v5662_v51  ;;  %v676_v51 = vld [vmem:[%s5449_s8 + $0xa] sm:$0xff] }
  0x82   : > { %4382 = vmatpush.xpose.msk.msrb.mxu0 %vm346_vm0, %v5963_v43  ;;  %v5992_v50 = vld [vmem:[%s5449_s8 + $0xca] sm:$0xff] }
  0x83   : > { %4400 = vmatpush.xpose.msk.msrb.mxu1 %vm346_vm0, %v5966_v42  ;;  %7511 = vst [vmem:[#allocation35_spill] sm:$0xff] %v5992_v50 }
  0x85   : > { %4452 = vmatpush.xpose.msk.msrb.mxu2 %vm346_vm0, %v5679_v54  ;;  %4470 = vmatpush.xpose.msk.msrb.mxu3 %vm346_vm0, %v5682_v55  ;;  %v6023_v54 = vld [vmem:[%s5449_s8 + $0x189] sm:$0xff] }
  0x86   : > { %4383 = vmatpush.xpose.msk.msrb.mxu0 %vm346_vm0, %v5977_v47 }
  0x87   : > { %4401 = vmatpush.xpose.msk.msrb.mxu1 %vm346_vm0, %v5980_v46 }
  0x89   : > { %4453 = vmatpush.xpose.msk.msrb.mxu2 %vm346_vm0, %v5699_v58  ;;  %4471 = vmatpush.xpose.msk.msrb.mxu3 %vm346_vm0, %v5702_v59  ;;  %v675_v59 = vld [vmem:[%s5449_s8 + $0x2] sm:$0xff] }
  0x8a   : > { %4384 = vmatpush.xpose.msk.msrb.mxu0 %vm346_vm0, %v676_v51  ;;  %v6011_v58 = vld [vmem:[%s5449_s8 + $0xc2] sm:$0xff] }
  0x8b   : > { %4402 = vmatpush.xpose.msk.msrb.mxu1 %vm346_vm0, %v5992_v50  ;;  %v4788_v51 = vld [vmem:[%s7390_s2 + $0x80] sm:$0xff] }
  0x8c   : > { %2026 = vxpose.xlu0.b32.start [1/2] (short) (narrow) %v4788_v51, 16  ;;  %v2242_v51 = vld [vmem:[%s7391_s3] sm:$0xff] }
  0x8d   : > { %4454 = vmatpush.xpose.msk.msrb.mxu2 %vm346_vm0, %v5719_v62  ;;  %4472 = vmatpush.xpose.msk.msrb.mxu3 %vm346_vm0, %v5722_v63  ;;  %v4789_v62 = vld [vmem:[%s7390_s2 + $0x88] sm:$0xff] }
  0x8e   : > { %4385 = vmatpush.xpose.msk.msrb.mxu0 %vm346_vm0, %v675_v59  ;;  %v6028_v59 = vld [vmem:[%s5449_s8 + $0x18a] sm:$0xff]  ;;  %2244 = vxpose.xlu2.b32.start [1/2] (short) (narrow) %v2242_v51, 16 }
  0x8f   : > { %4403 = vmatpush.xpose.msk.msrb.mxu1 %vm346_vm0, %v6011_v58  ;;  %v2243_v51 = vld [vmem:[%s7391_s3 + $0x8] sm:$0xff] }
  0x91   : > { %4455 = vmatpush.xpose.msk.msrb.mxu2 %vm346_vm0, %v5745_v4  ;;  %4473 = vmatpush.xpose.msk.msrb.mxu3 %vm346_vm0, %v5748_v8 }
  0x94   : > { %2027 = vxpose.xlu0.b32.end [2/2] (short) (narrow) %v4789_v62, 16  ;;  %v6044_v62 = vld [vmem:[%s5449_s8 + $0x181] sm:$0xff] }
  0x96   : > { %2245 = vxpose.xlu2.b32.end [2/2] (short) (narrow) %v2243_v51, 16 }
  0xb0   : > { %v330_v4 = vpop.trf.xlu1  ;;  %v511_v55 = vpop.trf.xlu0 }
  0xb1   : > { %4312 = vmatmul.msk.f32.vlgmr.msra.gmra.mxu0 %vm346_vm0, %v330_v4  ;;  %4330 = vmatmul.msk.f32.vlgmr.msra.gmra.mxu1 %vm346_vm0, %v330_v4  ;;  %v6047_v4 = vld [vmem:[%s5449_s8 + $0x182] sm:$0xff] }
  0xb2   : > { %4348 = vmatmul.msk.f32.vlgmr.msra.gmra.mxu2 %vm346_vm0, %v511_v55  ;;  %4366 = vmatmul.msk.f32.vlgmr.msra.gmra.mxu3 %vm346_vm0, %v511_v55 }
  0xb3   : > { %4510 = vmatpush.xpose.msk.msra.mxu0 %vm346_vm0, %v5756_v17  ;;  %4528 = vmatpush.xpose.msk.msra.mxu1 %vm346_vm0, %v6023_v54 }
  0xb4   : > { %4580 = vmatpush.xpose.msk.msra.mxu2 %vm346_vm0, %v5992_v50  ;;  %4598 = vmatpush.xpose.msk.msra.mxu3 %vm346_vm0, %v6028_v59 }
  0xb7   : > { %4511 = vmatpush.xpose.msk.msra.mxu0 %vm346_vm0, %v5777_v1  ;;  %4529 = vmatpush.xpose.msk.msra.mxu1 %vm346_vm0, %v6044_v62 }
  0xb8   : > { %4581 = vmatpush.xpose.msk.msra.mxu2 %vm346_vm0, %v6011_v58  ;;  %4599 = vmatpush.xpose.msk.msra.mxu3 %vm346_vm0, %v6047_v4  ;;  %v331_v55 = vpop.trf.xlu1  ;;  %v512_v50 = vpop.trf.xlu0 }
  0xb9   : > { %4313 = vmatmul.msk.f32.gmra.mxu0 %vm346_vm0, %v331_v55  ;;  %4331 = vmatmul.msk.f32.gmra.mxu1 %vm346_vm0, %v331_v55 }
  0xba   : > { %4349 = vmatmul.msk.f32.gmra.mxu2 %vm346_vm0, %v512_v50  ;;  %4367 = vmatmul.msk.f32.gmra.mxu3 %vm346_vm0, %v512_v50  ;;  %v946_v50 = vpop.trf.xlu2 }
  0xbb   : > { %4512 = vmatpush.xpose.msk.msra.mxu0 %vm346_vm0, %v5452_v5  ;;  %4530 = vmatpush.xpose.msk.msra.mxu1 %vm346_vm0, %v5455_v6 }
  0xbc   : > { %4582 = vmatpush.xpose.msk.msra.mxu2 %vm346_vm0, %v5783_v3  ;;  %4600 = vmatpush.xpose.msk.msra.mxu3 %vm346_vm0, %v5786_v2 }
  0xbf   : > { %4513 = vmatpush.xpose.msk.msra.mxu0 %vm346_vm0, %v5471_v10  ;;  %4531 = vmatpush.xpose.msk.msra.mxu1 %vm346_vm0, %v5474_v11 }
  0xc0   : > { %4583 = vmatpush.xpose.msk.msra.mxu2 %vm346_vm0, %v5806_v20  ;;  %4601 = vmatpush.xpose.msk.msra.mxu3 %vm346_vm0, %v5809_v31  ;;  %v726_v55 = vpop.trf.xlu0 }
  0xc1   : > { %4386 = vmatmul.msk.f32.vlgmr.msrb.gmra.mxu0 %vm346_vm0, %v726_v55  ;;  %4404 = vmatmul.msk.f32.vlgmr.msrb.gmra.mxu1 %vm346_vm0, %v726_v55  ;;  %v4647_v55 = vld [vmem:[%s5449_s8 + $0x1a0] sm:$0xff] }
  0xc2   : > { %4456 = vmatmul.msk.f32.vlgmr.msrb.gmra.mxu2 %vm346_vm0, %v946_v50  ;;  %4474 = vmatmul.msk.f32.vlgmr.msrb.gmra.mxu3 %vm346_vm0, %v946_v50  ;;  %v947_v51 = vpop.trf.xlu2 }
  0xc3   : > { %4514 = vmatpush.xpose.msk.msra.mxu0 %vm346_vm0, %v5491_v14  ;;  %4532 = vmatpush.xpose.msk.msra.mxu1 %vm346_vm0, %v5494_v15 }
  0xc4   : > { %4584 = vmatpush.xpose.msk.msra.mxu2 %vm346_vm0, %v5823_v16  ;;  %4602 = vmatpush.xpose.msk.msra.mxu3 %vm346_vm0, %v5826_v60 }
  0xc7   : > { %4515 = vmatpush.xpose.msk.msra.mxu0 %vm346_vm0, %v5520_v21  ;;  %4533 = vmatpush.xpose.msk.msra.mxu1 %vm346_vm0, %v5523_v22 }
  0xc8   : > { %4585 = vmatpush.xpose.msk.msra.mxu2 %vm346_vm0, %v5837_v28  ;;  %4603 = vmatpush.xpose.msk.msra.mxu3 %vm346_vm0, %v5840_v27  ;;  %v727_v50 = vpop.trf.xlu0  ;;  %v4901_v27 = vld [vmem:[%s7391_s3 + $0x28] sm:$0xff]  ;;  %v7512_v28 = vld [vmem:[#allocation26_spill] sm:$0xff] }
  0xc9   : > { %4387 = vmatmul.msk.f32.gmra.mxu0 %vm346_vm0, %v727_v50  ;;  %4405 = vmatmul.msk.f32.gmra.mxu1 %vm346_vm0, %v727_v50  ;;  %v7514_v50 = vld [vmem:[#allocation28_spill] sm:$0xff] }
  0xca   : > { %4457 = vmatmul.msk.f32.gmra.mxu2 %vm346_vm0, %v947_v51  ;;  %4475 = vmatmul.msk.f32.gmra.mxu3 %vm346_vm0, %v947_v51  ;;  %v1165_v51 = vpop.trf.xlu2 }
  0xcb   : > { %4516 = vmatpush.xpose.msk.msra.mxu0 %vm346_vm0, %v5540_v25  ;;  %4534 = vmatpush.xpose.msk.msra.mxu1 %vm346_vm0, %v5543_v26 }
  0xcc   : > { %4586 = vmatpush.xpose.msk.msra.mxu2 %vm346_vm0, %v5851_v0  ;;  %4604 = vmatpush.xpose.msk.msra.mxu3 %vm346_vm0, %v5854_v61  ;;  %v4900_v61 = vld [vmem:[%s7391_s3 + $0x20] sm:$0xff]  ;;  %v7513_v0 = vld [vmem:[#allocation27_spill] sm:$0xff] }
  0xcd   : > { %2682 = vxpose.xlu1.b32.start [1/2] (short) (narrow) %v4900_v61, 16  ;;  %v7515_v61 = vld [vmem:[#allocation29_spill] sm:$0xff] }
  0xcf   : > { %4517 = vmatpush.xpose.msk.msra.mxu0 %vm346_vm0, %v5569_v32  ;;  %4535 = vmatpush.xpose.msk.msra.mxu1 %vm346_vm0, %v5572_v33 }
  0xd0   : > { %4587 = vmatpush.xpose.msk.msra.mxu2 %vm346_vm0, %v5865_v9  ;;  %4605 = vmatpush.xpose.msk.msra.mxu3 %vm346_vm0, %v5868_v7 }
  0xd3   : > { %4518 = vmatpush.xpose.msk.msra.mxu0 %vm346_vm0, %v5589_v36  ;;  %4536 = vmatpush.xpose.msk.msra.mxu1 %vm346_vm0, %v5592_v37 }
  0xd4   : > { %4588 = vmatpush.xpose.msk.msra.mxu2 %vm346_vm0, %v5879_v13  ;;  %4606 = vmatpush.xpose.msk.msra.mxu3 %vm346_vm0, %v5882_v12 }
  0xd5   : > { %2683 = vxpose.xlu1.b32.end [2/2] (short) (narrow) %v4901_v27, 16  ;;  %v4716_v27 = vld [vmem:[%s5449_s8 + $0x199] sm:$0xff] }
  0xd7   : > { %4519 = vmatpush.xpose.msk.msra.mxu0 %vm346_vm0, %v5609_v40  ;;  %4537 = vmatpush.xpose.msk.msra.mxu1 %vm346_vm0, %v5612_v41 }
  0xd8   : > { %4589 = vmatpush.xpose.msk.msra.mxu2 %vm346_vm0, %v5893_v19  ;;  %4607 = vmatpush.xpose.msk.msra.mxu3 %vm346_vm0, %v5896_v18 }
  0xdb   : > { %4520 = vmatpush.xpose.msk.msra.mxu0 %vm346_vm0, %v5629_v44  ;;  %4538 = vmatpush.xpose.msk.msra.mxu1 %vm346_vm0, %v5632_v45 }
  0xdc   : > { %4590 = vmatpush.xpose.msk.msra.mxu2 %vm346_vm0, %v5907_v24  ;;  %4608 = vmatpush.xpose.msk.msra.mxu3 %vm346_vm0, %v5910_v23 }
  0xdf   : > { %4521 = vmatpush.xpose.msk.msra.mxu0 %vm346_vm0, %v5649_v48  ;;  %4539 = vmatpush.xpose.msk.msra.mxu1 %vm346_vm0, %v5652_v49 }
  0xe0   : > { %4591 = vmatpush.xpose.msk.msra.mxu2 %vm346_vm0, %v5921_v30  ;;  %4609 = vmatpush.xpose.msk.msra.mxu3 %vm346_vm0, %v5924_v29 }
  0xe3   : > { %4522 = vmatpush.xpose.msk.msra.mxu0 %vm346_vm0, %v5669_v52  ;;  %4540 = vmatpush.xpose.msk.msra.mxu1 %vm346_vm0, %v5672_v53 }
  0xe4   : > { %4592 = vmatpush.xpose.msk.msra.mxu2 %vm346_vm0, %v5935_v35  ;;  %4610 = vmatpush.xpose.msk.msra.mxu3 %vm346_vm0, %v5938_v34 }
  0xe7   : > { %4523 = vmatpush.xpose.msk.msra.mxu0 %vm346_vm0, %v5689_v56  ;;  %4541 = vmatpush.xpose.msk.msra.mxu1 %vm346_vm0, %v5692_v57 }
  0xe8   : > { %4593 = vmatpush.xpose.msk.msra.mxu2 %vm346_vm0, %v5949_v39  ;;  %4611 = vmatpush.xpose.msk.msra.mxu3 %vm346_vm0, %v5952_v38  ;;  %v1384_v38 = vpop.trf.xlu1 }
  0xeb   : > { %4524 = vmatpush.xpose.msk.msra.mxu0 %vm346_vm0, %v7512_v28  ;;  %4542 = vmatpush.xpose.msk.msra.mxu1 %vm346_vm0, %v7513_v0  ;;  %v4717_v28 = vld [vmem:[%s5449_s8 + $0x1a1] sm:$0xff] }
  0xec   : > { %4594 = vmatpush.xpose.msk.msra.mxu2 %vm346_vm0, %v5963_v43  ;;  %4612 = vmatpush.xpose.msk.msra.mxu3 %vm346_vm0, %v5966_v42  ;;  %v4646_v43 = vld [vmem:[%s5449_s8 + $0x198] sm:$0xff] }
  0xef   : > { %4525 = vmatpush.xpose.msk.msra.mxu0 %vm346_vm0, %v7514_v50  ;;  %4543 = vmatpush.xpose.msk.msra.mxu1 %vm346_vm0, %v7515_v61  ;;  %v7519_v50 = vld [vmem:[#allocation33_spill] sm:$0xff] }
  0xf0   : > { %4595 = vmatpush.xpose.msk.msra.mxu2 %vm346_vm0, %v5977_v47  ;;  %4613 = vmatpush.xpose.msk.msra.mxu3 %vm346_vm0, %v5980_v46  ;;  %v4862_v47 = vld [vmem:[%s7391_s3 + $0x10] sm:$0xff] }
  0xf1   : > { %2463 = vxpose.xlu2.b32.start [1/2] (short) (narrow) %v4862_v47, 16  ;;  %v7542_v47 = vld [vmem:[#allocation24_spill] sm:$0xff] }
  0xf2   : > { %4526 = vmatmul.msk.f32.vlgmr.msra.gmra.mxu0 %vm346_vm0, %v1165_v51  ;;  %4544 = vmatmul.msk.f32.vlgmr.msra.gmra.mxu1 %vm346_vm0, %v1165_v51  ;;  %v7518_v51 = vld [vmem:[#allocation31_spill] sm:$0xff] }
  0xf3   : > { %4650 = vmatpush.xpose.msk.msrb.mxu0 %vm346_vm0, %v5722_v63  ;;  %4668 = vmatpush.xpose.msk.msrb.mxu1 %vm346_vm0, %v4647_v55  ;;  %v1166_v63 = vpop.trf.xlu2  ;;  %v1385_v55 = vpop.trf.xlu1 }
  0xf4   : > { %4720 = vmatpush.xpose.msk.msrb.mxu2 %vm346_vm0, %v7513_v0  ;;  %4738 = vmatpush.xpose.msk.msrb.mxu3 %vm346_vm0, %v4717_v28  ;;  %v7516_v0 = vld [vmem:[#allocation30_spill] sm:$0xff]  ;;  %v7525_v28 = vld [vmem:[#allocation7_spill] sm:$0xff] }
  0xf5   : > { %4596 = vmatmul.msk.f32.vlgmr.msra.gmra.mxu2 %vm346_vm0, %v1384_v38  ;;  %4614 = vmatmul.msk.f32.vlgmr.msra.gmra.mxu3 %vm346_vm0, %v1384_v38  ;;  %v7517_v38 = vld [vmem:[#allocation32_spill] sm:$0xff] }
  0xf7   : > { %4651 = vmatpush.xpose.msk.msrb.mxu0 %vm346_vm0, %v5748_v8  ;;  %4669 = vmatpush.xpose.msk.msrb.mxu1 %vm346_vm0, %v4646_v43  ;;  %v4863_v8 = vld [vmem:[%s7391_s3 + $0x18] sm:$0xff]  ;;  %v7540_v43 = vld [vmem:[#allocation22_spill] sm:$0xff] }
  0xf8   : > { %4721 = vmatpush.xpose.msk.msrb.mxu2 %vm346_vm0, %v7515_v61  ;;  %4739 = vmatpush.xpose.msk.msrb.mxu3 %vm346_vm0, %v4716_v27  ;;  %v7522_v61 = vld [vmem:[#allocation4_spill] sm:$0xff]  ;;  %v7541_v27 = vld [vmem:[#allocation23_spill] sm:$0xff] }
  0xf9   : > { %2464 = vxpose.xlu2.b32.end [2/2] (short) (narrow) %v4863_v8, 16  ;;  %v4786_v8 = vld [vmem:[%s5449_s8 + $0x19a] sm:$0xff] }
  0xfa   : > { %4527 = vmatmul.msk.f32.gmra.mxu0 %vm346_vm0, %v1166_v63  ;;  %4545 = vmatmul.msk.f32.gmra.mxu1 %vm346_vm0, %v1166_v63  ;;  %v7543_v63 = vld [vmem:[#allocation25_spill] sm:$0xff] }
  0xfb   : > { %4652 = vmatpush.xpose.msk.msrb.mxu0 %vm346_vm0, %v7516_v0  ;;  %4670 = vmatpush.xpose.msk.msrb.mxu1 %vm346_vm0, %v7517_v38  ;;  %v6349_v0 = vld [vmem:[%s6337_s15 + $0xb0] sm:$0xff] }
  0xfc   : > { %4722 = vmatpush.xpose.msk.msrb.mxu2 %vm346_vm0, %v5756_v17  ;;  %4740 = vmatpush.xpose.msk.msrb.mxu3 %vm346_vm0, %v6023_v54  ;;  %v7520_v54 = vld [vmem:[#allocation2_spill] sm:$0xff]  ;;  %v7521_v17 = vld [vmem:[#allocation3_spill] sm:$0xff]  ;;  %v6352_v38 = vld [vmem:[%s6337_s15 + $0x170] sm:$0xff] }
  0xfd   : > { %4597 = vmatmul.msk.f32.gmra.mxu2 %vm346_vm0, %v1385_v55  ;;  %4615 = vmatmul.msk.f32.gmra.mxu3 %vm346_vm0, %v1385_v55 }
  0xff   : > { %4653 = vmatpush.xpose.msk.msrb.mxu0 %vm346_vm0, %v7518_v51  ;;  %4671 = vmatpush.xpose.msk.msrb.mxu1 %vm346_vm0, %v7519_v50  ;;  %v6384_v51 = vld [vmem:[%s6337_s15 + $0x98] sm:$0xff] }
 0x100   : > { %4723 = vmatpush.xpose.msk.msrb.mxu2 %vm346_vm0, %v5777_v1  ;;  %4741 = vmatpush.xpose.msk.msrb.mxu3 %vm346_vm0, %v6044_v62  ;;  %v7523_v1 = vld [vmem:[#allocation5_spill] sm:$0xff]  ;;  %v7524_v62 = vld [vmem:[#allocation6_spill] sm:$0xff] }
 0x101   : > { %v6387_v50 = vld [vmem:[%s6337_s15 + $0x158] sm:$0xff] }
 0x103   : > { %4654 = vmatpush.xpose.msk.msrb.mxu0 %vm346_vm0, %v7520_v54  ;;  %4672 = vmatpush.xpose.msk.msrb.mxu1 %vm346_vm0, %v7521_v17 }
 0x104   : > { %4724 = vmatpush.xpose.msk.msrb.mxu2 %vm346_vm0, %v5452_v5  ;;  %4742 = vmatpush.xpose.msk.msrb.mxu3 %vm346_vm0, %v5455_v6  ;;  %v7526_v5 = vld [vmem:[#allocation8_spill] sm:$0xff]  ;;  %v7527_v6 = vld [vmem:[#allocation9_spill] sm:$0xff] }
 0x107   : > { %4655 = vmatpush.xpose.msk.msrb.mxu0 %vm346_vm0, %v7522_v61  ;;  %4673 = vmatpush.xpose.msk.msrb.mxu1 %vm346_vm0, %v7523_v1 }
 0x108   : > { %4725 = vmatpush.xpose.msk.msrb.mxu2 %vm346_vm0, %v5471_v10  ;;  %4743 = vmatpush.xpose.msk.msrb.mxu3 %vm346_vm0, %v5474_v11  ;;  %v7528_v10 = vld [vmem:[#allocation10_spill] sm:$0xff]  ;;  %v7529_v11 = vld [vmem:[#allocation11_spill] sm:$0xff] }
 0x10b   : > { %4656 = vmatpush.xpose.msk.msrb.mxu0 %vm346_vm0, %v7524_v62  ;;  %4674 = vmatpush.xpose.msk.msrb.mxu1 %vm346_vm0, %v7525_v28  ;;  %v7544_v28 = vld [vmem:[#allocation35_spill] sm:$0xff] }
 0x10c   : > { %4726 = vmatpush.xpose.msk.msrb.mxu2 %vm346_vm0, %v5491_v14  ;;  %4744 = vmatpush.xpose.msk.msrb.mxu3 %vm346_vm0, %v5494_v15  ;;  %v7530_v14 = vld [vmem:[#allocation12_spill] sm:$0xff]  ;;  %v7531_v15 = vld [vmem:[#allocation13_spill] sm:$0xff] }
 0x10f   : > { %4657 = vmatpush.xpose.msk.msrb.mxu0 %vm346_vm0, %v7526_v5  ;;  %4675 = vmatpush.xpose.msk.msrb.mxu1 %vm346_vm0, %v7527_v6  ;;  %v6400_v6 = vld [vmem:[%s6337_s15 + $0x90] sm:$0xff] }
 0x110   : > { %4727 = vmatpush.xpose.msk.msrb.mxu2 %vm346_vm0, %v5520_v21  ;;  %4745 = vmatpush.xpose.msk.msrb.mxu3 %vm346_vm0, %v5523_v22  ;;  %v7532_v21 = vld [vmem:[#allocation14_spill] sm:$0xff]  ;;  %v7533_v22 = vld [vmem:[#allocation15_spill] sm:$0xff] }
 0x113   : > { %4658 = vmatpush.xpose.msk.msrb.mxu0 %vm346_vm0, %v7528_v10  ;;  %4676 = vmatpush.xpose.msk.msrb.mxu1 %vm346_vm0, %v7529_v11  ;;  %v6403_v10 = vld [vmem:[%s6337_s15 + $0x150] sm:$0xff]  ;;  %v6419_v11 = vld [vmem:[%s6337_s15 + $0x140] sm:$0xff] }
 0x114   : > { %4728 = vmatpush.xpose.msk.msrb.mxu2 %vm346_vm0, %v5540_v25  ;;  %4746 = vmatpush.xpose.msk.msrb.mxu3 %vm346_vm0, %v5543_v26  ;;  %v7534_v25 = vld [vmem:[#allocation16_spill] sm:$0xff]  ;;  %v7535_v26 = vld [vmem:[#allocation17_spill] sm:$0xff] }
 0x117   : > { %4659 = vmatpush.xpose.msk.msrb.mxu0 %vm346_vm0, %v7530_v14  ;;  %4677 = vmatpush.xpose.msk.msrb.mxu1 %vm346_vm0, %v7531_v15 }
 0x118   : > { %4729 = vmatpush.xpose.msk.msrb.mxu2 %vm346_vm0, %v5569_v32  ;;  %4747 = vmatpush.xpose.msk.msrb.mxu3 %vm346_vm0, %v5572_v33  ;;  %v4970_v32 = vld [vmem:[%s7391_s3 + $0x30] sm:$0xff]  ;;  %v5040_v33 = vld [vmem:[%s7391_s3 + $0x40] sm:$0xff] }
 0x119   : > { %2902 = vxpose.xlu1.b32.start [1/2] (short) (narrow) %v4970_v32, 16  ;;  %3121 = vxpose.xlu0.b32.start [1/2] (short) (narrow) %v5040_v33, 16  ;;  %v6430_v32 = vld [vmem:[%s6337_s15 + $0x78] sm:$0xff] }
 0x11a   : > { %v6433_v33 = vld [vmem:[%s6337_s15 + $0x138] sm:$0xff] }
 0x11b   : > { %4660 = vmatpush.xpose.msk.msrb.mxu0 %vm346_vm0, %v7532_v21  ;;  %4678 = vmatpush.xpose.msk.msrb.mxu1 %vm346_vm0, %v7533_v22 }
 0x11c   : > { %4730 = vmatpush.xpose.msk.msrb.mxu2 %vm346_vm0, %v5589_v36  ;;  %4748 = vmatpush.xpose.msk.msrb.mxu3 %vm346_vm0, %v5592_v37  ;;  %v7536_v36 = vld [vmem:[#allocation18_spill] sm:$0xff]  ;;  %v7537_v37 = vld [vmem:[#allocation19_spill] sm:$0xff] }
 0x11f   : > { %4661 = vmatpush.xpose.msk.msrb.mxu0 %vm346_vm0, %v7534_v25  ;;  %4679 = vmatpush.xpose.msk.msrb.mxu1 %vm346_vm0, %v7535_v26 }
 0x120   : > { %4731 = vmatpush.xpose.msk.msrb.mxu2 %vm346_vm0, %v5609_v40  ;;  %4749 = vmatpush.xpose.msk.msrb.mxu3 %vm346_vm0, %v5612_v41  ;;  %v7538_v40 = vld [vmem:[#allocation20_spill] sm:$0xff]  ;;  %v7539_v41 = vld [vmem:[#allocation21_spill] sm:$0xff] }
 0x123   : > { %4662 = vmatpush.xpose.msk.msrb.mxu0 %vm346_vm0, %v7536_v36  ;;  %4680 = vmatpush.xpose.msk.msrb.mxu1 %vm346_vm0, %v7537_v37 }
 0x124   : > { %4732 = vmatpush.xpose.msk.msrb.mxu2 %vm346_vm0, %v5629_v44  ;;  %4750 = vmatpush.xpose.msk.msrb.mxu3 %vm346_vm0, %v5632_v45  ;;  %v4971_v44 = vld [vmem:[%s7391_s3 + $0x38] sm:$0xff]  ;;  %v5041_v45 = vld [vmem:[%s7391_s3 + $0x48] sm:$0xff] }
 0x125   : > { %2903 = vxpose.xlu1.b32.end [2/2] (short) (narrow) %v4971_v44, 16  ;;  %3122 = vxpose.xlu0.b32.end [2/2] (short) (narrow) %v5041_v45, 16 }
 0x127   : > { %4663 = vmatpush.xpose.msk.msrb.mxu0 %vm346_vm0, %v7538_v40  ;;  %4681 = vmatpush.xpose.msk.msrb.mxu1 %vm346_vm0, %v7539_v41  ;;  %v4780_v41 = vld [vmem:[%s5449_s8 + $0x152] sm:$0xff] }
 0x128   : > { %4733 = vmatpush.xpose.msk.msrb.mxu2 %vm346_vm0, %v5649_v48  ;;  %4751 = vmatpush.xpose.msk.msrb.mxu3 %vm346_vm0, %v5652_v49  ;;  %v1604_v48 = vpop.trf.xlu1  ;;  %v4787_v49 = vld [vmem:[%s5449_s8 + $0x1a2] sm:$0xff] }
 0x12b   : > { %4664 = vmatpush.xpose.msk.msrb.mxu0 %vm346_vm0, %v7540_v43  ;;  %4682 = vmatpush.xpose.msk.msrb.mxu1 %vm346_vm0, %v7541_v27  ;;  %v6464_v43 = vld [vmem:[%s6337_s15 + $0x60] sm:$0xff] }
 0x12c   : > { %4734 = vmatpush.xpose.msk.msrb.mxu2 %vm346_vm0, %v5669_v52  ;;  %4752 = vmatpush.xpose.msk.msrb.mxu3 %vm346_vm0, %v5672_v53  ;;  %v1823_v52 = vpop.trf.xlu0 }
 0x12e   : > { %v466_v53 = vpop.f32.mrf.mxu0  ;;  %v489_v55 = vpop.f32.mrf.mxu1 }
 0x12f   : > { %4665 = vmatpush.xpose.msk.msrb.mxu0 %vm346_vm0, %v7542_v47  ;;  %4683 = vmatpush.xpose.msk.msrb.mxu1 %vm346_vm0, %v7543_v63  ;;  %v6478_v47 = vld [vmem:[%s6337_s15 + $0x50] sm:$0xff] }
 0x130   : > { %4735 = vmatpush.xpose.msk.msrb.mxu2 %vm346_vm0, %v5689_v56  ;;  %4753 = vmatpush.xpose.msk.msrb.mxu3 %vm346_vm0, %v5692_v57  ;;  %v6369_v56 = vld [vmem:[%s6337_s15 + $0xa8] sm:$0xff]  ;;  %v6481_v63 = vld [vmem:[%s6337_s15 + $0x110] sm:$0xff] }
 0x131   : > { %v6372_v57 = vld [vmem:[%s6337_s15 + $0x168] sm:$0xff] }
 0x132   : > { %4666 = vmatmul.msk.f32.vlgmr.msrb.gmra.mxu0 %vm346_vm0, %v1604_v48  ;;  %4684 = vmatmul.msk.f32.vlgmr.msrb.gmra.mxu1 %vm346_vm0, %v1604_v48  ;;  %v4763_v48 = vld [vmem:[%s5449_s8 + $0x82] sm:$0xff] }
 0x133   : > { %4790 = vmatpush.xpose.msk.msra.mxu0 %vm346_vm0, %v5966_v42  ;;  %4808 = vmatpush.xpose.msk.msra.mxu1 %vm346_vm0, %v4787_v49  ;;  %v1605_v42 = vpop.trf.xlu1  ;;  %v4779_v49 = vld [vmem:[%s5449_s8 + $0x142] sm:$0xff] }
 0x134   : > { %4826 = vmatpush.xpose.msk.msra.mxu2 %vm346_vm0, %v6349_v0  ;;  %4844 = vmatpush.xpose.msk.msra.mxu3 %vm346_vm0, %v6352_v38  ;;  %v1824_v5 = vpop.trf.xlu0 }
 0x135   : > { %4736 = vmatmul.msk.f32.vlgmr.msrb.gmra.mxu2 %vm346_vm0, %v1823_v52  ;;  %4754 = vmatmul.msk.f32.vlgmr.msrb.gmra.mxu3 %vm346_vm0, %v1823_v52  ;;  %v646_v54 = vpop.f32.mrf.mxu2  ;;  %v669_v17 = vpop.f32.mrf.mxu3 }
 0x136   : > { %v647_v61 = vadd.f32 %v646_v54, %v466_v53  ;;  %v670_v1 = vadd.f32 %v669_v17, %v489_v55  ;;  %v492_v62 = vpop.f32.mrf.mxu1  ;;  %v6490_v55 = vld [vmem:[%s6337_s15 + $0x48] sm:$0xff]  ;;  %v6508_v17 = vld [vmem:[%s6337_s15 + $0x38] sm:$0xff] }
 0x137   : > { %4791 = vmatpush.xpose.msk.msra.mxu0 %vm346_vm0, %v5980_v46  ;;  %4809 = vmatpush.xpose.msk.msra.mxu1 %vm346_vm0, %v4786_v8  ;;  %v469_v46 = vpop.f32.mrf.mxu0  ;;  %v6493_v8 = vld [vmem:[%s6337_s15 + $0x108] sm:$0xff] }
 0x138   : > { %4827 = vmatpush.xpose.msk.msra.mxu2 %vm346_vm0, %v6369_v56  ;;  %4845 = vmatpush.xpose.msk.msra.mxu3 %vm346_vm0, %v6372_v57 }
 0x13a   : > { %4667 = vmatmul.msk.f32.gmra.mxu0 %vm346_vm0, %v1605_v42  ;;  %4685 = vmatmul.msk.f32.gmra.mxu1 %vm346_vm0, %v1605_v42 }
 0x13b   : > { %4792 = vmatpush.xpose.msk.msra.mxu0 %vm346_vm0, %v7544_v28  ;;  %4810 = vmatpush.xpose.msk.msra.mxu1 %vm346_vm0, %v6028_v59  ;;  %v6416_v59 = vld [vmem:[%s6337_s15 + $0x80] sm:$0xff]  ;;  %v6588_v28 = vld [vmem:[%s6337_s15 + $0x171] sm:$0xff] }
 0x13c   : > { %4828 = vmatpush.xpose.msk.msra.mxu2 %vm346_vm0, %v6384_v51  ;;  %4846 = vmatpush.xpose.msk.msra.mxu3 %vm346_vm0, %v6387_v50 }
 0x13d   : > { %4737 = vmatmul.msk.f32.gmra.mxu2 %vm346_vm0, %v1824_v5  ;;  %4755 = vmatmul.msk.f32.gmra.mxu3 %vm346_vm0, %v1824_v5  ;;  %v649_v14 = vpop.f32.mrf.mxu2  ;;  %v672_v15 = vpop.f32.mrf.mxu3 }
 0x13e   : > { %v650_v21 = vadd.f32 %v649_v14, %v469_v46  ;;  %v5111_v46 = vld [vmem:[%s7391_s3 + $0x58] sm:$0xff]  ;;  %v2042_v5 = vpop.trf.xlu0 }
 0x13f   : > { %4793 = vmatpush.xpose.msk.msra.mxu0 %vm346_vm0, %v6011_v58  ;;  %4811 = vmatpush.xpose.msk.msra.mxu1 %vm346_vm0, %v6047_v4  ;;  %v673_v58 = vadd.f32 %v672_v15, %v492_v62  ;;  %v861_v22 = vpop.f32.mrf.mxu0  ;;  %v884_v4 = vpop.f32.mrf.mxu1  ;;  %v6585_v62 = vld [vmem:[%s6337_s15 + $0xb1] sm:$0xff] }
 0x140   : > { %4829 = vmatpush.xpose.msk.msra.mxu2 %vm346_vm0, %v6400_v6  ;;  %4847 = vmatpush.xpose.msk.msra.mxu3 %vm346_vm0, %v6403_v10  ;;  %v890_v25 = vadd.f32 %v861_v22, %v647_v61  ;;  %v891_v26 = vadd.f32 %v884_v4, %v670_v1  ;;  %v6511_v61 = vld [vmem:[%s6337_s15 + $0xf8] sm:$0xff]  ;;  %v2260_v15 = vpop.trf.xlu2  ;;  %v6623_v22 = vld [vmem:[%s6337_s15 + $0x16a] sm:$0xff] }
 0x141   : > { %v6556_v1 = vld [vmem:[%s6337_s15 + $0xd8] sm:$0xff]  ;;  %7551 = vst [vmem:[#allocation32_spill] sm:$0xff] %v6623_v22 }
 0x142   : > { %7546 = vst [vmem:[#allocation27_spill] sm:$0xff] %v6556_v1  ;;  %v6598_v14 = vld [vmem:[%s6337_s15 + $0x172] sm:$0xff] }
 0x143   : > { %4794 = vmatpush.xpose.msk.msra.mxu0 %vm346_vm0, %v5783_v3  ;;  %4812 = vmatpush.xpose.msk.msra.mxu1 %vm346_vm0, %v5786_v2  ;;  %v6444_v2 = vld [vmem:[%s6337_s15 + $0x68] sm:$0xff]  ;;  %7549 = vst [vmem:[#allocation29_spill] sm:$0xff] %v6598_v14 }
 0x144   : > { %4830 = vmatpush.xpose.msk.msra.mxu2 %vm346_vm0, %v6416_v59  ;;  %4848 = vmatpush.xpose.msk.msra.mxu3 %vm346_vm0, %v6419_v11  ;;  %v6447_v3 = vld [vmem:[%s6337_s15 + $0x128] sm:$0xff] }
 0x145   : > { %v1081_v36 = vpop.f32.mrf.mxu2  ;;  %v1104_v37 = vpop.f32.mrf.mxu3 }
 0x146   : > { %v6449_v40 = vadd.f32 %v1081_v36, %v890_v25 }
 0x147   : > { %4795 = vmatpush.xpose.msk.msra.mxu0 %vm346_vm0, %v5806_v20  ;;  %4813 = vmatpush.xpose.msk.msra.mxu1 %vm346_vm0, %v5809_v31  ;;  %v6451_v20 = vadd.f32 %v1104_v37, %v891_v26  ;;  %v4764_v31 = vld [vmem:[%s5449_s8 + $0x92] sm:$0xff]  ;;  %v864_v44 = vpop.f32.mrf.mxu0  ;;  %v887_v45 = vpop.f32.mrf.mxu1  ;;  %v5180_v26 = vld [vmem:[%s7391_s3 + $0x60] sm:$0xff] }
 0x148   : > { %4831 = vmatpush.xpose.msk.msra.mxu2 %vm346_vm0, %v6430_v32  ;;  %4849 = vmatpush.xpose.msk.msra.mxu3 %vm346_vm0, %v6433_v33  ;;  %v892_v27 = vadd.f32 %v864_v44, %v650_v21  ;;  %v6615_v21 = vld [vmem:[%s6337_s15 + $0x169] sm:$0xff]  ;;  %v6647_v44 = vld [vmem:[%s6337_s15 + $0x9a] sm:$0xff] }
 0x149   : > { %7552 = vst [vmem:[#allocation31_spill] sm:$0xff] %v6647_v44  ;;  %3560 = vxpose.xlu2.b32.start [1/2] (short) (narrow) %v5180_v26, 16  ;;  %v6700_v26 = vld [vmem:[%s6337_s15 + $0x82] sm:$0xff] }
 0x14a   : > { %7558 = vst [vmem:[#allocation6_spill] sm:$0xff] %v6700_v26 }
 0x14b   : > { %4796 = vmatpush.xpose.msk.msra.mxu0 %vm346_vm0, %v5823_v16  ;;  %4814 = vmatpush.xpose.msk.msra.mxu1 %vm346_vm0, %v5826_v60  ;;  %v6467_v16 = vld [vmem:[%s6337_s15 + $0x120] sm:$0xff]  ;;  %v893_v60 = vadd.f32 %v887_v45, %v673_v58  ;;  %v6620_v58 = vld [vmem:[%s6337_s15 + $0xaa] sm:$0xff] }
 0x14c   : > { %4832 = vmatpush.xpose.msk.msra.mxu2 %vm346_vm0, %v6444_v2  ;;  %4850 = vmatpush.xpose.msk.msra.mxu3 %vm346_vm0, %v6447_v3  ;;  %7550 = vst [vmem:[#allocation30_spill] sm:$0xff] %v6620_v58  ;;  %v6650_v45 = vld [vmem:[%s6337_s15 + $0x15a] sm:$0xff] }
 0x14d   : > { %v1084_v52 = vpop.f32.mrf.mxu2  ;;  %v1107_v53 = vpop.f32.mrf.mxu3  ;;  %7553 = vst [vmem:[#allocation33_spill] sm:$0xff] %v6650_v45 }
 0x14e   : > { %v6495_v42 = vadd.f32 %v1084_v52, %v892_v27  ;;  %v6497_v54 = vadd.f32 %v1107_v53, %v893_v60  ;;  %v6661_v27 = vld [vmem:[%s6337_s15 + $0x91] sm:$0xff] }
 0x14f   : > { %4797 = vmatpush.xpose.msk.msra.mxu0 %vm346_vm0, %v4764_v31  ;;  %4815 = vmatpush.xpose.msk.msra.mxu1 %vm346_vm0, %v4780_v41  ;;  %v6641_v31 = vld [vmem:[%s6337_s15 + $0x99] sm:$0xff]  ;;  %v6664_v60 = vld [vmem:[%s6337_s15 + $0x151] sm:$0xff] }
 0x150   : > { %4833 = vmatpush.xpose.msk.msra.mxu2 %vm346_vm0, %v6464_v43  ;;  %4851 = vmatpush.xpose.msk.msra.mxu3 %vm346_vm0, %v6467_v16  ;;  %v6644_v41 = vld [vmem:[%s6337_s15 + $0x159] sm:$0xff] }
 0x151   : > { %v6669_v52 = vld [vmem:[%s6337_s15 + $0x92] sm:$0xff] }
 0x152   : > { %7554 = vst [vmem:[#allocation2_spill] sm:$0xff] %v6669_v52  ;;  %v6672_v53 = vld [vmem:[%s6337_s15 + $0x152] sm:$0xff] }
 0x153   : > { %4798 = vmatpush.xpose.msk.msra.mxu0 %vm346_vm0, %v4763_v48  ;;  %4816 = vmatpush.xpose.msk.msra.mxu1 %vm346_vm0, %v4779_v49  ;;  %7555 = vst [vmem:[#allocation3_spill] sm:$0xff] %v6672_v53 }
 0x154   : > { %4834 = vmatpush.xpose.msk.msra.mxu2 %vm346_vm0, %v6478_v47  ;;  %4852 = vmatpush.xpose.msk.msra.mxu3 %vm346_vm0, %v6481_v63 }
 0x157   : > { %4799 = vmatpush.xpose.msk.msra.mxu0 %vm346_vm0, %v5865_v9  ;;  %4817 = vmatpush.xpose.msk.msra.mxu1 %vm346_vm0, %v5868_v7  ;;  %v6522_v7 = vld [vmem:[%s6337_s15 + $0x30] sm:$0xff] }
 0x158   : > { %4835 = vmatpush.xpose.msk.msra.mxu2 %vm346_vm0, %v6490_v55  ;;  %4853 = vmatpush.xpose.msk.msra.mxu3 %vm346_vm0, %v6493_v8  ;;  %v6525_v9 = vld [vmem:[%s6337_s15 + $0xf0] sm:$0xff] }
 0x15b   : > { %4800 = vmatpush.xpose.msk.msra.mxu0 %vm346_vm0, %v5879_v13  ;;  %4818 = vmatpush.xpose.msk.msra.mxu1 %vm346_vm0, %v5882_v12  ;;  %v6536_v12 = vld [vmem:[%s6337_s15 + $0x20] sm:$0xff] }
 0x15c   : > { %4836 = vmatpush.xpose.msk.msra.mxu2 %vm346_vm0, %v6508_v17  ;;  %4854 = vmatpush.xpose.msk.msra.mxu3 %vm346_vm0, %v6511_v61  ;;  %v6539_v13 = vld [vmem:[%s6337_s15 + $0xe0] sm:$0xff] }
 0x15f   : > { %4801 = vmatpush.xpose.msk.msra.mxu0 %vm346_vm0, %v5893_v19  ;;  %4819 = vmatpush.xpose.msk.msra.mxu1 %vm346_vm0, %v5896_v18  ;;  %v5110_v18 = vld [vmem:[%s7391_s3 + $0x50] sm:$0xff]  ;;  %v6553_v19 = vld [vmem:[%s6337_s15 + $0x18] sm:$0xff] }
 0x160   : > { %4837 = vmatpush.xpose.msk.msra.mxu2 %vm346_vm0, %v6522_v7  ;;  %4855 = vmatpush.xpose.msk.msra.mxu3 %vm346_vm0, %v6525_v9  ;;  %7545 = vst [vmem:[#allocation26_spill] sm:$0xff] %v6553_v19 }
 0x161   : > { %3340 = vxpose.xlu0.b32.start [1/2] (short) (narrow) %v5110_v18, 16 }
 0x163   : > { %4802 = vmatpush.xpose.msk.msra.mxu0 %vm346_vm0, %v5907_v24  ;;  %4820 = vmatpush.xpose.msk.msra.mxu1 %vm346_vm0, %v5910_v23  ;;  %v2211_v23 = vld [vmem:[%s6337_s15 + $0x8] sm:$0xff] }
 0x164   : > { %4838 = vmatpush.xpose.msk.msra.mxu2 %vm346_vm0, %v6536_v12  ;;  %4856 = vmatpush.xpose.msk.msra.mxu3 %vm346_vm0, %v6539_v13  ;;  %v6568_v24 = vld [vmem:[%s6337_s15 + $0xc8] sm:$0xff] }
 0x167   : > { %4803 = vmatpush.xpose.msk.msra.mxu0 %vm346_vm0, %v5921_v30  ;;  %4821 = vmatpush.xpose.msk.msra.mxu1 %vm346_vm0, %v5924_v29  ;;  %v2210_v29 = vld [vmem:[%s6337_s15] sm:$0xff] }
 0x168   : > { %4839 = vmatpush.xpose.msk.msra.mxu2 %vm346_vm0, %v6553_v19  ;;  %4857 = vmatpush.xpose.msk.msra.mxu3 %vm346_vm0, %v6556_v1  ;;  %v6582_v30 = vld [vmem:[%s6337_s15 + $0xc0] sm:$0xff]  ;;  %v6926_v19 = vld [vmem:[%s6337_s15 + $0x188] sm:$0xff] }
 0x169   : > { %3341 = vxpose.xlu0.b32.end [2/2] (short) (narrow) %v5111_v46, 16  ;;  %v6923_v1 = vld [vmem:[%s6337_s15 + $0xc2] sm:$0xff] }
 0x16b   : > { %4804 = vmatpush.xpose.msk.msra.mxu0 %vm346_vm0, %v5935_v35  ;;  %4822 = vmatpush.xpose.msk.msra.mxu1 %vm346_vm0, %v5938_v34  ;;  %v7547_v34 = vld [vmem:[#allocation34_spill] sm:$0xff]  ;;  %v6595_v35 = vld [vmem:[%s6337_s15 + $0xb2] sm:$0xff] }
 0x16c   : > { %4840 = vmatpush.xpose.msk.msra.mxu2 %vm346_vm0, %v2211_v23  ;;  %4858 = vmatpush.xpose.msk.msra.mxu3 %vm346_vm0, %v6568_v24  ;;  %7548 = vst [vmem:[#allocation28_spill] sm:$0xff] %v6595_v35 }
 0x16f   : > { %4805 = vmatpush.xpose.msk.msra.mxu0 %vm346_vm0, %v5949_v39  ;;  %4823 = vmatpush.xpose.msk.msra.mxu1 %vm346_vm0, %v7547_v34  ;;  %v6612_v39 = vld [vmem:[%s6337_s15 + $0xa9] sm:$0xff]  ;;  %v1300_v4 = vpop.f32.mrf.mxu0  ;;  %v1323_v25 = vpop.f32.mrf.mxu1 }
 0x170   : > { %4841 = vmatpush.xpose.msk.msra.mxu2 %vm346_vm0, %v2210_v29  ;;  %4859 = vmatpush.xpose.msk.msra.mxu3 %vm346_vm0, %v6582_v30  ;;  %v1329_v36 = vadd.f32 %v1300_v4, %v6449_v40  ;;  %v1330_v37 = vadd.f32 %v1323_v25, %v6451_v20  ;;  %v2043_v40 = vpop.trf.xlu0  ;;  %v2261_v20 = vpop.trf.xlu2  ;;  %v6694_v4 = vld [vmem:[%s6337_s15 + $0x81] sm:$0xff] }
 0x171   : > { %v6697_v25 = vld [vmem:[%s6337_s15 + $0x141] sm:$0xff] }
 0x172   : > { %4806 = vmatmul.msk.f32.vlgmr.msra.gmra.mxu0 %vm346_vm0, %v2042_v5  ;;  %4824 = vmatmul.msk.f32.vlgmr.msra.gmra.mxu1 %vm346_vm0, %v2042_v5  ;;  %v5181_v5 = vld [vmem:[%s7391_s3 + $0x68] sm:$0xff] }
 0x173   : > { %4864 = vmatpush.xpose.msk.msrb.mxu0 %vm346_vm0, %v6585_v62  ;;  %4882 = vmatpush.xpose.msk.msrb.mxu1 %vm346_vm0, %v6588_v28 }
 0x174   : > { %4902 = vmatpush.xpose.msk.msrb.mxu2 %vm346_vm0, %v6595_v35  ;;  %4920 = vmatpush.xpose.msk.msrb.mxu3 %vm346_vm0, %v6598_v14  ;;  %v6890_v14 = vld [vmem:[%s6337_s15 + $0xda] sm:$0xff]  ;;  %v2648_v35 = vld [vmem:[%s6337_s15 + $0xa] sm:$0xff] }
 0x175   : > { %4842 = vmatmul.msk.f32.vlgmr.msra.gmra.mxu2 %vm346_vm0, %v2260_v15  ;;  %4860 = vmatmul.msk.f32.vlgmr.msra.gmra.mxu3 %vm346_vm0, %v2260_v15  ;;  %7581 = vst [vmem:[#allocation37_spill] sm:$0xff] %v6890_v14 }
 0x176   : > { %3561 = vxpose.xlu2.b32.end [2/2] (short) (narrow) %v5181_v5, 16  ;;  %v6741_v5 = vld [vmem:[%s6337_s15 + $0x129] sm:$0xff] }
 0x177   : > { %4865 = vmatpush.xpose.msk.msrb.mxu0 %vm346_vm0, %v6612_v39  ;;  %4883 = vmatpush.xpose.msk.msrb.mxu1 %vm346_vm0, %v6615_v21  ;;  %v1303_v46 = vpop.f32.mrf.mxu0  ;;  %v1326_v29 = vpop.f32.mrf.mxu1 }
 0x178   : > { %4903 = vmatpush.xpose.msk.msrb.mxu2 %vm346_vm0, %v6620_v58  ;;  %4921 = vmatpush.xpose.msk.msrb.mxu3 %vm346_vm0, %v6623_v22  ;;  %v1519_v48 = vpop.f32.mrf.mxu2  ;;  %v1542_v49 = vpop.f32.mrf.mxu3  ;;  %v1331_v34 = vadd.f32 %v1303_v46, %v6495_v42  ;;  %v1332_v15 = vadd.f32 %v1326_v29, %v6497_v54  ;;  %v6714_v42 = vld [vmem:[%s6337_s15 + $0x79] sm:$0xff]  ;;  %v6738_v29 = vld [vmem:[%s6337_s15 + $0x69] sm:$0xff] }
 0x179   : > { %v6676_v18 = vadd.f32 %v1519_v48, %v1329_v36  ;;  %v6678_v23 = vadd.f32 %v1542_v49, %v1330_v37  ;;  %v6703_v36 = vld [vmem:[%s6337_s15 + $0x142] sm:$0xff]  ;;  %v6717_v54 = vld [vmem:[%s6337_s15 + $0x139] sm:$0xff] }
 0x17a   : > { %4807 = vmatmul.msk.f32.gmra.mxu0 %vm346_vm0, %v2043_v40  ;;  %4825 = vmatmul.msk.f32.gmra.mxu1 %vm346_vm0, %v2043_v40  ;;  %7559 = vst [vmem:[#allocation7_spill] sm:$0xff] %v6703_v36  ;;  %v6723_v48 = vld [vmem:[%s6337_s15 + $0x13a] sm:$0xff] }
 0x17b   : > { %4866 = vmatpush.xpose.msk.msrb.mxu0 %vm346_vm0, %v6641_v31  ;;  %4884 = vmatpush.xpose.msk.msrb.mxu1 %vm346_vm0, %v6644_v41  ;;  %7556 = vst [vmem:[#allocation4_spill] sm:$0xff] %v6676_v18  ;;  %v6781_v18 = vld [vmem:[%s6337_s15 + $0x111] sm:$0xff]  ;;  %v5320_v22 = vld [vmem:[%s7391_s3 + $0x80] sm:$0xff] }
 0x17c   : > { %4904 = vmatpush.xpose.msk.msrb.mxu2 %vm346_vm0, %v6647_v44  ;;  %4922 = vmatpush.xpose.msk.msrb.mxu3 %vm346_vm0, %v6650_v45  ;;  %7557 = vst [vmem:[#allocation5_spill] sm:$0xff] %v6678_v23  ;;  %v6778_v23 = vld [vmem:[%s6337_s15 + $0x51] sm:$0xff]  ;;  %v6864_v45 = vld [vmem:[%s6337_s15 + $0x22] sm:$0xff]  ;;  %v6887_v58 = vld [vmem:[%s6337_s15 + $0x1a] sm:$0xff] }
 0x17d   : > { %4843 = vmatmul.msk.f32.gmra.mxu2 %vm346_vm0, %v2261_v20  ;;  %4861 = vmatmul.msk.f32.gmra.mxu3 %vm346_vm0, %v2261_v20  ;;  %v6720_v20 = vld [vmem:[%s6337_s15 + $0x7a] sm:$0xff]  ;;  %7561 = vst [vmem:[#allocation9_spill] sm:$0xff] %v6723_v48  ;;  %v6867_v44 = vld [vmem:[%s6337_s15 + $0xe2] sm:$0xff] }
 0x17e   : > { %7560 = vst [vmem:[#allocation8_spill] sm:$0xff] %v6720_v20  ;;  %3998 = vxpose.xlu1.b32.start [1/2] (short) (narrow) %v5320_v22, 16  ;;  %v6906_v22 = vld [vmem:[%s6337_s15 + $0xca] sm:$0xff] }
 0x17f   : > { %4867 = vmatpush.xpose.msk.msrb.mxu0 %vm346_vm0, %v6661_v27  ;;  %4885 = vmatpush.xpose.msk.msrb.mxu1 %vm346_vm0, %v6664_v60  ;;  %7576 = vst [vmem:[#allocation24_spill] sm:$0xff] %v6864_v45 }
 0x180   : > { %4905 = vmatpush.xpose.msk.msrb.mxu2 %vm346_vm0, %v6669_v52  ;;  %4923 = vmatpush.xpose.msk.msrb.mxu3 %vm346_vm0, %v6672_v53  ;;  %v1522_v37 = vpop.f32.mrf.mxu2  ;;  %v1545_v40 = vpop.f32.mrf.mxu3  ;;  %v6844_v53 = vld [vmem:[%s6337_s15 + $0x32] sm:$0xff]  ;;  %7577 = vst [vmem:[#allocation25_spill] sm:$0xff] %v6867_v44 }
 0x181   : > { %v6725_v49 = vadd.f32 %v1522_v37, %v1331_v34  ;;  %v6727_v46 = vadd.f32 %v1545_v40, %v1332_v15  ;;  %v6744_v34 = vld [vmem:[%s6337_s15 + $0x6a] sm:$0xff]  ;;  %v6758_v37 = vld [vmem:[%s6337_s15 + $0x61] sm:$0xff]  ;;  %7574 = vst [vmem:[#allocation22_spill] sm:$0xff] %v6844_v53  ;;  %v6847_v52 = vld [vmem:[%s6337_s15 + $0xf2] sm:$0xff] }
 0x182   : > { %7564 = vst [vmem:[#allocation12_spill] sm:$0xff] %v6744_v34  ;;  %v6747_v15 = vld [vmem:[%s6337_s15 + $0x12a] sm:$0xff]  ;;  %v6761_v40 = vld [vmem:[%s6337_s15 + $0x121] sm:$0xff] }
 0x183   : > { %4868 = vmatpush.xpose.msk.msrb.mxu0 %vm346_vm0, %v6694_v4  ;;  %4886 = vmatpush.xpose.msk.msrb.mxu1 %vm346_vm0, %v6697_v25  ;;  %7562 = vst [vmem:[#allocation10_spill] sm:$0xff] %v6725_v49  ;;  %v6767_v49 = vld [vmem:[%s6337_s15 + $0x122] sm:$0xff] }
 0x184   : > { %4906 = vmatpush.xpose.msk.msrb.mxu2 %vm346_vm0, %v6700_v26  ;;  %4924 = vmatpush.xpose.msk.msrb.mxu3 %vm346_vm0, %v6703_v36  ;;  %7563 = vst [vmem:[#allocation11_spill] sm:$0xff] %v6727_v46  ;;  %v6764_v46 = vld [vmem:[%s6337_s15 + $0x62] sm:$0xff]  ;;  %v6824_v36 = vld [vmem:[%s6337_s15 + $0x3a] sm:$0xff] }
 0x185   : > { %7565 = vst [vmem:[#allocation13_spill] sm:$0xff] %v6747_v15  ;;  %v6827_v26 = vld [vmem:[%s6337_s15 + $0xfa] sm:$0xff] }
 0x186   : > { %7566 = vst [vmem:[#allocation14_spill] sm:$0xff] %v6764_v46 }
 0x187   : > { %4869 = vmatpush.xpose.msk.msrb.mxu0 %vm346_vm0, %v6714_v42  ;;  %4887 = vmatpush.xpose.msk.msrb.mxu1 %vm346_vm0, %v6717_v54  ;;  %7567 = vst [vmem:[#allocation15_spill] sm:$0xff] %v6767_v49 }
 0x188   : > { %4907 = vmatpush.xpose.msk.msrb.mxu2 %vm346_vm0, %v6720_v20  ;;  %4925 = vmatpush.xpose.msk.msrb.mxu3 %vm346_vm0, %v6723_v48  ;;  %v6804_v48 = vld [vmem:[%s6337_s15 + $0x4a] sm:$0xff]  ;;  %7572 = vst [vmem:[#allocation20_spill] sm:$0xff] %v6824_v36 }
 0x189   : > { %7570 = vst [vmem:[#allocation18_spill] sm:$0xff] %v6804_v48  ;;  %v6807_v20 = vld [vmem:[%s6337_s15 + $0x10a] sm:$0xff] }
 0x18a   : > { %7571 = vst [vmem:[#allocation19_spill] sm:$0xff] %v6807_v20 }
 0x18b   : > { %4870 = vmatpush.xpose.msk.msrb.mxu0 %vm346_vm0, %v6738_v29  ;;  %4888 = vmatpush.xpose.msk.msrb.mxu1 %vm346_vm0, %v6741_v5  ;;  %7573 = vst [vmem:[#allocation21_spill] sm:$0xff] %v6827_v26 }
 0x18c   : > { %4908 = vmatpush.xpose.msk.msrb.mxu2 %vm346_vm0, %v6744_v34  ;;  %4926 = vmatpush.xpose.msk.msrb.mxu3 %vm346_vm0, %v6747_v15  ;;  %v6784_v15 = vld [vmem:[%s6337_s15 + $0x52] sm:$0xff]  ;;  %7575 = vst [vmem:[#allocation23_spill] sm:$0xff] %v6847_v52 }
 0x18d   : > { %7568 = vst [vmem:[#allocation16_spill] sm:$0xff] %v6784_v15  ;;  %v6787_v34 = vld [vmem:[%s6337_s15 + $0x112] sm:$0xff] }
 0x18e   : > { %7569 = vst [vmem:[#allocation17_spill] sm:$0xff] %v6787_v34 }
 0x18f   : > { %4871 = vmatpush.xpose.msk.msrb.mxu0 %vm346_vm0, %v6758_v37  ;;  %4889 = vmatpush.xpose.msk.msrb.mxu1 %vm346_vm0, %v6761_v40  ;;  %7580 = vst [vmem:[#allocation36_spill] sm:$0xff] %v6887_v58 }
 0x190   : > { %4909 = vmatpush.xpose.msk.msrb.mxu2 %vm346_vm0, %v6764_v46  ;;  %4927 = vmatpush.xpose.msk.msrb.mxu3 %vm346_vm0, %v6767_v49  ;;  %v6798_v49 = vld [vmem:[%s6337_s15 + $0x49] sm:$0xff]  ;;  %7582 = vst [vmem:[#allocation38_spill] sm:$0xff] %v6906_v22 }
 0x191   : > { %v6801_v46 = vld [vmem:[%s6337_s15 + $0x109] sm:$0xff] }
 0x193   : > { %4872 = vmatpush.xpose.msk.msrb.mxu0 %vm346_vm0, %v6778_v23  ;;  %4890 = vmatpush.xpose.msk.msrb.mxu1 %vm346_vm0, %v6781_v18 }
 0x194   : > { %4910 = vmatpush.xpose.msk.msrb.mxu2 %vm346_vm0, %v6784_v15  ;;  %4928 = vmatpush.xpose.msk.msrb.mxu3 %vm346_vm0, %v6787_v34  ;;  %v6818_v34 = vld [vmem:[%s6337_s15 + $0x39] sm:$0xff] }
 0x195   : > { %v6821_v15 = vld [vmem:[%s6337_s15 + $0xf9] sm:$0xff] }
 0x197   : > { %4873 = vmatpush.xpose.msk.msrb.mxu0 %vm346_vm0, %v6798_v49  ;;  %4891 = vmatpush.xpose.msk.msrb.mxu1 %vm346_vm0, %v6801_v46 }
 0x198   : > { %4911 = vmatpush.xpose.msk.msrb.mxu2 %vm346_vm0, %v6804_v48  ;;  %4929 = vmatpush.xpose.msk.msrb.mxu3 %vm346_vm0, %v6807_v20  ;;  %v6838_v20 = vld [vmem:[%s6337_s15 + $0x31] sm:$0xff] }
 0x199   : > { %v6841_v48 = vld [vmem:[%s6337_s15 + $0xf1] sm:$0xff] }
 0x19b   : > { %4874 = vmatpush.xpose.msk.msrb.mxu0 %vm346_vm0, %v6818_v34  ;;  %4892 = vmatpush.xpose.msk.msrb.mxu1 %vm346_vm0, %v6821_v15 }
 0x19c   : > { %4912 = vmatpush.xpose.msk.msrb.mxu2 %vm346_vm0, %v6824_v36  ;;  %4930 = vmatpush.xpose.msk.msrb.mxu3 %vm346_vm0, %v6827_v26  ;;  %v6858_v26 = vld [vmem:[%s6337_s15 + $0x21] sm:$0xff] }
 0x19d   : > { %v6861_v36 = vld [vmem:[%s6337_s15 + $0xe1] sm:$0xff] }
 0x19f   : > { %4875 = vmatpush.xpose.msk.msrb.mxu0 %vm346_vm0, %v6838_v20  ;;  %4893 = vmatpush.xpose.msk.msrb.mxu1 %vm346_vm0, %v6841_v48 }
 0x1a0   : > { %4913 = vmatpush.xpose.msk.msrb.mxu2 %vm346_vm0, %v6844_v53  ;;  %4931 = vmatpush.xpose.msk.msrb.mxu3 %vm346_vm0, %v6847_v52  ;;  %v6878_v52 = vld [vmem:[%s6337_s15 + $0x19] sm:$0xff] }
 0x1a1   : > { %7578 = vst [vmem:[#allocation35_spill] sm:$0xff] %v6878_v52  ;;  %v6881_v53 = vld [vmem:[%s6337_s15 + $0xd9] sm:$0xff] }
 0x1a2   : > { %7579 = vst [vmem:[#allocation34_spill] sm:$0xff] %v6881_v53 }
 0x1a3   : > { %4876 = vmatpush.xpose.msk.msrb.mxu0 %vm346_vm0, %v6858_v26  ;;  %4894 = vmatpush.xpose.msk.msrb.mxu1 %vm346_vm0, %v6861_v36 }
 0x1a4   : > { %4914 = vmatpush.xpose.msk.msrb.mxu2 %vm346_vm0, %v6864_v45  ;;  %4932 = vmatpush.xpose.msk.msrb.mxu3 %vm346_vm0, %v6867_v44  ;;  %v2429_v44 = vld [vmem:[%s6337_s15 + $0x9] sm:$0xff] }
 0x1a5   : > { %v6902_v45 = vld [vmem:[%s6337_s15 + $0xc9] sm:$0xff] }
 0x1a7   : > { %4877 = vmatpush.xpose.msk.msrb.mxu0 %vm346_vm0, %v6878_v52  ;;  %4895 = vmatpush.xpose.msk.msrb.mxu1 %vm346_vm0, %v6881_v53  ;;  %v5321_v52 = vld [vmem:[%s7391_s3 + $0x88] sm:$0xff] }
 0x1a8   : > { %4915 = vmatpush.xpose.msk.msrb.mxu2 %vm346_vm0, %v6887_v58  ;;  %4933 = vmatpush.xpose.msk.msrb.mxu3 %vm346_vm0, %v6890_v14  ;;  %v2428_v14 = vld [vmem:[%s6337_s15 + $0x1] sm:$0xff] }
 0x1a9   : > { %v6919_v58 = vld [vmem:[%s6337_s15 + $0xc1] sm:$0xff]  ;;  %3999 = vxpose.xlu1.b32.end [2/2] (short) (narrow) %v5321_v52, 16 }
 0x1aa   : > { %v2647_v53 = vld [vmem:[%s6337_s15 + $0x2] sm:$0xff] }
 0x1ab   : > { %4878 = vmatpush.xpose.msk.msrb.mxu0 %vm346_vm0, %v2429_v44  ;;  %4896 = vmatpush.xpose.msk.msrb.mxu1 %vm346_vm0, %v6902_v45  ;;  %v2479_v44 = vpop.trf.xlu2  ;;  %v6951_v52 = vld [vmem:[%s6337_s15 + $0x181] sm:$0xff] }
 0x1ac   : > { %4916 = vmatpush.xpose.msk.msrb.mxu2 %vm346_vm0, %v2648_v35  ;;  %4934 = vmatpush.xpose.msk.msrb.mxu3 %vm346_vm0, %v6906_v22  ;;  %v6932_v35 = vld [vmem:[%s6337_s15 + $0x189] sm:$0xff]  ;;  %v2698_v22 = vpop.trf.xlu1 }
 0x1af   : > { %4879 = vmatpush.xpose.msk.msrb.mxu0 %vm346_vm0, %v2428_v14  ;;  %4897 = vmatpush.xpose.msk.msrb.mxu1 %vm346_vm0, %v6919_v58  ;;  %v6946_v14 = vld [vmem:[%s6337_s15 + $0x180] sm:$0xff] }
 0x1b0   : > { %4917 = vmatpush.xpose.msk.msrb.mxu2 %vm346_vm0, %v2647_v53  ;;  %4935 = vmatpush.xpose.msk.msrb.mxu3 %vm346_vm0, %v6923_v1  ;;  %v5250_v53 = vld [vmem:[%s7391_s3 + $0x70] sm:$0xff] }
 0x1b1   : > { %3779 = vxpose.xlu2.b32.start [1/2] (short) (narrow) %v5250_v53, 16  ;;  %v7605_v53 = vld [vmem:[#allocation17_spill] sm:$0xff] }
 0x1b2   : > { %4880 = vmatmul.msk.f32.vlgmr.msrb.gmra.mxu0 %vm346_vm0, %v2479_v44  ;;  %4898 = vmatmul.msk.f32.vlgmr.msrb.gmra.mxu1 %vm346_vm0, %v2479_v44 }
 0x1b3   : > { %4972 = vmatpush.xpose.msk.msra.mxu0 %vm346_vm0, %v6568_v24  ;;  %4990 = vmatpush.xpose.msk.msra.mxu1 %vm346_vm0, %v6926_v19  ;;  %v2480_v44 = vpop.trf.xlu2 }
 0x1b4   : > { %5042 = vmatpush.xpose.msk.msra.mxu2 %vm346_vm0, %v6902_v45  ;;  %5060 = vmatpush.xpose.msk.msra.mxu3 %vm346_vm0, %v6932_v35 }
 0x1b5   : > { %4918 = vmatmul.msk.f32.vlgmr.msrb.gmra.mxu2 %vm346_vm0, %v2698_v22  ;;  %4936 = vmatmul.msk.f32.vlgmr.msrb.gmra.mxu3 %vm346_vm0, %v2698_v22  ;;  %v2699_v22 = vpop.trf.xlu1 }
 0x1b7   : > { %4973 = vmatpush.xpose.msk.msra.mxu0 %vm346_vm0, %v6582_v30  ;;  %4991 = vmatpush.xpose.msk.msra.mxu1 %vm346_vm0, %v6946_v14 }
 0x1b8   : > { %5043 = vmatpush.xpose.msk.msra.mxu2 %vm346_vm0, %v6919_v58  ;;  %5061 = vmatpush.xpose.msk.msra.mxu3 %vm346_vm0, %v6951_v52 }
 0x1ba   : > { %4881 = vmatmul.msk.f32.gmra.mxu0 %vm346_vm0, %v2480_v44  ;;  %4899 = vmatmul.msk.f32.gmra.mxu1 %vm346_vm0, %v2480_v44  ;;  %v5152_v44 = vld [vmem:[%s6337_s15 + $0x60] sm:$0xff] }
 0x1bb   : > { %4974 = vmatpush.xpose.msk.msra.mxu0 %vm346_vm0, %v6349_v0  ;;  %4992 = vmatpush.xpose.msk.msra.mxu1 %vm346_vm0, %v6352_v38  ;;  %v5251_v0 = vld [vmem:[%s7391_s3 + $0x78] sm:$0xff]  ;;  %v7078_v38 = vld [vmem:[%s6337_s15 + $0x18a] sm:$0xff] }
 0x1bc   : > { %5044 = vmatpush.xpose.msk.msra.mxu2 %vm346_vm0, %v6585_v62  ;;  %5062 = vmatpush.xpose.msk.msra.mxu3 %vm346_vm0, %v6588_v28  ;;  %v7597_v62 = vld [vmem:[#allocation7_spill] sm:$0xff]  ;;  %v5156_v28 = vld [vmem:[%s6337_s15 + $0x90] sm:$0xff] }
 0x1bd   : > { %4919 = vmatmul.msk.f32.gmra.mxu2 %vm346_vm0, %v2699_v22  ;;  %4937 = vmatmul.msk.f32.gmra.mxu3 %vm346_vm0, %v2699_v22  ;;  %v5168_v22 = vld [vmem:[%s6337_s15 + $0x120] sm:$0xff] }
 0x1be   : > { %3780 = vxpose.xlu2.b32.end [2/2] (short) (narrow) %v5251_v0, 16  ;;  %v7606_v0 = vld [vmem:[#allocation18_spill] sm:$0xff] }
 0x1bf   : > { %4975 = vmatpush.xpose.msk.msra.mxu0 %vm346_vm0, %v6369_v56  ;;  %4993 = vmatpush.xpose.msk.msra.mxu1 %vm346_vm0, %v6372_v57  ;;  %v7583_v57 = vld [vmem:[#allocation26_spill] sm:$0xff] }
 0x1c0   : > { %5045 = vmatpush.xpose.msk.msra.mxu2 %vm346_vm0, %v6612_v39  ;;  %5063 = vmatpush.xpose.msk.msra.mxu3 %vm346_vm0, %v6615_v21  ;;  %v5172_v39 = vld [vmem:[%s6337_s15 + $0x150] sm:$0xff] }
 0x1c1   : > { %v2918_v56 = vpop.trf.xlu1  ;;  %v7598_v21 = vld [vmem:[#allocation8_spill] sm:$0xff] }
 0x1c3   : > { %4976 = vmatpush.xpose.msk.msra.mxu0 %vm346_vm0, %v6384_v51  ;;  %4994 = vmatpush.xpose.msk.msra.mxu1 %vm346_vm0, %v6387_v50  ;;  %v7584_v51 = vld [vmem:[#allocation27_spill] sm:$0xff]  ;;  %v5179_v50 = vld [vmem:[%s6337_s15 + $0x1a0] sm:$0xff] }
 0x1c4   : > { %5046 = vmatpush.xpose.msk.msra.mxu2 %vm346_vm0, %v6641_v31  ;;  %5064 = vmatpush.xpose.msk.msra.mxu3 %vm346_vm0, %v6644_v41  ;;  %v7599_v31 = vld [vmem:[#allocation9_spill] sm:$0xff]  ;;  %v5155_v41 = vld [vmem:[%s6337_s15 + $0x80] sm:$0xff] }
 0x1c7   : > { %4977 = vmatpush.xpose.msk.msra.mxu0 %vm346_vm0, %v6400_v6  ;;  %4995 = vmatpush.xpose.msk.msra.mxu1 %vm346_vm0, %v6403_v10  ;;  %v3137_v6 = vpop.trf.xlu0  ;;  %v7585_v10 = vld [vmem:[#allocation35_spill] sm:$0xff] }
 0x1c8   : > { %5047 = vmatpush.xpose.msk.msra.mxu2 %vm346_vm0, %v6661_v27  ;;  %5065 = vmatpush.xpose.msk.msra.mxu3 %vm346_vm0, %v6664_v60  ;;  %v5171_v27 = vld [vmem:[%s6337_s15 + $0x140] sm:$0xff]  ;;  %v7600_v60 = vld [vmem:[#allocation12_spill] sm:$0xff] }
 0x1cb   : > { %4978 = vmatpush.xpose.msk.msra.mxu0 %vm346_vm0, %v6416_v59  ;;  %4996 = vmatpush.xpose.msk.msra.mxu1 %vm346_vm0, %v6419_v11  ;;  %v7586_v59 = vld [vmem:[#allocation34_spill] sm:$0xff] }
 0x1cc   : > { %5048 = vmatpush.xpose.msk.msra.mxu2 %vm346_vm0, %v6694_v4  ;;  %5066 = vmatpush.xpose.msk.msra.mxu3 %vm346_vm0, %v6697_v25  ;;  %v7587_v11 = vld [vmem:[#allocation38_spill] sm:$0xff]  ;;  %v7601_v4 = vld [vmem:[#allocation13_spill] sm:$0xff] }
 0x1cd   : > { %v5154_v25 = vld [vmem:[%s6337_s15 + $0x78] sm:$0xff] }
 0x1cf   : > { %4979 = vmatpush.xpose.msk.msra.mxu0 %vm346_vm0, %v6430_v32  ;;  %4997 = vmatpush.xpose.msk.msra.mxu1 %vm346_vm0, %v6433_v33  ;;  %v7097_v32 = vld [vmem:[%s6337_s15 + $0x182] sm:$0xff]  ;;  %v5178_v33 = vld [vmem:[%s6337_s15 + $0x198] sm:$0xff] }
 0x1d0   : > { %5049 = vmatpush.xpose.msk.msra.mxu2 %vm346_vm0, %v6714_v42  ;;  %5067 = vmatpush.xpose.msk.msra.mxu3 %vm346_vm0, %v6717_v54  ;;  %v7602_v42 = vld [vmem:[#allocation14_spill] sm:$0xff]  ;;  %v7603_v54 = vld [vmem:[#allocation15_spill] sm:$0xff] }
 0x1d3   : > { %4980 = vmatpush.xpose.msk.msra.mxu0 %vm346_vm0, %v6444_v2  ;;  %4998 = vmatpush.xpose.msk.msra.mxu1 %vm346_vm0, %v6447_v3  ;;  %v2919_v2 = vpop.trf.xlu1  ;;  %v7588_v3 = vld [vmem:[#allocation28_spill] sm:$0xff] }
 0x1d4   : > { %5050 = vmatpush.xpose.msk.msra.mxu2 %vm346_vm0, %v6738_v29  ;;  %5068 = vmatpush.xpose.msk.msra.mxu3 %vm346_vm0, %v6741_v5  ;;  %v5153_v29 = vld [vmem:[%s6337_s15 + $0x68] sm:$0xff] }
 0x1d5   : > { %v5169_v5 = vld [vmem:[%s6337_s15 + $0x128] sm:$0xff] }
 0x1d7   : > { %4981 = vmatpush.xpose.msk.msra.mxu0 %vm346_vm0, %v6464_v43  ;;  %4999 = vmatpush.xpose.msk.msra.mxu1 %vm346_vm0, %v6467_v16  ;;  %v7589_v43 = vld [vmem:[#allocation29_spill] sm:$0xff]  ;;  %v3138_v16 = vpop.trf.xlu0 }
 0x1d8   : > { %5051 = vmatpush.xpose.msk.msra.mxu2 %vm346_vm0, %v6758_v37  ;;  %5069 = vmatpush.xpose.msk.msra.mxu3 %vm346_vm0, %v6761_v40 }
 0x1db   : > { %4982 = vmatpush.xpose.msk.msra.mxu0 %vm346_vm0, %v6478_v47  ;;  %5000 = vmatpush.xpose.msk.msra.mxu1 %vm346_vm0, %v6481_v63  ;;  %v7590_v47 = vld [vmem:[#allocation30_spill] sm:$0xff]  ;;  %v7591_v63 = vld [vmem:[#allocation32_spill] sm:$0xff] }
 0x1dc   : > { %5052 = vmatpush.xpose.msk.msra.mxu2 %vm346_vm0, %v6778_v23  ;;  %5070 = vmatpush.xpose.msk.msra.mxu3 %vm346_vm0, %v6781_v18 }
 0x1df   : > { %4983 = vmatpush.xpose.msk.msra.mxu0 %vm346_vm0, %v6490_v55  ;;  %5001 = vmatpush.xpose.msk.msra.mxu1 %vm346_vm0, %v6493_v8  ;;  %v5159_v55 = vld [vmem:[%s6337_s15 + $0xb0] sm:$0xff] }
 0x1e0   : > { %5053 = vmatpush.xpose.msk.msra.mxu2 %vm346_vm0, %v6798_v49  ;;  %5071 = vmatpush.xpose.msk.msra.mxu3 %vm346_vm0, %v6801_v46  ;;  %v5175_v8 = vld [vmem:[%s6337_s15 + $0x170] sm:$0xff] }
 0x1e3   : > { %4984 = vmatpush.xpose.msk.msra.mxu0 %vm346_vm0, %v6508_v17  ;;  %5002 = vmatpush.xpose.msk.msra.mxu1 %vm346_vm0, %v6511_v61  ;;  %v7592_v17 = vld [vmem:[#allocation31_spill] sm:$0xff]  ;;  %v7593_v61 = vld [vmem:[#allocation33_spill] sm:$0xff] }
 0x1e4   : > { %5054 = vmatpush.xpose.msk.msra.mxu2 %vm346_vm0, %v6818_v34  ;;  %5072 = vmatpush.xpose.msk.msra.mxu3 %vm346_vm0, %v6821_v15 }
 0x1e7   : > { %4985 = vmatpush.xpose.msk.msra.mxu0 %vm346_vm0, %v6522_v7  ;;  %5003 = vmatpush.xpose.msk.msra.mxu1 %vm346_vm0, %v6525_v9  ;;  %v5158_v7 = vld [vmem:[%s6337_s15 + $0xa8] sm:$0xff] }
 0x1e8   : > { %5055 = vmatpush.xpose.msk.msra.mxu2 %vm346_vm0, %v6838_v20  ;;  %5073 = vmatpush.xpose.msk.msra.mxu3 %vm346_vm0, %v6841_v48  ;;  %v5174_v9 = vld [vmem:[%s6337_s15 + $0x168] sm:$0xff] }
 0x1eb   : > { %4986 = vmatpush.xpose.msk.msra.mxu0 %vm346_vm0, %v6536_v12  ;;  %5004 = vmatpush.xpose.msk.msra.mxu1 %vm346_vm0, %v6539_v13  ;;  %v7594_v12 = vld [vmem:[#allocation2_spill] sm:$0xff] }
 0x1ec   : > { %5056 = vmatpush.xpose.msk.msra.mxu2 %vm346_vm0, %v6858_v26  ;;  %5074 = vmatpush.xpose.msk.msra.mxu3 %vm346_vm0, %v6861_v36  ;;  %v5170_v26 = vld [vmem:[%s6337_s15 + $0x138] sm:$0xff] }
 0x1ef   : > { %4987 = vmatpush.xpose.msk.msra.mxu0 %vm346_vm0, %v7583_v57  ;;  %5005 = vmatpush.xpose.msk.msra.mxu1 %vm346_vm0, %v7584_v51  ;;  %v5151_v57 = vld [vmem:[%s6337_s15 + $0x50] sm:$0xff] }
 0x1f0   : > { %5057 = vmatpush.xpose.msk.msra.mxu2 %vm346_vm0, %v7585_v10  ;;  %5075 = vmatpush.xpose.msk.msra.mxu3 %vm346_vm0, %v7586_v59  ;;  %v5150_v10 = vld [vmem:[%s6337_s15 + $0x48] sm:$0xff] }
 0x1f2   : > { %4988 = vmatmul.msk.f32.vlgmr.msra.gmra.mxu0 %vm346_vm0, %v2918_v56  ;;  %5006 = vmatmul.msk.f32.vlgmr.msra.gmra.mxu1 %vm346_vm0, %v2918_v56  ;;  %v7607_v56 = vld [vmem:[#allocation19_spill] sm:$0xff] }
 0x1f3   : > { %5112 = vmatpush.xpose.msk.msrb.mxu0 %vm346_vm0, %v7587_v11  ;;  %5130 = vmatpush.xpose.msk.msrb.mxu1 %vm346_vm0, %v7078_v38 }
 0x1f4   : > { %5182 = vmatpush.xpose.msk.msrb.mxu2 %vm346_vm0, %v6539_v13  ;;  %5200 = vmatpush.xpose.msk.msrb.mxu3 %vm346_vm0, %v5179_v50  ;;  %v7595_v13 = vld [vmem:[#allocation3_spill] sm:$0xff]  ;;  %v7608_v50 = vld [vmem:[#allocation20_spill] sm:$0xff] }
 0x1f5   : > { %5058 = vmatmul.msk.f32.vlgmr.msra.gmra.mxu2 %vm346_vm0, %v3137_v6  ;;  %5076 = vmatmul.msk.f32.vlgmr.msra.gmra.mxu3 %vm346_vm0, %v3137_v6  ;;  %v7609_v6 = vld [vmem:[#allocation21_spill] sm:$0xff] }
 0x1f7   : > { %5113 = vmatpush.xpose.msk.msrb.mxu0 %vm346_vm0, %v6923_v1  ;;  %5131 = vmatpush.xpose.msk.msrb.mxu1 %vm346_vm0, %v7097_v32 }
 0x1f8   : > { %5183 = vmatpush.xpose.msk.msrb.mxu2 %vm346_vm0, %v7584_v51  ;;  %5201 = vmatpush.xpose.msk.msrb.mxu3 %vm346_vm0, %v5178_v33  ;;  %v5167_v51 = vld [vmem:[%s6337_s15 + $0x110] sm:$0xff]  ;;  %v5166_v33 = vld [vmem:[%s6337_s15 + $0x108] sm:$0xff] }
 0x1fa   : > { %4989 = vmatmul.msk.f32.gmra.mxu0 %vm346_vm0, %v2919_v2  ;;  %5007 = vmatmul.msk.f32.gmra.mxu1 %vm346_vm0, %v2919_v2  ;;  %v7610_v2 = vld [vmem:[#allocation22_spill] sm:$0xff] }
 0x1fb   : > { %5114 = vmatpush.xpose.msk.msrb.mxu0 %vm346_vm0, %v7588_v3  ;;  %5132 = vmatpush.xpose.msk.msrb.mxu1 %vm346_vm0, %v7589_v43  ;;  %v7611_v3 = vld [vmem:[#allocation23_spill] sm:$0xff]  ;;  %v5149_v43 = vld [vmem:[%s6337_s15 + $0x38] sm:$0xff] }
 0x1fc   : > { %5184 = vmatpush.xpose.msk.msrb.mxu2 %vm346_vm0, %v6568_v24  ;;  %5202 = vmatpush.xpose.msk.msrb.mxu3 %vm346_vm0, %v6926_v19  ;;  %v5157_v19 = vld [vmem:[%s6337_s15 + $0x98] sm:$0xff] }
 0x1fd   : > { %5059 = vmatmul.msk.f32.gmra.mxu2 %vm346_vm0, %v3138_v16  ;;  %5077 = vmatmul.msk.f32.gmra.mxu3 %vm346_vm0, %v3138_v16  ;;  %v5173_v24 = vld [vmem:[%s6337_s15 + $0x158] sm:$0xff] }
 0x1fe   : > { %v5165_v16 = vld [vmem:[%s6337_s15 + $0xf8] sm:$0xff] }
 0x1ff   : > { %5115 = vmatpush.xpose.msk.msrb.mxu0 %vm346_vm0, %v7590_v47  ;;  %5133 = vmatpush.xpose.msk.msrb.mxu1 %vm346_vm0, %v7591_v63  ;;  %v7612_v47 = vld [vmem:[#allocation24_spill] sm:$0xff]  ;;  %v7613_v63 = vld [vmem:[#allocation25_spill] sm:$0xff] }
 0x200   : > { %5185 = vmatpush.xpose.msk.msrb.mxu2 %vm346_vm0, %v6582_v30  ;;  %5203 = vmatpush.xpose.msk.msrb.mxu3 %vm346_vm0, %v6946_v14  ;;  %v7596_v30 = vld [vmem:[#allocation6_spill] sm:$0xff]  ;;  %v7604_v14 = vld [vmem:[#allocation16_spill] sm:$0xff] }
 0x203   : > { %5116 = vmatpush.xpose.msk.msrb.mxu0 %vm346_vm0, %v7592_v17  ;;  %5134 = vmatpush.xpose.msk.msrb.mxu1 %vm346_vm0, %v7593_v61  ;;  %v5249_v17 = vld [vmem:[%s6337_s15 + $0x1a1] sm:$0xff] }
 0x204   : > { %5186 = vmatpush.xpose.msk.msrb.mxu2 %vm346_vm0, %v5159_v55  ;;  %5204 = vmatpush.xpose.msk.msrb.mxu3 %vm346_vm0, %v5175_v8  ;;  %v5148_v55 = vld [vmem:[%s6337_s15 + $0x30] sm:$0xff] }
 0x205   : > { %v5164_v8 = vld [vmem:[%s6337_s15 + $0xf0] sm:$0xff]  ;;  %v3356_v61 = vpop.trf.xlu0 }
 0x207   : > { %5117 = vmatpush.xpose.msk.msrb.mxu0 %vm346_vm0, %v7594_v12  ;;  %5135 = vmatpush.xpose.msk.msrb.mxu1 %vm346_vm0, %v7595_v13  ;;  %v5319_v12 = vld [vmem:[%s6337_s15 + $0x1a2] sm:$0xff]  ;;  %v3576_v13 = vpop.trf.xlu2 }
 0x208   : > { %5187 = vmatpush.xpose.msk.msrb.mxu2 %vm346_vm0, %v5158_v7  ;;  %5205 = vmatpush.xpose.msk.msrb.mxu3 %vm346_vm0, %v5174_v9  ;;  %v7614_v7 = vld [vmem:[#allocation36_spill] sm:$0xff]  ;;  %v7615_v9 = vld [vmem:[#allocation37_spill] sm:$0xff] }
 0x20b   : > { %5118 = vmatpush.xpose.msk.msrb.mxu0 %vm346_vm0, %v7596_v30  ;;  %5136 = vmatpush.xpose.msk.msrb.mxu1 %vm346_vm0, %v7597_v62  ;;  %v5243_v62 = vld [vmem:[%s6337_s15 + $0x159] sm:$0xff] }
 0x20c   : > { %5188 = vmatpush.xpose.msk.msrb.mxu2 %vm346_vm0, %v5157_v19  ;;  %5206 = vmatpush.xpose.msk.msrb.mxu3 %vm346_vm0, %v5173_v24  ;;  %v5248_v19 = vld [vmem:[%s6337_s15 + $0x199] sm:$0xff] }
 0x20d   : > { %v5318_v24 = vld [vmem:[%s6337_s15 + $0x19a] sm:$0xff] }
 0x20f   : > { %5119 = vmatpush.xpose.msk.msrb.mxu0 %vm346_vm0, %v7598_v21  ;;  %5137 = vmatpush.xpose.msk.msrb.mxu1 %vm346_vm0, %v7599_v31  ;;  %v3577_v30 = vpop.trf.xlu2  ;;  %v5226_v21 = vld [vmem:[%s6337_s15 + $0x91] sm:$0xff] }
 0x210   : > { %5189 = vmatpush.xpose.msk.msrb.mxu2 %vm346_vm0, %v5156_v28  ;;  %5207 = vmatpush.xpose.msk.msrb.mxu3 %vm346_vm0, %v5172_v39  ;;  %v5297_v28 = vld [vmem:[%s6337_s15 + $0x9a] sm:$0xff]  ;;  %v5242_v31 = vld [vmem:[%s6337_s15 + $0x151] sm:$0xff] }
 0x211   : > { %v5313_v39 = vld [vmem:[%s6337_s15 + $0x15a] sm:$0xff] }
 0x213   : > { %5120 = vmatpush.xpose.msk.msrb.mxu0 %vm346_vm0, %v7600_v60  ;;  %5138 = vmatpush.xpose.msk.msrb.mxu1 %vm346_vm0, %v7601_v4  ;;  %v5225_v60 = vld [vmem:[%s6337_s15 + $0x81] sm:$0xff] }
 0x214   : > { %5190 = vmatpush.xpose.msk.msrb.mxu2 %vm346_vm0, %v5155_v41  ;;  %5208 = vmatpush.xpose.msk.msrb.mxu3 %vm346_vm0, %v5171_v27  ;;  %v5296_v41 = vld [vmem:[%s6337_s15 + $0x92] sm:$0xff]  ;;  %v5241_v4 = vld [vmem:[%s6337_s15 + $0x141] sm:$0xff] }
 0x215   : > { %v5312_v27 = vld [vmem:[%s6337_s15 + $0x152] sm:$0xff] }
 0x217   : > { %5121 = vmatpush.xpose.msk.msrb.mxu0 %vm346_vm0, %v7602_v42  ;;  %5139 = vmatpush.xpose.msk.msrb.mxu1 %vm346_vm0, %v7603_v54 }
 0x218   : > { %5191 = vmatpush.xpose.msk.msrb.mxu2 %vm346_vm0, %v5154_v25  ;;  %5209 = vmatpush.xpose.msk.msrb.mxu3 %vm346_vm0, %v5170_v26  ;;  %v5295_v25 = vld [vmem:[%s6337_s15 + $0x82] sm:$0xff] }
 0x219   : > { %v5311_v26 = vld [vmem:[%s6337_s15 + $0x142] sm:$0xff] }
 0x21b   : > { %5122 = vmatpush.xpose.msk.msrb.mxu0 %vm346_vm0, %v7604_v14  ;;  %5140 = vmatpush.xpose.msk.msrb.mxu1 %vm346_vm0, %v7605_v53 }
 0x21c   : > { %5192 = vmatpush.xpose.msk.msrb.mxu2 %vm346_vm0, %v5153_v29  ;;  %5210 = vmatpush.xpose.msk.msrb.mxu3 %vm346_vm0, %v5169_v5  ;;  %v5224_v29 = vld [vmem:[%s6337_s15 + $0x79] sm:$0xff] }
 0x21d   : > { %v5240_v5 = vld [vmem:[%s6337_s15 + $0x139] sm:$0xff] }
 0x21f   : > { %5123 = vmatpush.xpose.msk.msrb.mxu0 %vm346_vm0, %v7606_v0  ;;  %5141 = vmatpush.xpose.msk.msrb.mxu1 %vm346_vm0, %v7607_v56 }
 0x220   : > { %5193 = vmatpush.xpose.msk.msrb.mxu2 %vm346_vm0, %v5152_v44  ;;  %5211 = vmatpush.xpose.msk.msrb.mxu3 %vm346_vm0, %v5168_v22  ;;  %v5294_v44 = vld [vmem:[%s6337_s15 + $0x7a] sm:$0xff] }
 0x221   : > { %v5310_v22 = vld [vmem:[%s6337_s15 + $0x13a] sm:$0xff] }
 0x223   : > { %5124 = vmatpush.xpose.msk.msrb.mxu0 %vm346_vm0, %v7608_v50  ;;  %5142 = vmatpush.xpose.msk.msrb.mxu1 %vm346_vm0, %v7609_v6 }
 0x224   : > { %5194 = vmatpush.xpose.msk.msrb.mxu2 %vm346_vm0, %v5151_v57  ;;  %5212 = vmatpush.xpose.msk.msrb.mxu3 %vm346_vm0, %v5167_v51  ;;  %v5223_v57 = vld [vmem:[%s6337_s15 + $0x69] sm:$0xff] }
 0x225   : > { %v5239_v51 = vld [vmem:[%s6337_s15 + $0x129] sm:$0xff] }
 0x227   : > { %5125 = vmatpush.xpose.msk.msrb.mxu0 %vm346_vm0, %v7610_v2  ;;  %5143 = vmatpush.xpose.msk.msrb.mxu1 %vm346_vm0, %v7611_v3 }
 0x228   : > { %5195 = vmatpush.xpose.msk.msrb.mxu2 %vm346_vm0, %v5150_v10  ;;  %5213 = vmatpush.xpose.msk.msrb.mxu3 %vm346_vm0, %v5166_v33  ;;  %v5293_v10 = vld [vmem:[%s6337_s15 + $0x6a] sm:$0xff] }
 0x229   : > { %v5309_v33 = vld [vmem:[%s6337_s15 + $0x12a] sm:$0xff] }
 0x22b   : > { %5126 = vmatpush.xpose.msk.msrb.mxu0 %vm346_vm0, %v7612_v47  ;;  %5144 = vmatpush.xpose.msk.msrb.mxu1 %vm346_vm0, %v7613_v63 }
 0x22c   : > { %5196 = vmatpush.xpose.msk.msrb.mxu2 %vm346_vm0, %v5149_v43  ;;  %5214 = vmatpush.xpose.msk.msrb.mxu3 %vm346_vm0, %v5165_v16 }
 0x22f   : > { %5127 = vmatpush.xpose.msk.msrb.mxu0 %vm346_vm0, %v7614_v7  ;;  %5145 = vmatpush.xpose.msk.msrb.mxu1 %vm346_vm0, %v7615_v9 }
 0x230   : > { %5197 = vmatpush.xpose.msk.msrb.mxu2 %vm346_vm0, %v5148_v55  ;;  %5215 = vmatpush.xpose.msk.msrb.mxu3 %vm346_vm0, %v5164_v8 }
 0x232   : > { %5128 = vmatmul.msk.f32.vlgmr.msrb.gmra.mxu0 %vm346_vm0, %v3356_v61  ;;  %5146 = vmatmul.msk.f32.vlgmr.msrb.gmra.mxu1 %vm346_vm0, %v3356_v61 }
 0x233   : > { %5252 = vmatpush.xpose.msk.msra.mxu0 %vm346_vm0, %v6861_v36  ;;  %5270 = vmatpush.xpose.msk.msra.mxu1 %vm346_vm0, %v5249_v17  ;;  %v3357_v36 = vpop.trf.xlu0 }
 0x234   : > { %5322 = vmatpush.xpose.msk.msra.mxu2 %vm346_vm0, %v7613_v63  ;;  %5340 = vmatpush.xpose.msk.msra.mxu3 %vm346_vm0, %v5319_v12 }
 0x235   : > { %5198 = vmatmul.msk.f32.vlgmr.msrb.gmra.mxu2 %vm346_vm0, %v3576_v13  ;;  %5216 = vmatmul.msk.f32.vlgmr.msrb.gmra.mxu3 %vm346_vm0, %v3576_v13 }
 0x237   : > { %5253 = vmatpush.xpose.msk.msra.mxu0 %vm346_vm0, %v7586_v59  ;;  %5271 = vmatpush.xpose.msk.msra.mxu1 %vm346_vm0, %v5248_v19  ;;  %v5315_v59 = vld [vmem:[%s6337_s15 + $0x172] sm:$0xff] }
 0x238   : > { %5323 = vmatpush.xpose.msk.msra.mxu2 %vm346_vm0, %v7615_v9  ;;  %5341 = vmatpush.xpose.msk.msra.mxu3 %vm346_vm0, %v5318_v24 }
 0x23a   : > { %5129 = vmatmul.msk.f32.gmra.mxu0 %vm346_vm0, %v3357_v36  ;;  %5147 = vmatmul.msk.f32.gmra.mxu1 %vm346_vm0, %v3357_v36 }
 0x23b   : > { %5254 = vmatpush.xpose.msk.msra.mxu0 %vm346_vm0, %v6902_v45  ;;  %5272 = vmatpush.xpose.msk.msra.mxu1 %vm346_vm0, %v6932_v35  ;;  %v5229_v45 = vld [vmem:[%s6337_s15 + $0xb1] sm:$0xff] }
 0x23c   : > { %5324 = vmatpush.xpose.msk.msra.mxu2 %vm346_vm0, %v7587_v11  ;;  %5342 = vmatpush.xpose.msk.msra.mxu3 %vm346_vm0, %v7078_v38  ;;  %v5245_v35 = vld [vmem:[%s6337_s15 + $0x171] sm:$0xff] }
 0x23d   : > { %5199 = vmatmul.msk.f32.gmra.mxu2 %vm346_vm0, %v3577_v30  ;;  %5217 = vmatmul.msk.f32.gmra.mxu3 %vm346_vm0, %v3577_v30  ;;  %v5299_v38 = vld [vmem:[%s6337_s15 + $0xb2] sm:$0xff]  ;;  %v5314_v11 = vld [vmem:[%s6337_s15 + $0x16a] sm:$0xff] }
 0x23f   : > { %5255 = vmatpush.xpose.msk.msra.mxu0 %vm346_vm0, %v6919_v58  ;;  %5273 = vmatpush.xpose.msk.msra.mxu1 %vm346_vm0, %v6951_v52  ;;  %v5244_v58 = vld [vmem:[%s6337_s15 + $0x169] sm:$0xff] }
 0x240   : > { %5325 = vmatpush.xpose.msk.msra.mxu2 %vm346_vm0, %v6923_v1  ;;  %5343 = vmatpush.xpose.msk.msra.mxu3 %vm346_vm0, %v7097_v32  ;;  %v5228_v1 = vld [vmem:[%s6337_s15 + $0xa9] sm:$0xff]  ;;  %v5227_v32 = vld [vmem:[%s6337_s15 + $0x99] sm:$0xff] }
 0x241   : > { %v5298_v52 = vld [vmem:[%s6337_s15 + $0xaa] sm:$0xff] }
 0x243   : > { %5256 = vmatpush.xpose.msk.msra.mxu0 %vm346_vm0, %v5229_v45  ;;  %5274 = vmatpush.xpose.msk.msra.mxu1 %vm346_vm0, %v5245_v35 }
 0x244   : > { %5326 = vmatpush.xpose.msk.msra.mxu2 %vm346_vm0, %v5299_v38  ;;  %5344 = vmatpush.xpose.msk.msra.mxu3 %vm346_vm0, %v5315_v59 }
 0x247   : > { %5257 = vmatpush.xpose.msk.msra.mxu0 %vm346_vm0, %v5228_v1  ;;  %5275 = vmatpush.xpose.msk.msra.mxu1 %vm346_vm0, %v5244_v58 }
 0x248   : > { %5327 = vmatpush.xpose.msk.msra.mxu2 %vm346_vm0, %v5298_v52  ;;  %5345 = vmatpush.xpose.msk.msra.mxu3 %vm346_vm0, %v5314_v11  ;;  %v7616_v52 = vld [vmem:[#allocation4_spill] sm:$0xff] }
 0x24b   : > { %5258 = vmatpush.xpose.msk.msra.mxu0 %vm346_vm0, %v5227_v32  ;;  %5276 = vmatpush.xpose.msk.msra.mxu1 %vm346_vm0, %v5243_v62  ;;  %v7617_v32 = vld [vmem:[#allocation5_spill] sm:$0xff] }
 0x24c   : > { %5328 = vmatpush.xpose.msk.msra.mxu2 %vm346_vm0, %v5297_v28  ;;  %5346 = vmatpush.xpose.msk.msra.mxu3 %vm346_vm0, %v5313_v39 }
 0x24f   : > { %5259 = vmatpush.xpose.msk.msra.mxu0 %vm346_vm0, %v5226_v21  ;;  %5277 = vmatpush.xpose.msk.msra.mxu1 %vm346_vm0, %v5242_v31 }
 0x250   : > { %5329 = vmatpush.xpose.msk.msra.mxu2 %vm346_vm0, %v5296_v41  ;;  %5347 = vmatpush.xpose.msk.msra.mxu3 %vm346_vm0, %v5312_v27 }
 0x253   : > { %5260 = vmatpush.xpose.msk.msra.mxu0 %vm346_vm0, %v5225_v60  ;;  %5278 = vmatpush.xpose.msk.msra.mxu1 %vm346_vm0, %v5241_v4 }
 0x254   : > { %5330 = vmatpush.xpose.msk.msra.mxu2 %vm346_vm0, %v5295_v25  ;;  %5348 = vmatpush.xpose.msk.msra.mxu3 %vm346_vm0, %v5311_v26 }
 0x257   : > { %5261 = vmatpush.xpose.msk.msra.mxu0 %vm346_vm0, %v5224_v29  ;;  %5279 = vmatpush.xpose.msk.msra.mxu1 %vm346_vm0, %v5240_v5  ;;  %v7618_v29 = vld [vmem:[#allocation10_spill] sm:$0xff] }
 0x258   : > { %5331 = vmatpush.xpose.msk.msra.mxu2 %vm346_vm0, %v5294_v44  ;;  %5349 = vmatpush.xpose.msk.msra.mxu3 %vm346_vm0, %v5310_v22  ;;  %v7619_v44 = vld [vmem:[#allocation11_spill] sm:$0xff] }
 0x25b   : > { %5262 = vmatpush.xpose.msk.msra.mxu0 %vm346_vm0, %v5223_v57  ;;  %5280 = vmatpush.xpose.msk.msra.mxu1 %vm346_vm0, %v5239_v51 }
 0x25c   : > { %5332 = vmatpush.xpose.msk.msra.mxu2 %vm346_vm0, %v5293_v10  ;;  %5350 = vmatpush.xpose.msk.msra.mxu3 %vm346_vm0, %v5309_v33 }
 0x25f   : > { %5263 = vmatpush.xpose.msk.msra.mxu0 %vm346_vm0, %v6758_v37  ;;  %5281 = vmatpush.xpose.msk.msra.mxu1 %vm346_vm0, %v6761_v40  ;;  %v4182_v37 = vld [vmem:[%s7392_s4] sm:$0xff]  ;;  %v4183_v40 = vld [vmem:[%s7392_s4 + $0x8] sm:$0xff] }
 0x260   : > { %5333 = vmatpush.xpose.msk.msra.mxu2 %vm346_vm0, %v7602_v42  ;;  %5351 = vmatpush.xpose.msk.msra.mxu3 %vm346_vm0, %v7603_v54  ;;  %v5386_v42 = vmov 0   ;;  %v1981_v54 = vpop.f32.mrf.mxu3 }
 0x261   : > { %5373 = vset.pattern.permute.xlu0 %v5386_v42  ;;  %5374 = vset.pattern.permute.xlu1 %v5386_v42 }
 0x262   : > { %4186 = vperm.xlu0 %5373, %v4182_v37   ;;  %4191 = vperm.xlu1 %5374, %v4183_v40  }
 0x263   : > { %5264 = vmatpush.xpose.msk.msra.mxu0 %vm346_vm0, %v6778_v23  ;;  %5282 = vmatpush.xpose.msk.msra.mxu1 %vm346_vm0, %v6781_v18  ;;  %v5387_v18 = vmov 1   ;;  %v3795_v23 = vpop.trf.xlu2 }
 0x264   : > { %5334 = vmatpush.xpose.msk.msra.mxu2 %vm346_vm0, %v7604_v14  ;;  %5352 = vmatpush.xpose.msk.msra.mxu3 %vm346_vm0, %v7605_v53 }
 0x265   : > { %5375 = vset.pattern.permute.xlu2 %v5387_v18 }
 0x266   : > { %4199 = vperm.xlu2 %5375, %v4182_v37  }
 0x267   : > { %5265 = vmatpush.xpose.msk.msra.mxu0 %vm346_vm0, %v6798_v49  ;;  %5283 = vmatpush.xpose.msk.msra.mxu1 %vm346_vm0, %v6801_v46  ;;  %v4014_v49 = vpop.trf.xlu1 }
 0x268   : > { %5335 = vmatpush.xpose.msk.msra.mxu2 %vm346_vm0, %v7606_v0  ;;  %5353 = vmatpush.xpose.msk.msra.mxu3 %vm346_vm0, %v7607_v56  ;;  %v1984_v56 = vpop.f32.mrf.mxu3 }
 0x26a   : > { %5376 = vset.pattern.permute.xlu1 %v5387_v18  ;;  %5377 = vset.pattern.permute.xlu0 %v5387_v18 }
 0x26b   : > { %5266 = vmatpush.xpose.msk.msra.mxu0 %vm346_vm0, %v6818_v34  ;;  %5284 = vmatpush.xpose.msk.msra.mxu1 %vm346_vm0, %v6821_v15  ;;  %v3796_v46 = vpop.trf.xlu2  ;;  %v1762_v34 = vpop.f32.mrf.mxu1 }
 0x26c   : > { %5336 = vmatpush.xpose.msk.msra.mxu2 %vm346_vm0, %v7608_v50  ;;  %5354 = vmatpush.xpose.msk.msra.mxu3 %vm346_vm0, %v7609_v6  ;;  %v1958_v15 = vpop.f32.mrf.mxu2  ;;  %v1769_v62 = vadd.f32 %v1762_v34, %v7617_v32 }
 0x26d   : > { %4203 = vperm.xlu1 %5376, %v4183_v40  }
 0x26e   : > { %v1988_v39 = vadd.f32 %v1981_v54, %v1769_v62 }
 0x26f   : > { %5267 = vmatpush.xpose.msk.msra.mxu0 %vm346_vm0, %v6838_v20  ;;  %5285 = vmatpush.xpose.msk.msra.mxu1 %vm346_vm0, %v6841_v48  ;;  %v4015_v20 = vpop.trf.xlu1  ;;  %v1739_v48 = vpop.f32.mrf.mxu0 }
 0x270   : > { %5337 = vmatpush.xpose.msk.msra.mxu2 %vm346_vm0, %v7610_v2  ;;  %5355 = vmatpush.xpose.msk.msra.mxu3 %vm346_vm0, %v7611_v3  ;;  %v2418_v3 = vpop.f32.mrf.mxu3  ;;  %v1768_v11 = vadd.f32 %v1739_v48, %v7616_v52 }
 0x272   : > { %5268 = vmatmul.msk.f32.vlgmr.msra.gmra.mxu0 %vm346_vm0, %v3795_v23  ;;  %5286 = vmatmul.msk.f32.vlgmr.msra.gmra.mxu1 %vm346_vm0, %v3795_v23  ;;  %v1987_v28 = vadd.f32 %v1958_v15, %v1768_v11 }
 0x273   : > { %5338 = vmatmul.msk.f32.vlgmr.msra.gmra.mxu2 %vm346_vm0, %v4014_v49  ;;  %5356 = vmatmul.msk.f32.vlgmr.msra.gmra.mxu3 %vm346_vm0, %v4014_v49  ;;  %v1765_v53 = vpop.f32.mrf.mxu1 }
 0x274   : > { %v1961_v0 = vpop.f32.mrf.mxu2  ;;  %v1771_v22 = vadd.f32 %v1765_v53, %v7619_v44 }
 0x276   : > { %v1990_v33 = vadd.f32 %v1984_v56, %v1771_v22 }
 0x277   : > { %v1742_v14 = vpop.f32.mrf.mxu0 }
 0x278   : > { %v2421_v63 = vpop.f32.mrf.mxu3  ;;  %v1770_v5 = vadd.f32 %v1742_v14, %v7618_v29 }
 0x27a   : > { %5269 = vmatmul.msk.f32.gmra.mxu0 %vm346_vm0, %v3796_v46  ;;  %5287 = vmatmul.msk.f32.gmra.mxu1 %vm346_vm0, %v3796_v46  ;;  %v1989_v10 = vadd.f32 %v1961_v0, %v1770_v5 }
 0x27b   : > { %5339 = vmatmul.msk.f32.gmra.mxu2 %vm346_vm0, %v4015_v20  ;;  %5357 = vmatmul.msk.f32.gmra.mxu3 %vm346_vm0, %v4015_v20  ;;  %v2200_v6 = vpop.f32.mrf.mxu1 }
 0x27c   : > { %v2395_v2 = vpop.f32.mrf.mxu2  ;;  %v2207_v27 = vadd.f32 %v2200_v6, %v1988_v39 }
 0x27e   : > { %v2425_v4 = vadd.f32 %v2418_v3, %v2207_v27 }
 0x27f   : > { %v2177_v50 = vpop.f32.mrf.mxu0 }
 0x280   : > { %v2856_v61 = vpop.f32.mrf.mxu3  ;;  %v2206_v41 = vadd.f32 %v2177_v50, %v1987_v28 }
 0x282   : > { %v2424_v60 = vadd.f32 %v2395_v2, %v2206_v41 }
 0x283   : > { %v2203_v16 = vpop.f32.mrf.mxu1 }
 0x284   : > { %v2398_v47 = vpop.f32.mrf.mxu2  ;;  %v2209_v18 = vadd.f32 %v2203_v16, %v1990_v33 }
 0x286   : > { %v2427_v34 = vadd.f32 %v2421_v63, %v2209_v18 }
 0x287   : > { %v2180_v43 = vpop.f32.mrf.mxu0 }
 0x288   : > { %v2859_v13 = vpop.f32.mrf.mxu3  ;;  %v2208_v42 = vadd.f32 %v2180_v43, %v1989_v10 }
 0x28a   : > { %v2426_v48 = vadd.f32 %v2398_v47, %v2208_v42 }
 0x28b   : > { %v2637_v8 = vpop.f32.mrf.mxu1 }
 0x28c   : > { %v2833_v17 = vpop.f32.mrf.mxu2  ;;  %v2644_v51 = vadd.f32 %v2637_v8, %v2425_v4 }
 0x28e   : > { %v2863_v40 = vadd.f32 %v2856_v61, %v2644_v51 }
 0x28f   : > { %v2614_v55 = vpop.f32.mrf.mxu0 }
 0x290   : > { %v3295_v30 = vpop.f32.mrf.mxu3  ;;  %v2643_v57 = vadd.f32 %v2614_v55, %v2424_v60 }
 0x292   : > { %v2862_v37 = vadd.f32 %v2833_v17, %v2643_v57 }
 0x293   : > { %v2640_v9 = vpop.f32.mrf.mxu1 }
 0x294   : > { %v2836_v12 = vpop.f32.mrf.mxu2  ;;  %v2646_v53 = vadd.f32 %v2640_v9, %v2427_v34 }
 0x296   : > { %v2865_v56 = vadd.f32 %v2859_v13, %v2646_v53 }
 0x297   : > { %v2617_v7 = vpop.f32.mrf.mxu0 }
 0x298   : > { %v3298_v59 = vpop.f32.mrf.mxu3  ;;  %v2645_v6 = vadd.f32 %v2617_v7, %v2426_v48 }
 0x29a   : > { %v2864_v0 = vadd.f32 %v2836_v12, %v2645_v6 }
 0x29b   : > { %v3076_v24 = vpop.f32.mrf.mxu1 }
 0x29c   : > { %v3272_v36 = vpop.f32.mrf.mxu2  ;;  %v3083_v49 = vadd.f32 %v3076_v24, %v2863_v40 }
 0x29e   : > { %v3302_v54 = vadd.f32 %v3295_v30, %v3083_v49 }
 0x29f   : > { %v3053_v19 = vpop.f32.mrf.mxu0 }
 0x2a0   : > { %v3082_v23 = vadd.f32 %v3053_v19, %v2862_v37 }
 0x2a2   : > { %v3301_v15 = vadd.f32 %v3272_v36, %v3082_v23 }
 0x2a3   : > { %v3079_v35 = vpop.f32.mrf.mxu1 }
 0x2a4   : > { %v3275_v38 = vpop.f32.mrf.mxu2  ;;  %v3085_v16 = vadd.f32 %v3079_v35, %v2865_v56 }
 0x2a6   : > { %v3304_v30 = vadd.f32 %v3298_v59, %v3085_v16 }
 0x2a7   : > { %v3056_v45 = vpop.f32.mrf.mxu0 }
 0x2a8   : > { %v3084_v43 = vadd.f32 %v3056_v45, %v2864_v0 }
 0x2aa   : > { %v3303_v36 = vadd.f32 %v3275_v38, %v3084_v43 }
 0x2af   : > { %v3491_v1 = vpop.f32.mrf.mxu0  ;;  %v3514_v58 = vpop.f32.mrf.mxu1 }
 0x2b0   : > { %v3520_v2 = vadd.f32 %v3491_v1, %v3301_v15  ;;  %v3521_v3 = vadd.f32 %v3514_v58, %v3302_v54 }
 0x2b7   : > { %v3494_v25 = vpop.f32.mrf.mxu0  ;;  %v3517_v26 = vpop.f32.mrf.mxu1 }
 0x2b8   : > { %v3711_v21 = vpop.f32.mrf.mxu2  ;;  %v3734_v31 = vpop.f32.mrf.mxu3  ;;  %v3522_v1 = vadd.f32 %v3494_v25, %v3303_v36  ;;  %v3523_v58 = vadd.f32 %v3517_v26, %v3304_v30 }
 0x2b9   : > { %v3740_v55 = vadd.f32 %v3711_v21, %v3520_v2  ;;  %v3741_v8 = vadd.f32 %v3734_v31, %v3521_v3 }
 0x2c0   : > { %v3714_v46 = vpop.f32.mrf.mxu2  ;;  %v3737_v20 = vpop.f32.mrf.mxu3 }
 0x2c1   : > { %v4200_v9 = vpop.permute.xlu2 %4199  ;;  %v3742_v35 = vadd.f32 %v3714_v46, %v3522_v1  ;;  %v3743_v32 = vadd.f32 %v3737_v20, %v3523_v58 }
 0x2d4   : > { %v4187_v19 = vpop.permute.xlu0 %4186  ;;  %v4192_v47 = vpop.permute.xlu1 %4191 }
 0x2df   : > { %v4204_v4 = vpop.permute.xlu1 %4203 }
 0x2ef   : > { %v3930_v50 = vpop.f32.mrf.mxu0  ;;  %v3953_v14 = vpop.f32.mrf.mxu1 }
 0x2f0   : > { %v3959_v17 = vadd.f32 %v3930_v50, %v3740_v55  ;;  %v3960_v61 = vadd.f32 %v3953_v14, %v3741_v8 }
 0x2f6   : > { %v4149_v63 = vpop.f32.mrf.mxu2  ;;  %v4172_v24 = vpop.f32.mrf.mxu3 }
 0x2f7   : > { %v4178_v52 = vadd.f32 %v4149_v63, %v3959_v17  ;;  %v4179_v7 = vadd.f32 %v4172_v24, %v3960_v61  ;;  %v3933_v11 = vpop.f32.mrf.mxu0  ;;  %v3956_v45 = vpop.f32.mrf.mxu1 }
 0x2f8   : > { %v3961_v38 = vadd.f32 %v3933_v11, %v3742_v35  ;;  %v3962_v59 = vadd.f32 %v3956_v45, %v3743_v32 }
 0x2f9   : > { %v4194_v12 = vmul.f32 %v4187_v19, %v4178_v52  ;;  %v4195_v13 = vmul.f32 %v4187_v19, %v4179_v7 }
 0x2fb   : > { %v4206_v62 = vadd.f32 %v4200_v9, %v4194_v12  ;;  %v4207_v28 = vadd.f32 %v4200_v9, %v4195_v13 }
 0x2fd   : > { %v4210_v39 = vmax.f32 %v4206_v62, 0.0  ;;  %v4211_v21 = vmax.f32 %v4207_v28, 0.0 }
 0x2fe   : > { %v4152_v31 = vpop.f32.mrf.mxu2  ;;  %v4175_v41 = vpop.f32.mrf.mxu3 }
 0x2ff   : > { %4214 = vst [vmem:[%s244_s26] sm:$0xff] %v4210_v39  ;;  %v4180_v27 = vadd.f32 %v4152_v31, %v3961_v38  ;;  %v4181_v60 = vadd.f32 %v4175_v41, %v3962_v59 }
 0x300   : > { %4215 = vst [vmem:[%s244_s26 + $0x8] sm:$0xff] %v4211_v21 }
 0x301   : > { %v4196_v25 = vmul.f32 %v4192_v47, %v4180_v27  ;;  %v4197_v26 = vmul.f32 %v4192_v47, %v4181_v60 }
 0x303   : > { %v4208_v29 = vadd.f32 %v4204_v4, %v4196_v25  ;;  %v4209_v5 = vadd.f32 %v4204_v4, %v4197_v26 }
 0x305   : > { %v4212_v44 = vmax.f32 %v4208_v29, 0.0  ;;  %v4213_v22 = vmax.f32 %v4209_v5, 0.0 }
 0x307   : > { %4216 = vst [vmem:[%s244_s26 + $0x10] sm:$0xff] %v4212_v44 }
 0x308   : > { %4217 = vst [vmem:[%s244_s26 + $0x18] sm:$0xff] %v4213_v22 }
 0x309 PF: > { %s15_s18 = sadd.s32 1, %s5384_s18  }
 0x30a   : > { %p12_p4 = scmp.ge.s32.totalorder %s15_s18, 4  }
 0x30c   :  { %14 = sbr.rel (!%p12_p4) target bundleno = 1 (0x1), region = 93 }

</bundles_post_ra>
